<compile_context>
chip_gen: v6e
topology: v6e:2x2x1
jax: 0.10.0
libtpu: 0.0.40
codegen_flags: <defaults>
</compile_context>

<pallas_src>
import functools

import jax
import jax.numpy as jnp
from jax import lax
from jax.experimental import pallas as pl
from jax.experimental.pallas import tpu as pltpu

EPS = 1e-5


def _sa_module_kernel(B, N, C, Np, S, mlp, eps, *refs):
    """Grid over batch (sequential). Per step: kNN one-hots -> one batched gather/conv
    matmul -> layer-1 moment accumulation -> compact z store. Last step: folded-BN
    epilogue chunked over M, remaining conv layers, max-pool, lane-dense output."""
    L = len(mlp)
    n_in = 7 + 3 * (L - 1)
    (xyz_ref, newx_ref, feat_ref, w1p_ref, w1f_ref, g1_ref, b1_ref) = refs[:7]
    layer_refs = refs[7:n_in]
    out_ref = refs[n_in]                                  # (B, mlp[-1], Np) resident
    oh_scr, msum_scr, msq_scr = refs[n_in + 1:n_in + 4]
    z_scrs = refs[n_in + 4:]                              # per-layer (mlp[li], B*S*Np)

    f32 = jnp.float32
    dn_canon = (((1,), (0,)), ((), ()))                   # (M,K) @ (K,N)
    dn_trans = (((1,), (1,)), ((), ()))                   # (M,K) @ (N,K)  transpose_rhs

    b = pl.program_id(0)
    blk = S * Np
    Mtot = B * blk

    # ---------------- phase 1a: kNN selection, one-hot rows spilled to oh_scr -------
    x = xyz_ref[0]                                        # (3, N)  channel-major
    feats = feat_ref[0]                                   # (C, N)
    new_x = newx_ref[0]                                   # (Np, 3) arange(npoint) rows

    # squared-distance surrogate (per-query constant ||new_x||^2 dropped):
    #   d[i, j] = ||x_j||^2 - 2 <new_x_i, x_j>   queries on sublanes, neighbors on lanes
    inner = lax.dot_general(new_x * (-2.0), x, dn_canon,
                            preferred_element_type=f32)   # (Np, N) MXU
    x2n = jnp.sum(x * x, axis=0, keepdims=True)           # (1, N)  3-sublane reduce
    d = inner + x2n                                       # (Np, N)
    # NOTE: the K=4 augmented-matmul fold of ||x||^2 was considered; the 3+1-row/col
    # concats it needs are a riskier relayout than this single sublane-broadcast add.

    # f32 iota: same vreg footprint as i32, f32 lane-min is the proven lowering path;
    # one-hot stays bool until the single cast at its store.
    colf = lax.broadcasted_iota(jnp.int32, (Np, N), 1).astype(f32)

    def _select_next(dcur):
        m = jnp.min(dcur, axis=1, keepdims=True)                     # (Np, 1)
        cand = jnp.where(dcur <= m, colf, float(N))                  # first-occurrence
        sel = jnp.min(cand, axis=1, keepdims=True)
        oh = colf == sel                                             # (Np, N) bool
        return oh, jnp.where(oh, jnp.inf, dcur)

    if S <= 16:                                           # small S: static offsets
        for s in range(S):
            oh, d = _select_next(d)
            oh_scr[s * Np:(s + 1) * Np, :] = oh.astype(f32)
    else:                                                 # large S: bounded live ranges
        def _knn_body(s, dcur):
            oh, dnext = _select_next(dcur)
            off = pl.multiple_of(s * Np, Np)
            oh_scr[pl.ds(off, Np), :] = oh.astype(f32)
            return dnext
        d = lax.fori_loop(0, S, _knn_body, d)

    # ---------------- phase 1b: fused gather + first 1x1 conv (ONE batched matmul) ---
    #   z_s^T = (w1p @ x + w1f @ f) @ oh_s^T - w1p @ new_x^T = projT @ oh^T + constT
    projT = (lax.dot_general(w1p_ref[...], x, dn_canon, preferred_element_type=f32)
             + lax.dot_general(w1f_ref[...], feats, dn_canon,
                               preferred_element_type=f32))          # (mlp0, N)
    constT = -lax.dot_general(w1p_ref[...], new_x, dn_trans,
                              preferred_element_type=f32)            # (mlp0, Np)

    z = lax.dot_general(projT, oh_scr[...], dn_trans,
                        preferred_element_type=f32)                  # (mlp0, S*Np)
    z = z + jnp.concatenate([constT] * S, axis=1)                    # per-query const

    # layer-1 BN moments accumulated during the pipelined phase (f32 sums)
    bsum = jnp.sum(z, axis=1, keepdims=True)
    bsq = jnp.sum(z * z, axis=1, keepdims=True)

    @pl.when(b == 0)
    def _init_moments():
        msum_scr[...] = jnp.zeros_like(msum_scr)
        msq_scr[...] = jnp.zeros_like(msq_scr)

    msum_scr[...] += bsum
    msq_scr[...] += bsq

    boff = pl.multiple_of(b * blk, Np)
    z_scrs[0][:, pl.ds(boff, blk)] = z.astype(z_scrs[0].dtype)       # lane-dense store

    # ---------------- phase 2 (last step): folded BN + ReLU + convs + max-pool -------
    @pl.when(b == B - 1)
    def _epilogue():
        inv_m = 1.0 / float(Mtot)

        def _fold(ssum, ssq, g, be):
            mean = ssum * inv_m
            var = ssq * inv_m - mean * mean                # single-pass biased variance
            scale = g * lax.rsqrt(var + eps)
            return scale, be - mean * scale

        scale, bias = _fold(msum_scr[...], msq_scr[...], g1_ref[...], b1_ref[...])

        # intermediate layers, chunked over M: only one (C_k, S*Np) slab live per step;
        # next layer's moments accumulated on the fly (two-pass stats/apply structure).
        for li in range(1, L):
            w_ref, g_ref, be_ref = layer_refs[3 * (li - 1):3 * li]
            w = w_ref[...]
            o_ch = mlp[li]

            def _chunk(c, carry, _w=w, _scale=scale, _bias=bias, _li=li):
                ssum, ssq = carry
                off = pl.multiple_of(c * blk, Np)
                h = jnp.maximum(
                    z_scrs[_li - 1][:, pl.ds(off, blk)].astype(f32) * _scale + _bias,
                    0.0)
                znext = lax.dot_general(_w, h, dn_canon, preferred_element_type=f32)
                z_scrs[_li][:, pl.ds(off, blk)] = znext.astype(z_scrs[_li].dtype)
                return (ssum + jnp.sum(znext, axis=1, keepdims=True),
                        ssq + jnp.sum(znext * znext, axis=1, keepdims=True))

            ssum, ssq = lax.fori_loop(
                0, B, _chunk,
                (jnp.zeros((o_ch, 1), f32), jnp.zeros((o_ch, 1), f32)))
            scale, bias = _fold(ssum, ssq, g_ref[...], be_ref[...])

        # final layer: apply folded BN+ReLU per (batch, sample) block and max-pool over
        # nsample; output written lane-dense as (B, mlp[-1], Np).
        zlast = z_scrs[L - 1]
        c_out = mlp[L - 1]
        for bb in range(B):
            def _pool(s, acc, _bb=bb, _scale=scale, _bias=bias):
                off = pl.multiple_of((_bb * S + s) * Np, Np)
                zc = zlast[:, pl.ds(off, Np)].astype(f32)
                return jnp.maximum(acc, jnp.maximum(zc * _scale + _bias, 0.0))
            # ReLU output >= 0, so zero-init is the identity for the running max.
            out_ref[bb] = lax.fori_loop(0, S, _pool, jnp.zeros((c_out, Np), f32))


def pointnet_sa_forward(xyz, features, npoint, nsample, mlp, params, eps=EPS,
                        scratch_dtype=jnp.bfloat16):
    """Pallas-backed _PointnetSAModuleBase.forward (single grouper / single MLP).

    xyz:      (B, N, 3) f32
    features: (B, C, N) f32
    Returns (new_xyz (B, npoint, 3), new_features (B, mlp[-1], npoint)).
    """
    B, N, _ = xyz.shape
    C = features.shape[1]
    S, Np, L = nsample, npoint, len(mlp)

    # alignment guards (otherwise every store becomes a masked vst / wasted sublanes)
    assert Np % 128 == 0, "npoint must be a multiple of 128 (pad upstream)"
    assert all(m % 8 == 0 for m in mlp), "mlp widths must be multiples of 8"
    assert S <= N, "nsample must not exceed the number of input points"
    # TODO(synk): pad unaligned npoint / mlp widths instead of asserting.

    if scratch_dtype == jnp.bfloat16 and not all(m % 16 == 0 for m in mlp):
        scratch_dtype = jnp.float32                        # bf16 sublane tile is 16

    xyz_cm = jnp.transpose(xyz, (0, 2, 1))                 # (B, 3, N) channel-major
    new_xyz = xyz[:, :Np, :]                               # arange(npoint) sampling

    # split first-layer weight by the concat channel order [pos_diff(3), grouped_feat(C)]
    w1 = params["w"][0]                                    # (mlp[0], 3 + C)
    w1p, w1f = w1[:, :3], w1[:, 3:3 + C]

    args = [xyz_cm, new_xyz, features, w1p, w1f,
            params["gamma"][0][:, None], params["beta"][0][:, None]]
    in_specs = [
        pl.BlockSpec((1, 3, N), lambda b: (b, 0, 0)),
        pl.BlockSpec((1, Np, 3), lambda b: (b, 0, 0)),
        pl.BlockSpec((1, C, N), lambda b: (b, 0, 0)),
        pl.BlockSpec((mlp[0], 3), lambda b: (0, 0)),
        pl.BlockSpec((mlp[0], C), lambda b: (0, 0)),
        pl.BlockSpec((mlp[0], 1), lambda b: (0, 0)),
        pl.BlockSpec((mlp[0], 1), lambda b: (0, 0)),
    ]
    for li in range(1, L):
        args += [params["w"][li],
                 params["gamma"][li][:, None],
                 params["beta"][li][:, None]]
        in_specs += [
            pl.BlockSpec((mlp[li], mlp[li - 1]), lambda b: (0, 0)),
            pl.BlockSpec((mlp[li], 1), lambda b: (0, 0)),
            pl.BlockSpec((mlp[li], 1), lambda b: (0, 0)),
        ]

    Mtot = B * S * Np
    scratch_shapes = (
        [pltpu.VMEM((S * Np, N), jnp.float32),             # per-batch kNN one-hot rows
         pltpu.VMEM((mlp[0], 1), jnp.float32),             # layer-1 running sum
         pltpu.VMEM((mlp[0], 1), jnp.float32)]             # layer-1 running sum-of-sq
        + [pltpu.VMEM((mlp[li], Mtot), scratch_dtype) for li in range(L)])

    kernel = functools.partial(_sa_module_kernel, B, N, C, Np, S, tuple(mlp), eps)
    new_feat = pl.pallas_call(
        kernel,
        out_shape=jax.ShapeDtypeStruct((B, mlp[-1], Np), jnp.float32),
        grid_spec=pltpu.PrefetchScalarGridSpec(
            num_scalar_prefetch=0,
            grid=(B,),
            in_specs=in_specs,
            # output resident across the whole grid; written in the last-step epilogue
            out_specs=pl.BlockSpec((B, mlp[-1], Np), lambda b: (0, 0, 0)),
            scratch_shapes=scratch_shapes,
        ),
        # BN stats + epilogue need all batches' scratch -> batch axis stays sequential.
        compiler_params=pltpu.CompilerParams(dimension_semantics=("arbitrary",)),
    )(*args)

    return new_xyz, new_feat


def pointnet_sa_reference(xyz, features, npoint, nsample, mlp, params, eps=EPS):
    """Pure-JAX reference of the PyTorch forward (train-mode BN, kNN grouping)."""
    B, N, _ = xyz.shape
    C = features.shape[1]
    S = nsample

    new_xyz = xyz[:, :npoint, :]
    d = (jnp.sum(xyz * xyz, axis=-1)[:, None, :]
         - 2.0 * jnp.einsum('bic,bjc->bij', new_xyz, xyz))           # (B, Np, N)
    _, idx = lax.top_k(-d, S)                                        # (B, Np, S)

    bidx = jnp.arange(B)[:, None, None]
    g_xyz = xyz[bidx, idx]                                           # (B, Np, S, 3)
    feat_t = jnp.transpose(features, (0, 2, 1))
    g_feat = feat_t[bidx, idx]                                       # (B, Np, S, C)
    pos = g_xyz - new_xyz[:, :, None, :]

    x = jnp.concatenate([pos, g_feat], axis=-1)                      # (B, Np, S, 3+C)
    denom = B * npoint * S
    for li in range(len(mlp)):
        z = jnp.einsum('bnsc,oc->bnso', x, params["w"][li])
        mean = jnp.sum(z, axis=(0, 1, 2), keepdims=True) / denom
        var = jnp.sum((z - mean) ** 2, axis=(0, 1, 2), keepdims=True) / denom
        x = jnp.maximum((z - mean) / jnp.sqrt(var + eps) * params["gamma"][li]
                        + params["beta"][li], 0.0)
    out = jnp.max(x, axis=2)                                         # (B, Np, mlp[-1])
    return new_xyz, jnp.transpose(out, (0, 2, 1))                    # (B, mlp[-1], Np)


if __name__ == "__main__":
    B, N, C = 2, 256, 4
    npoint, nsample = 128, 8
    mlp = [16, 32]

    key = jax.random.PRNGKey(0)
    kx, kf, kw = jax.random.split(key, 3)
    xyz = jax.random.normal(kx, (B, N, 3), jnp.float32)
    features = jax.random.normal(kf, (B, C, N), jnp.float32)

    # deterministic synthetic parameters (Conv2d(1x1, bias=False) + BN2d per layer)
    params = {"w": [], "gamma": [], "beta": []}
    last = 3 + C
    for o in mlp:
        kw, kwi, kgi, kbi = jax.random.split(kw, 4)
        params["w"].append(0.1 * jax.random.normal(kwi, (o, last), jnp.float32))
        params["gamma"].append(1.0 + 0.1 * jax.random.normal(kgi, (o,), jnp.float32))
        params["beta"].append(0.1 * jax.random.normal(kbi, (o,), jnp.float32))
        last = o

    ref_xyz, ref_feat = pointnet_sa_reference(xyz, features, npoint, nsample, mlp, params)

    # f32 inter-layer scratch: strict numerical check
    new_xyz, new_feat = pointnet_sa_forward(xyz, features, npoint, nsample, mlp, params,
                                            scratch_dtype=jnp.float32)
    new_feat = jax.block_until_ready(new_feat)
    assert new_xyz.shape == (B, npoint, 3)
    assert new_feat.shape == (B, mlp[-1], npoint)
    assert float(jnp.max(jnp.abs(new_xyz - ref_xyz))) == 0.0
    err_f32 = float(jnp.max(jnp.abs(new_feat - ref_feat)))
    assert err_f32 < 1e-2, f"f32-scratch mismatch vs reference: {err_f32}"

    # bf16 inter-layer scratch (halves scratch VMEM / epilogue bandwidth, review item 7);
    # bf16 rounding before BN -> looser tolerance.
    _, feat_bf16 = pointnet_sa_forward(xyz, features, npoint, nsample, mlp, params,
                                       scratch_dtype=jnp.bfloat16)
    feat_bf16 = jax.block_until_ready(feat_bf16)
    err_bf16 = float(jnp.max(jnp.abs(feat_bf16 - ref_feat)))
    assert err_bf16 < 5e-2, f"bf16-scratch mismatch vs reference: {err_bf16}"

    print("KERNEL_OK")
</pallas_src>

<mosaic_0001>
module attributes {stable_mosaic.version = 11 : i64} {
  func.func @_sa_module_kernel(%arg0: i32, %arg1: memref<1x3x256xf32, #tpu.memory_space<vmem>>, %arg2: memref<1x128x3xf32, #tpu.memory_space<vmem>>, %arg3: memref<1x4x256xf32, #tpu.memory_space<vmem>>, %arg4: memref<16x3xf32, #tpu.memory_space<vmem>>, %arg5: memref<16x4xf32, #tpu.memory_space<vmem>>, %arg6: memref<16x1xf32, #tpu.memory_space<vmem>>, %arg7: memref<16x1xf32, #tpu.memory_space<vmem>>, %arg8: memref<32x16xf32, #tpu.memory_space<vmem>>, %arg9: memref<32x1xf32, #tpu.memory_space<vmem>>, %arg10: memref<32x1xf32, #tpu.memory_space<vmem>>, %arg11: memref<2x32x128xf32, #tpu.memory_space<vmem>>, %arg12: memref<1024x256xf32, #tpu.memory_space<vmem>>, %arg13: memref<16x1xf32, #tpu.memory_space<vmem>>, %arg14: memref<16x1xf32, #tpu.memory_space<vmem>>, %arg15: memref<16x2048xf32, #tpu.memory_space<vmem>>, %arg16: memref<32x2048xf32, #tpu.memory_space<vmem>>) attributes {dimension_semantics = [#tpu.dimension_semantics<arbitrary>], iteration_bounds = array<i64: 2>, scalar_prefetch = 0 : i64, scratch_operands = 5 : i64, tpu.core_type = #tpu.core_type<tc>, window_params = [{transform_indices = @transform_0, window_bounds = array<i64: 1, 3, 256>}, {transform_indices = @transform_1, window_bounds = array<i64: 1, 128, 3>}, {transform_indices = @transform_2, window_bounds = array<i64: 1, 4, 256>}, {pipeline_mode = #tpu.pipeline_mode<synchronous>, transform_indices = @transform_3, window_bounds = array<i64: 16, 3>}, {pipeline_mode = #tpu.pipeline_mode<synchronous>, transform_indices = @transform_4, window_bounds = array<i64: 16, 4>}, {pipeline_mode = #tpu.pipeline_mode<synchronous>, transform_indices = @transform_5, window_bounds = array<i64: 16, 1>}, {pipeline_mode = #tpu.pipeline_mode<synchronous>, transform_indices = @transform_6, window_bounds = array<i64: 16, 1>}, {pipeline_mode = #tpu.pipeline_mode<synchronous>, transform_indices = @transform_7, window_bounds = array<i64: 32, 16>}, {pipeline_mode = #tpu.pipeline_mode<synchronous>, transform_indices = @transform_8, window_bounds = array<i64: 32, 1>}, {pipeline_mode = #tpu.pipeline_mode<synchronous>, transform_indices = @transform_9, window_bounds = array<i64: 32, 1>}, {pipeline_mode = #tpu.pipeline_mode<synchronous>, transform_indices = @transform_10, window_bounds = array<i64: 2, 32, 128>}]} {
    %c0 = arith.constant 0 : index
    %c0_0 = arith.constant 0 : index
    %c0_1 = arith.constant 0 : index
    %0 = vector.load %arg1[%c0, %c0_0, %c0_1] : memref<1x3x256xf32, #tpu.memory_space<vmem>>, vector<1x3x256xf32>
    %1 = vector.shape_cast %0 : vector<1x3x256xf32> to vector<3x256xf32>
    %c0_2 = arith.constant 0 : index
    %c0_3 = arith.constant 0 : index
    %c0_4 = arith.constant 0 : index
    %2 = vector.load %arg3[%c0_2, %c0_3, %c0_4] : memref<1x4x256xf32, #tpu.memory_space<vmem>>, vector<1x4x256xf32>
    %3 = vector.shape_cast %2 : vector<1x4x256xf32> to vector<4x256xf32>
    %c0_5 = arith.constant 0 : index
    %c0_6 = arith.constant 0 : index
    %c0_7 = arith.constant 0 : index
    %4 = vector.load %arg2[%c0_5, %c0_6, %c0_7] : memref<1x128x3xf32, #tpu.memory_space<vmem>>, vector<1x128x3xf32>
    %5 = vector.shape_cast %4 : vector<1x128x3xf32> to vector<128x3xf32>
    %cst = arith.constant -2.000000e+00 : f32
    %6 = vector.broadcast %cst : f32 to vector<128x3xf32>
    %7 = arith.mulf %5, %6 : vector<128x3xf32>
    %cst_8 = arith.constant dense<0.000000e+00> : vector<128x256xf32>
    %8 = tpu.matmul %7, %1, %cst_8 {dimension_numbers = #tpu.dot_dimension_numbers<[1], [0], [0], [1], [0, 0, 1, 1], [], []>} : vector<128x3xf32>, vector<3x256xf32>, vector<128x256xf32> -> vector<128x256xf32>
    %9 = arith.mulf %1, %1 : vector<3x256xf32>
    %cst_9 = arith.constant dense<0.000000e+00> : vector<256xf32>
    %10 = vector.multi_reduction <add>, %9, %cst_9 [0] : vector<3x256xf32> to vector<256xf32>
    %11 = vector.shape_cast %10 : vector<256xf32> to vector<1x256xf32>
    %12 = vector.broadcast %11 : vector<1x256xf32> to vector<128x256xf32>
    %13 = arith.addf %8, %12 : vector<128x256xf32>
    %14 = tpu.iota {dimensions = array<i32: 1>} : vector<128x256xi32>
    %15 = arith.sitofp %14 : vector<128x256xi32> to vector<128x256xf32>
    %cst_10 = arith.constant dense<0x7F800000> : vector<128xf32>
    %16 = vector.multi_reduction <minimumf>, %13, %cst_10 [1] : vector<128x256xf32> to vector<128xf32>
    %17 = vector.shape_cast %16 : vector<128xf32> to vector<128x1xf32>
    %18 = vector.broadcast %17 : vector<128x1xf32> to vector<128x256xf32>
    %19 = arith.cmpf ole, %13, %18 : vector<128x256xf32>
    %cst_11 = arith.constant 2.560000e+02 : f32
    %20 = vector.broadcast %cst_11 : f32 to vector<128x256xf32>
    %21 = arith.select %19, %15, %20 : vector<128x256xi1>, vector<128x256xf32>
    %cst_12 = arith.constant dense<0x7F800000> : vector<128xf32>
    %22 = vector.multi_reduction <minimumf>, %21, %cst_12 [1] : vector<128x256xf32> to vector<128xf32>
    %23 = vector.shape_cast %22 : vector<128xf32> to vector<128x1xf32>
    %24 = vector.broadcast %23 : vector<128x1xf32> to vector<128x256xf32>
    %25 = arith.cmpf oeq, %15, %24 : vector<128x256xf32>
    %cst_13 = arith.constant 0x7F800000 : f32
    %26 = vector.broadcast %cst_13 : f32 to vector<128x256xf32>
    %27 = arith.select %25, %26, %13 : vector<128x256xi1>, vector<128x256xf32>
    %28 = arith.extui %25 : vector<128x256xi1> to vector<128x256xi32>
    %29 = arith.sitofp %28 : vector<128x256xi32> to vector<128x256xf32>
    %c0_14 = arith.constant 0 : index
    %c0_15 = arith.constant 0 : index
    %30 = vector.load %arg12[%c0_14, %c0_15] : memref<1024x256xf32, #tpu.memory_space<vmem>>, vector<128x256xf32>
    tpu.vector_store %arg12[%c0_14, %c0_15], %29 {strides = array<i32>} : memref<1024x256xf32, #tpu.memory_space<vmem>>, vector<128x256xf32>,
    %cst_16 = arith.constant dense<0x7F800000> : vector<128xf32>
    %31 = vector.multi_reduction <minimumf>, %27, %cst_16 [1] : vector<128x256xf32> to vector<128xf32>
    %32 = vector.shape_cast %31 : vector<128xf32> to vector<128x1xf32>
    %33 = vector.broadcast %32 : vector<128x1xf32> to vector<128x256xf32>
    %34 = arith.cmpf ole, %27, %33 : vector<128x256xf32>
    %cst_17 = arith.constant 2.560000e+02 : f32
    %35 = vector.broadcast %cst_17 : f32 to vector<128x256xf32>
    %36 = arith.select %34, %15, %35 : vector<128x256xi1>, vector<128x256xf32>
    %cst_18 = arith.constant dense<0x7F800000> : vector<128xf32>
    %37 = vector.multi_reduction <minimumf>, %36, %cst_18 [1] : vector<128x256xf32> to vector<128xf32>
    %38 = vector.shape_cast %37 : vector<128xf32> to vector<128x1xf32>
    %39 = vector.broadcast %38 : vector<128x1xf32> to vector<128x256xf32>
    %40 = arith.cmpf oeq, %15, %39 : vector<128x256xf32>
    %cst_19 = arith.constant 0x7F800000 : f32
    %41 = vector.broadcast %cst_19 : f32 to vector<128x256xf32>
    %42 = arith.select %40, %41, %27 : vector<128x256xi1>, vector<128x256xf32>
    %43 = arith.extui %40 : vector<128x256xi1> to vector<128x256xi32>
    %44 = arith.sitofp %43 : vector<128x256xi32> to vector<128x256xf32>
    %c128 = arith.constant 128 : index
    %c0_20 = arith.constant 0 : index
    %45 = vector.load %arg12[%c128, %c0_20] : memref<1024x256xf32, #tpu.memory_space<vmem>>, vector<128x256xf32>
    tpu.vector_store %arg12[%c128, %c0_20], %44 {strides = array<i32>} : memref<1024x256xf32, #tpu.memory_space<vmem>>, vector<128x256xf32>,
    %cst_21 = arith.constant dense<0x7F800000> : vector<128xf32>
    %46 = vector.multi_reduction <minimumf>, %42, %cst_21 [1] : vector<128x256xf32> to vector<128xf32>
    %47 = vector.shape_cast %46 : vector<128xf32> to vector<128x1xf32>
    %48 = vector.broadcast %47 : vector<128x1xf32> to vector<128x256xf32>
    %49 = arith.cmpf ole, %42, %48 : vector<128x256xf32>
    %cst_22 = arith.constant 2.560000e+02 : f32
    %50 = vector.broadcast %cst_22 : f32 to vector<128x256xf32>
    %51 = arith.select %49, %15, %50 : vector<128x256xi1>, vector<128x256xf32>
    %cst_23 = arith.constant dense<0x7F800000> : vector<128xf32>
    %52 = vector.multi_reduction <minimumf>, %51, %cst_23 [1] : vector<128x256xf32> to vector<128xf32>
    %53 = vector.shape_cast %52 : vector<128xf32> to vector<128x1xf32>
    %54 = vector.broadcast %53 : vector<128x1xf32> to vector<128x256xf32>
    %55 = arith.cmpf oeq, %15, %54 : vector<128x256xf32>
    %cst_24 = arith.constant 0x7F800000 : f32
    %56 = vector.broadcast %cst_24 : f32 to vector<128x256xf32>
    %57 = arith.select %55, %56, %42 : vector<128x256xi1>, vector<128x256xf32>
    %58 = arith.extui %55 : vector<128x256xi1> to vector<128x256xi32>
    %59 = arith.sitofp %58 : vector<128x256xi32> to vector<128x256xf32>
    %c256 = arith.constant 256 : index
    %c0_25 = arith.constant 0 : index
    %60 = vector.load %arg12[%c256, %c0_25] : memref<1024x256xf32, #tpu.memory_space<vmem>>, vector<128x256xf32>
    tpu.vector_store %arg12[%c256, %c0_25], %59 {strides = array<i32>} : memref<1024x256xf32, #tpu.memory_space<vmem>>, vector<128x256xf32>,
    %cst_26 = arith.constant dense<0x7F800000> : vector<128xf32>
    %61 = vector.multi_reduction <minimumf>, %57, %cst_26 [1] : vector<128x256xf32> to vector<128xf32>
    %62 = vector.shape_cast %61 : vector<128xf32> to vector<128x1xf32>
    %63 = vector.broadcast %62 : vector<128x1xf32> to vector<128x256xf32>
    %64 = arith.cmpf ole, %57, %63 : vector<128x256xf32>
    %cst_27 = arith.constant 2.560000e+02 : f32
    %65 = vector.broadcast %cst_27 : f32 to vector<128x256xf32>
    %66 = arith.select %64, %15, %65 : vector<128x256xi1>, vector<128x256xf32>
    %cst_28 = arith.constant dense<0x7F800000> : vector<128xf32>
    %67 = vector.multi_reduction <minimumf>, %66, %cst_28 [1] : vector<128x256xf32> to vector<128xf32>
    %68 = vector.shape_cast %67 : vector<128xf32> to vector<128x1xf32>
    %69 = vector.broadcast %68 : vector<128x1xf32> to vector<128x256xf32>
    %70 = arith.cmpf oeq, %15, %69 : vector<128x256xf32>
    %cst_29 = arith.constant 0x7F800000 : f32
    %71 = vector.broadcast %cst_29 : f32 to vector<128x256xf32>
    %72 = arith.select %70, %71, %57 : vector<128x256xi1>, vector<128x256xf32>
    %73 = arith.extui %70 : vector<128x256xi1> to vector<128x256xi32>
    %74 = arith.sitofp %73 : vector<128x256xi32> to vector<128x256xf32>
    %c384 = arith.constant 384 : index
    %c0_30 = arith.constant 0 : index
    %75 = vector.load %arg12[%c384, %c0_30] : memref<1024x256xf32, #tpu.memory_space<vmem>>, vector<128x256xf32>
    tpu.vector_store %arg12[%c384, %c0_30], %74 {strides = array<i32>} : memref<1024x256xf32, #tpu.memory_space<vmem>>, vector<128x256xf32>,
    %cst_31 = arith.constant dense<0x7F800000> : vector<128xf32>
    %76 = vector.multi_reduction <minimumf>, %72, %cst_31 [1] : vector<128x256xf32> to vector<128xf32>
    %77 = vector.shape_cast %76 : vector<128xf32> to vector<128x1xf32>
    %78 = vector.broadcast %77 : vector<128x1xf32> to vector<128x256xf32>
    %79 = arith.cmpf ole, %72, %78 : vector<128x256xf32>
    %cst_32 = arith.constant 2.560000e+02 : f32
    %80 = vector.broadcast %cst_32 : f32 to vector<128x256xf32>
    %81 = arith.select %79, %15, %80 : vector<128x256xi1>, vector<128x256xf32>
    %cst_33 = arith.constant dense<0x7F800000> : vector<128xf32>
    %82 = vector.multi_reduction <minimumf>, %81, %cst_33 [1] : vector<128x256xf32> to vector<128xf32>
    %83 = vector.shape_cast %82 : vector<128xf32> to vector<128x1xf32>
    %84 = vector.broadcast %83 : vector<128x1xf32> to vector<128x256xf32>
    %85 = arith.cmpf oeq, %15, %84 : vector<128x256xf32>
    %cst_34 = arith.constant 0x7F800000 : f32
    %86 = vector.broadcast %cst_34 : f32 to vector<128x256xf32>
    %87 = arith.select %85, %86, %72 : vector<128x256xi1>, vector<128x256xf32>
    %88 = arith.extui %85 : vector<128x256xi1> to vector<128x256xi32>
    %89 = arith.sitofp %88 : vector<128x256xi32> to vector<128x256xf32>
    %c512 = arith.constant 512 : index
    %c0_35 = arith.constant 0 : index
    %90 = vector.load %arg12[%c512, %c0_35] : memref<1024x256xf32, #tpu.memory_space<vmem>>, vector<128x256xf32>
    tpu.vector_store %arg12[%c512, %c0_35], %89 {strides = array<i32>} : memref<1024x256xf32, #tpu.memory_space<vmem>>, vector<128x256xf32>,
    %cst_36 = arith.constant dense<0x7F800000> : vector<128xf32>
    %91 = vector.multi_reduction <minimumf>, %87, %cst_36 [1] : vector<128x256xf32> to vector<128xf32>
    %92 = vector.shape_cast %91 : vector<128xf32> to vector<128x1xf32>
    %93 = vector.broadcast %92 : vector<128x1xf32> to vector<128x256xf32>
    %94 = arith.cmpf ole, %87, %93 : vector<128x256xf32>
    %cst_37 = arith.constant 2.560000e+02 : f32
    %95 = vector.broadcast %cst_37 : f32 to vector<128x256xf32>
    %96 = arith.select %94, %15, %95 : vector<128x256xi1>, vector<128x256xf32>
    %cst_38 = arith.constant dense<0x7F800000> : vector<128xf32>
    %97 = vector.multi_reduction <minimumf>, %96, %cst_38 [1] : vector<128x256xf32> to vector<128xf32>
    %98 = vector.shape_cast %97 : vector<128xf32> to vector<128x1xf32>
    %99 = vector.broadcast %98 : vector<128x1xf32> to vector<128x256xf32>
    %100 = arith.cmpf oeq, %15, %99 : vector<128x256xf32>
    %cst_39 = arith.constant 0x7F800000 : f32
    %101 = vector.broadcast %cst_39 : f32 to vector<128x256xf32>
    %102 = arith.select %100, %101, %87 : vector<128x256xi1>, vector<128x256xf32>
    %103 = arith.extui %100 : vector<128x256xi1> to vector<128x256xi32>
    %104 = arith.sitofp %103 : vector<128x256xi32> to vector<128x256xf32>
    %c640 = arith.constant 640 : index
    %c0_40 = arith.constant 0 : index
    %105 = vector.load %arg12[%c640, %c0_40] : memref<1024x256xf32, #tpu.memory_space<vmem>>, vector<128x256xf32>
    tpu.vector_store %arg12[%c640, %c0_40], %104 {strides = array<i32>} : memref<1024x256xf32, #tpu.memory_space<vmem>>, vector<128x256xf32>,
    %cst_41 = arith.constant dense<0x7F800000> : vector<128xf32>
    %106 = vector.multi_reduction <minimumf>, %102, %cst_41 [1] : vector<128x256xf32> to vector<128xf32>
    %107 = vector.shape_cast %106 : vector<128xf32> to vector<128x1xf32>
    %108 = vector.broadcast %107 : vector<128x1xf32> to vector<128x256xf32>
    %109 = arith.cmpf ole, %102, %108 : vector<128x256xf32>
    %cst_42 = arith.constant 2.560000e+02 : f32
    %110 = vector.broadcast %cst_42 : f32 to vector<128x256xf32>
    %111 = arith.select %109, %15, %110 : vector<128x256xi1>, vector<128x256xf32>
    %cst_43 = arith.constant dense<0x7F800000> : vector<128xf32>
    %112 = vector.multi_reduction <minimumf>, %111, %cst_43 [1] : vector<128x256xf32> to vector<128xf32>
    %113 = vector.shape_cast %112 : vector<128xf32> to vector<128x1xf32>
    %114 = vector.broadcast %113 : vector<128x1xf32> to vector<128x256xf32>
    %115 = arith.cmpf oeq, %15, %114 : vector<128x256xf32>
    %cst_44 = arith.constant 0x7F800000 : f32
    %116 = vector.broadcast %cst_44 : f32 to vector<128x256xf32>
    %117 = arith.select %115, %116, %102 : vector<128x256xi1>, vector<128x256xf32>
    %118 = arith.extui %115 : vector<128x256xi1> to vector<128x256xi32>
    %119 = arith.sitofp %118 : vector<128x256xi32> to vector<128x256xf32>
    %c768 = arith.constant 768 : index
    %c0_45 = arith.constant 0 : index
    %120 = vector.load %arg12[%c768, %c0_45] : memref<1024x256xf32, #tpu.memory_space<vmem>>, vector<128x256xf32>
    tpu.vector_store %arg12[%c768, %c0_45], %119 {strides = array<i32>} : memref<1024x256xf32, #tpu.memory_space<vmem>>, vector<128x256xf32>,
    %cst_46 = arith.constant dense<0x7F800000> : vector<128xf32>
    %121 = vector.multi_reduction <minimumf>, %117, %cst_46 [1] : vector<128x256xf32> to vector<128xf32>
    %122 = vector.shape_cast %121 : vector<128xf32> to vector<128x1xf32>
    %123 = vector.broadcast %122 : vector<128x1xf32> to vector<128x256xf32>
    %124 = arith.cmpf ole, %117, %123 : vector<128x256xf32>
    %cst_47 = arith.constant 2.560000e+02 : f32
    %125 = vector.broadcast %cst_47 : f32 to vector<128x256xf32>
    %126 = arith.select %124, %15, %125 : vector<128x256xi1>, vector<128x256xf32>
    %cst_48 = arith.constant dense<0x7F800000> : vector<128xf32>
    %127 = vector.multi_reduction <minimumf>, %126, %cst_48 [1] : vector<128x256xf32> to vector<128xf32>
    %128 = vector.shape_cast %127 : vector<128xf32> to vector<128x1xf32>
    %129 = vector.broadcast %128 : vector<128x1xf32> to vector<128x256xf32>
    %130 = arith.cmpf oeq, %15, %129 : vector<128x256xf32>
    %131 = arith.extui %130 : vector<128x256xi1> to vector<128x256xi32>
    %132 = arith.sitofp %131 : vector<128x256xi32> to vector<128x256xf32>
    %c896 = arith.constant 896 : index
    %c0_49 = arith.constant 0 : index
    %133 = vector.load %arg12[%c896, %c0_49] : memref<1024x256xf32, #tpu.memory_space<vmem>>, vector<128x256xf32>
    tpu.vector_store %arg12[%c896, %c0_49], %132 {strides = array<i32>} : memref<1024x256xf32, #tpu.memory_space<vmem>>, vector<128x256xf32>,
    %c0_50 = arith.constant 0 : index
    %c0_51 = arith.constant 0 : index
    %134 = vector.load %arg4[%c0_50, %c0_51] : memref<16x3xf32, #tpu.memory_space<vmem>>, vector<16x3xf32>
    %cst_52 = arith.constant dense<0.000000e+00> : vector<16x256xf32>
    %135 = tpu.matmul %134, %1, %cst_52 {dimension_numbers = #tpu.dot_dimension_numbers<[1], [0], [0], [1], [0, 0, 1, 1], [], []>} : vector<16x3xf32>, vector<3x256xf32>, vector<16x256xf32> -> vector<16x256xf32>
    %c0_53 = arith.constant 0 : index
    %c0_54 = arith.constant 0 : index
    %136 = vector.load %arg5[%c0_53, %c0_54] : memref<16x4xf32, #tpu.memory_space<vmem>>, vector<16x4xf32>
    %cst_55 = arith.constant dense<0.000000e+00> : vector<16x256xf32>
    %137 = tpu.matmul %136, %3, %cst_55 {dimension_numbers = #tpu.dot_dimension_numbers<[1], [0], [0], [1], [0, 0, 1, 1], [], []>} : vector<16x4xf32>, vector<4x256xf32>, vector<16x256xf32> -> vector<16x256xf32>
    %138 = arith.addf %135, %137 : vector<16x256xf32>
    %c0_56 = arith.constant 0 : index
    %c0_57 = arith.constant 0 : index
    %139 = vector.load %arg4[%c0_56, %c0_57] : memref<16x3xf32, #tpu.memory_space<vmem>>, vector<16x3xf32>
    %cst_58 = arith.constant dense<0.000000e+00> : vector<16x128xf32>
    %140 = tpu.matmul %139, %5, %cst_58 {dimension_numbers = #tpu.dot_dimension_numbers<[1], [1], [0], [0], [0, 0, 1, 0], [], []>} : vector<16x3xf32>, vector<128x3xf32>, vector<16x128xf32> -> vector<16x128xf32>
    %cst_59 = arith.constant 0.000000e+00 : f32
    %141 = vector.broadcast %cst_59 : f32 to vector<16x128xf32>
    %142 = arith.subf %141, %140 : vector<16x128xf32>
    %c0_60 = arith.constant 0 : index
    %c0_61 = arith.constant 0 : index
    %143 = vector.load %arg12[%c0_60, %c0_61] : memref<1024x256xf32, #tpu.memory_space<vmem>>, vector<1024x256xf32>
    %cst_62 = arith.constant dense<0.000000e+00> : vector<16x1024xf32>
    %144 = tpu.matmul %138, %143, %cst_62 {dimension_numbers = #tpu.dot_dimension_numbers<[1], [1], [0], [0], [0, 0, 1, 0], [], []>} : vector<16x256xf32>, vector<1024x256xf32>, vector<16x1024xf32> -> vector<16x1024xf32>
    %145 = tpu.concatenate %142, %142, %142, %142, %142, %142, %142, %142 in 1 : vector<16x128xf32>, vector<16x128xf32>, vector<16x128xf32>, vector<16x128xf32>, vector<16x128xf32>, vector<16x128xf32>, vector<16x128xf32>, vector<16x128xf32> -> vector<16x1024xf32>
    %146 = arith.addf %144, %145 : vector<16x1024xf32>
    %cst_63 = arith.constant dense<0.000000e+00> : vector<16xf32>
    %147 = vector.multi_reduction <add>, %146, %cst_63 [1] : vector<16x1024xf32> to vector<16xf32>
    %148 = vector.shape_cast %147 : vector<16xf32> to vector<16x1xf32>
    %149 = arith.mulf %146, %146 : vector<16x1024xf32>
    %cst_64 = arith.constant dense<0.000000e+00> : vector<16xf32>
    %150 = vector.multi_reduction <add>, %149, %cst_64 [1] : vector<16x1024xf32> to vector<16xf32>
    %151 = vector.shape_cast %150 : vector<16xf32> to vector<16x1xf32>
    %c0_i32 = arith.constant 0 : i32
    %152 = arith.cmpi eq, %arg0, %c0_i32 : i32
    %153 = arith.extui %152 : i1 to i32
    %c0_i32_65 = arith.constant 0 : i32
    %154 = arith.cmpi ne, %153, %c0_i32_65 : i32
    scf.if %154 {
      %cst_76 = arith.constant 0.000000e+00 : f32
      %168 = vector.broadcast %cst_76 : f32 to vector<16x1xf32>
      %c0_77 = arith.constant 0 : index
      %c0_78 = arith.constant 0 : index
      %169 = vector.load %arg13[%c0_77, %c0_78] : memref<16x1xf32, #tpu.memory_space<vmem>>, vector<16x1xf32>
      tpu.vector_store %arg13[%c0_77, %c0_78], %168 {strides = array<i32>} : memref<16x1xf32, #tpu.memory_space<vmem>>, vector<16x1xf32>,
      %cst_79 = arith.constant 0.000000e+00 : f32
      %170 = vector.broadcast %cst_79 : f32 to vector<16x1xf32>
      %c0_80 = arith.constant 0 : index
      %c0_81 = arith.constant 0 : index
      %171 = vector.load %arg14[%c0_80, %c0_81] : memref<16x1xf32, #tpu.memory_space<vmem>>, vector<16x1xf32>
      tpu.vector_store %arg14[%c0_80, %c0_81], %170 {strides = array<i32>} : memref<16x1xf32, #tpu.memory_space<vmem>>, vector<16x1xf32>,
    } else {
    }
    %c0_66 = arith.constant 0 : index
    %c0_67 = arith.constant 0 : index
    %155 = vector.load %arg13[%c0_66, %c0_67] : memref<16x1xf32, #tpu.memory_space<vmem>>, vector<16x1xf32>
    %156 = arith.addf %155, %148 : vector<16x1xf32>
    %c0_68 = arith.constant 0 : index
    %c0_69 = arith.constant 0 : index
    %157 = vector.load %arg13[%c0_68, %c0_69] : memref<16x1xf32, #tpu.memory_space<vmem>>, vector<16x1xf32>
    tpu.vector_store %arg13[%c0_68, %c0_69], %156 {strides = array<i32>} : memref<16x1xf32, #tpu.memory_space<vmem>>, vector<16x1xf32>,
    %c0_70 = arith.constant 0 : index
    %c0_71 = arith.constant 0 : index
    %158 = vector.load %arg14[%c0_70, %c0_71] : memref<16x1xf32, #tpu.memory_space<vmem>>, vector<16x1xf32>
    %159 = arith.addf %158, %151 : vector<16x1xf32>
    %c0_72 = arith.constant 0 : index
    %c0_73 = arith.constant 0 : index
    %160 = vector.load %arg14[%c0_72, %c0_73] : memref<16x1xf32, #tpu.memory_space<vmem>>, vector<16x1xf32>
    tpu.vector_store %arg14[%c0_72, %c0_73], %159 {strides = array<i32>} : memref<16x1xf32, #tpu.memory_space<vmem>>, vector<16x1xf32>,
    %c1024_i32 = arith.constant 1024 : i32
    %161 = arith.muli %arg0, %c1024_i32 : i32
    %162 = tpu.assume_multiple %161, 128 : i32
    %c0_74 = arith.constant 0 : index
    %163 = arith.index_cast %162 : i32 to index
    %164 = vector.load %arg15[%c0_74, %163] : memref<16x2048xf32, #tpu.memory_space<vmem>>, vector<16x1024xf32>
    tpu.vector_store %arg15[%c0_74, %163], %146 {strides = array<i32>} : memref<16x2048xf32, #tpu.memory_space<vmem>>, vector<16x1024xf32>,
    %c1_i32 = arith.constant 1 : i32
    %165 = arith.cmpi eq, %arg0, %c1_i32 : i32
    %166 = arith.extui %165 : i1 to i32
    %c0_i32_75 = arith.constant 0 : i32
    %167 = arith.cmpi ne, %166, %c0_i32_75 : i32
    scf.if %167 {
      %c0_76 = arith.constant 0 : index
      %c0_77 = arith.constant 0 : index
      %168 = vector.load %arg13[%c0_76, %c0_77] : memref<16x1xf32, #tpu.memory_space<vmem>>, vector<16x1xf32>
      %c0_78 = arith.constant 0 : index
      %c0_79 = arith.constant 0 : index
      %169 = vector.load %arg14[%c0_78, %c0_79] : memref<16x1xf32, #tpu.memory_space<vmem>>, vector<16x1xf32>
      %c0_80 = arith.constant 0 : index
      %c0_81 = arith.constant 0 : index
      %170 = vector.load %arg6[%c0_80, %c0_81] : memref<16x1xf32, #tpu.memory_space<vmem>>, vector<16x1xf32>
      %c0_82 = arith.constant 0 : index
      %c0_83 = arith.constant 0 : index
      %171 = vector.load %arg7[%c0_82, %c0_83] : memref<16x1xf32, #tpu.memory_space<vmem>>, vector<16x1xf32>
      %cst_84 = arith.constant 4.8828125E-4 : f32
      %172 = vector.broadcast %cst_84 : f32 to vector<16x1xf32>
      %173 = arith.mulf %168, %172 : vector<16x1xf32>
      %cst_85 = arith.constant 4.8828125E-4 : f32
      %174 = vector.broadcast %cst_85 : f32 to vector<16x1xf32>
      %175 = arith.mulf %169, %174 : vector<16x1xf32>
      %176 = arith.mulf %173, %173 : vector<16x1xf32>
      %177 = arith.subf %175, %176 : vector<16x1xf32>
      %cst_86 = arith.constant 9.99999974E-6 : f32
      %178 = vector.broadcast %cst_86 : f32 to vector<16x1xf32>
      %179 = arith.addf %177, %178 : vector<16x1xf32>
      %180 = math.rsqrt %179 : vector<16x1xf32>
      %181 = arith.mulf %170, %180 : vector<16x1xf32>
      %182 = arith.mulf %173, %181 : vector<16x1xf32>
      %183 = arith.subf %171, %182 : vector<16x1xf32>
      %c0_87 = arith.constant 0 : index
      %c0_88 = arith.constant 0 : index
      %184 = vector.load %arg8[%c0_87, %c0_88] : memref<32x16xf32, #tpu.memory_space<vmem>>, vector<32x16xf32>
      %cst_89 = arith.constant 0.000000e+00 : f32
      %185 = vector.broadcast %cst_89 : f32 to vector<32x1xf32>
      %cst_90 = arith.constant 0.000000e+00 : f32
      %186 = vector.broadcast %cst_90 : f32 to vector<32x1xf32>
      %c0_i32_91 = arith.constant 0 : i32
      %c2_i32 = arith.constant 2 : i32
      %187 = arith.addi %c0_i32_91, %c2_i32 : i32
      %c1_i32_92 = arith.constant 1 : i32
      %188:2 = scf.for %arg17 = %c0_i32_91 to %187 step %c1_i32_92 iter_args(%arg18 = %185, %arg19 = %186) -> (vector<32x1xf32>, vector<32x1xf32>)  : i32 {
        %c1024_i32_115 = arith.constant 1024 : i32
        %215 = arith.muli %arg17, %c1024_i32_115 : i32
        %216 = tpu.assume_multiple %215, 128 : i32
        %c0_116 = arith.constant 0 : index
        %217 = arith.index_cast %216 : i32 to index
        %218 = vector.load %arg15[%c0_116, %217] : memref<16x2048xf32, #tpu.memory_space<vmem>>, vector<16x1024xf32>
        %219 = vector.broadcast %181 : vector<16x1xf32> to vector<16x1024xf32>
        %220 = arith.mulf %218, %219 : vector<16x1024xf32>
        %221 = vector.broadcast %183 : vector<16x1xf32> to vector<16x1024xf32>
        %222 = arith.addf %220, %221 : vector<16x1024xf32>
        %cst_117 = arith.constant 0.000000e+00 : f32
        %223 = vector.broadcast %cst_117 : f32 to vector<16x1024xf32>
        %224 = arith.maximumf %222, %223 : vector<16x1024xf32>
        %cst_118 = arith.constant dense<0.000000e+00> : vector<32x1024xf32>
        %225 = tpu.matmul %184, %224, %cst_118 {dimension_numbers = #tpu.dot_dimension_numbers<[1], [0], [0], [1], [0, 0, 1, 1], [], []>} : vector<32x16xf32>, vector<16x1024xf32>, vector<32x1024xf32> -> vector<32x1024xf32>
        %c0_119 = arith.constant 0 : index
        %226 = arith.index_cast %216 : i32 to index
        %227 = vector.load %arg16[%c0_119, %226] : memref<32x2048xf32, #tpu.memory_space<vmem>>, vector<32x1024xf32>
        tpu.vector_store %arg16[%c0_119, %226], %225 {strides = array<i32>} : memref<32x2048xf32, #tpu.memory_space<vmem>>, vector<32x1024xf32>,
        %cst_120 = arith.constant dense<0.000000e+00> : vector<32xf32>
        %228 = vector.multi_reduction <add>, %225, %cst_120 [1] : vector<32x1024xf32> to vector<32xf32>
        %229 = vector.shape_cast %228 : vector<32xf32> to vector<32x1xf32>
        %230 = arith.addf %arg18, %229 : vector<32x1xf32>
        %231 = arith.mulf %225, %225 : vector<32x1024xf32>
        %cst_121 = arith.constant dense<0.000000e+00> : vector<32xf32>
        %232 = vector.multi_reduction <add>, %231, %cst_121 [1] : vector<32x1024xf32> to vector<32xf32>
        %233 = vector.shape_cast %232 : vector<32xf32> to vector<32x1xf32>
        %234 = arith.addf %arg19, %233 : vector<32x1xf32>
        scf.yield %230, %234 : vector<32x1xf32>, vector<32x1xf32>
      }
      %c2_i32_93 = arith.constant 2 : i32
      %c0_94 = arith.constant 0 : index
      %c0_95 = arith.constant 0 : index
      %189 = vector.load %arg9[%c0_94, %c0_95] : memref<32x1xf32, #tpu.memory_space<vmem>>, vector<32x1xf32>
      %c0_96 = arith.constant 0 : index
      %c0_97 = arith.constant 0 : index
      %190 = vector.load %arg10[%c0_96, %c0_97] : memref<32x1xf32, #tpu.memory_space<vmem>>, vector<32x1xf32>
      %cst_98 = arith.constant 4.8828125E-4 : f32
      %191 = vector.broadcast %cst_98 : f32 to vector<32x1xf32>
      %192 = arith.mulf %188#0, %191 : vector<32x1xf32>
      %cst_99 = arith.constant 4.8828125E-4 : f32
      %193 = vector.broadcast %cst_99 : f32 to vector<32x1xf32>
      %194 = arith.mulf %188#1, %193 : vector<32x1xf32>
      %195 = arith.mulf %192, %192 : vector<32x1xf32>
      %196 = arith.subf %194, %195 : vector<32x1xf32>
      %cst_100 = arith.constant 9.99999974E-6 : f32
      %197 = vector.broadcast %cst_100 : f32 to vector<32x1xf32>
      %198 = arith.addf %196, %197 : vector<32x1xf32>
      %199 = math.rsqrt %198 : vector<32x1xf32>
      %200 = arith.mulf %189, %199 : vector<32x1xf32>
      %201 = arith.mulf %192, %200 : vector<32x1xf32>
      %202 = arith.subf %190, %201 : vector<32x1xf32>
      %cst_101 = arith.constant 0.000000e+00 : f32
      %203 = vector.broadcast %cst_101 : f32 to vector<32x128xf32>
      %c0_i32_102 = arith.constant 0 : i32
      %c8_i32 = arith.constant 8 : i32
      %204 = arith.addi %c0_i32_102, %c8_i32 : i32
      %c1_i32_103 = arith.constant 1 : i32
      %205 = scf.for %arg17 = %c0_i32_102 to %204 step %c1_i32_103 iter_args(%arg18 = %203) -> (vector<32x128xf32>)  : i32 {
        %c0_i32_115 = arith.constant 0 : i32
        %215 = arith.addi %c0_i32_115, %arg17 : i32
        %c128_i32 = arith.constant 128 : i32
        %216 = arith.muli %215, %c128_i32 : i32
        %217 = tpu.assume_multiple %216, 128 : i32
        %c0_116 = arith.constant 0 : index
        %218 = arith.index_cast %217 : i32 to index
        %219 = vector.load %arg16[%c0_116, %218] : memref<32x2048xf32, #tpu.memory_space<vmem>>, vector<32x128xf32>
        %220 = vector.broadcast %200 : vector<32x1xf32> to vector<32x128xf32>
        %221 = arith.mulf %219, %220 : vector<32x128xf32>
        %222 = vector.broadcast %202 : vector<32x1xf32> to vector<32x128xf32>
        %223 = arith.addf %221, %222 : vector<32x128xf32>
        %cst_117 = arith.constant 0.000000e+00 : f32
        %224 = vector.broadcast %cst_117 : f32 to vector<32x128xf32>
        %225 = arith.maximumf %223, %224 : vector<32x128xf32>
        %226 = arith.maximumf %arg18, %225 : vector<32x128xf32>
        scf.yield %226 : vector<32x128xf32>
      }
      %c8_i32_104 = arith.constant 8 : i32
      %c0_105 = arith.constant 0 : index
      %c0_106 = arith.constant 0 : index
      %c0_107 = arith.constant 0 : index
      %206 = vector.load %arg11[%c0_105, %c0_106, %c0_107] : memref<2x32x128xf32, #tpu.memory_space<vmem>>, vector<1x32x128xf32>
      %207 = vector.shape_cast %206 : vector<1x32x128xf32> to vector<32x128xf32>
      %208 = vector.shape_cast %205 : vector<32x128xf32> to vector<1x32x128xf32>
      tpu.vector_store %arg11[%c0_105, %c0_106, %c0_107], %208 {strides = array<i32>} : memref<2x32x128xf32, #tpu.memory_space<vmem>>, vector<1x32x128xf32>,
      %cst_108 = arith.constant 0.000000e+00 : f32
      %209 = vector.broadcast %cst_108 : f32 to vector<32x128xf32>
      %c0_i32_109 = arith.constant 0 : i32
      %c8_i32_110 = arith.constant 8 : i32
      %210 = arith.addi %c0_i32_109, %c8_i32_110 : i32
      %c1_i32_111 = arith.constant 1 : i32
      %211 = scf.for %arg17 = %c0_i32_109 to %210 step %c1_i32_111 iter_args(%arg18 = %209) -> (vector<32x128xf32>)  : i32 {
        %c8_i32_115 = arith.constant 8 : i32
        %215 = arith.addi %c8_i32_115, %arg17 : i32
        %c128_i32 = arith.constant 128 : i32
        %216 = arith.muli %215, %c128_i32 : i32
        %217 = tpu.assume_multiple %216, 128 : i32
        %c0_116 = arith.constant 0 : index
        %218 = arith.index_cast %217 : i32 to index
        %219 = vector.load %arg16[%c0_116, %218] : memref<32x2048xf32, #tpu.memory_space<vmem>>, vector<32x128xf32>
        %220 = vector.broadcast %200 : vector<32x1xf32> to vector<32x128xf32>
        %221 = arith.mulf %219, %220 : vector<32x128xf32>
        %222 = vector.broadcast %202 : vector<32x1xf32> to vector<32x128xf32>
        %223 = arith.addf %221, %222 : vector<32x128xf32>
        %cst_117 = arith.constant 0.000000e+00 : f32
        %224 = vector.broadcast %cst_117 : f32 to vector<32x128xf32>
        %225 = arith.maximumf %223, %224 : vector<32x128xf32>
        %226 = arith.maximumf %arg18, %225 : vector<32x128xf32>
        scf.yield %226 : vector<32x128xf32>
      }
      %c8_i32_112 = arith.constant 8 : i32
      %c1 = arith.constant 1 : index
      %c0_113 = arith.constant 0 : index
      %c0_114 = arith.constant 0 : index
      %212 = vector.load %arg11[%c1, %c0_113, %c0_114] : memref<2x32x128xf32, #tpu.memory_space<vmem>>, vector<1x32x128xf32>
      %213 = vector.shape_cast %212 : vector<1x32x128xf32> to vector<32x128xf32>
      %214 = vector.shape_cast %211 : vector<32x128xf32> to vector<1x32x128xf32>
      tpu.vector_store %arg11[%c1, %c0_113, %c0_114], %214 {strides = array<i32>} : memref<2x32x128xf32, #tpu.memory_space<vmem>>, vector<1x32x128xf32>,
    } else {
    }
    return
  }
  func.func @transform_0(%arg0: i32) -> (i32, i32, i32) {
    %c0_i32 = arith.constant 0 : i32
    %c0_i32_0 = arith.constant 0 : i32
    %c0_i32_1 = arith.constant 0 : i32
    return %arg0, %c0_i32, %c0_i32_0 : i32, i32, i32
  }
  func.func @transform_1(%arg0: i32) -> (i32, i32, i32) {
    %c0_i32 = arith.constant 0 : i32
    %c0_i32_0 = arith.constant 0 : i32
    %c0_i32_1 = arith.constant 0 : i32
    return %arg0, %c0_i32, %c0_i32_0 : i32, i32, i32
  }
  func.func @transform_2(%arg0: i32) -> (i32, i32, i32) {
    %c0_i32 = arith.constant 0 : i32
    %c0_i32_0 = arith.constant 0 : i32
    %c0_i32_1 = arith.constant 0 : i32
    return %arg0, %c0_i32, %c0_i32_0 : i32, i32, i32
  }
  func.func @transform_3(%arg0: i32) -> (i32, i32) {
    %c0_i32 = arith.constant 0 : i32
    %c0_i32_0 = arith.constant 0 : i32
    %c0_i32_1 = arith.constant 0 : i32
    return %c0_i32, %c0_i32_0 : i32, i32
  }
  func.func @transform_4(%arg0: i32) -> (i32, i32) {
    %c0_i32 = arith.constant 0 : i32
    %c0_i32_0 = arith.constant 0 : i32
    %c0_i32_1 = arith.constant 0 : i32
    return %c0_i32, %c0_i32_0 : i32, i32
  }
  func.func @transform_5(%arg0: i32) -> (i32, i32) {
    %c0_i32 = arith.constant 0 : i32
    %c0_i32_0 = arith.constant 0 : i32
    %c0_i32_1 = arith.constant 0 : i32
    return %c0_i32, %c0_i32_0 : i32, i32
  }
  func.func @transform_6(%arg0: i32) -> (i32, i32) {
    %c0_i32 = arith.constant 0 : i32
    %c0_i32_0 = arith.constant 0 : i32
    %c0_i32_1 = arith.constant 0 : i32
    return %c0_i32, %c0_i32_0 : i32, i32
  }
  func.func @transform_7(%arg0: i32) -> (i32, i32) {
    %c0_i32 = arith.constant 0 : i32
    %c0_i32_0 = arith.constant 0 : i32
    %c0_i32_1 = arith.constant 0 : i32
    return %c0_i32, %c0_i32_0 : i32, i32
  }
  func.func @transform_8(%arg0: i32) -> (i32, i32) {
    %c0_i32 = arith.constant 0 : i32
    %c0_i32_0 = arith.constant 0 : i32
    %c0_i32_1 = arith.constant 0 : i32
    return %c0_i32, %c0_i32_0 : i32, i32
  }
  func.func @transform_9(%arg0: i32) -> (i32, i32) {
    %c0_i32 = arith.constant 0 : i32
    %c0_i32_0 = arith.constant 0 : i32
    %c0_i32_1 = arith.constant 0 : i32
    return %c0_i32, %c0_i32_0 : i32, i32
  }
  func.func @transform_10(%arg0: i32) -> (i32, i32, i32) {
    %c0_i32 = arith.constant 0 : i32
    %c0_i32_0 = arith.constant 0 : i32
    %c0_i32_1 = arith.constant 0 : i32
    %c0_i32_2 = arith.constant 0 : i32
    return %c0_i32, %c0_i32_0, %c0_i32_1 : i32, i32, i32
  }
}

</mosaic_0001>

<bundles_post_ra>
// kernel: tpu_custom_call.1
= control target key start
LH: loop header
LB: loop body
LE: loop exit
PB: predicated region body
PF: predicated region fallthrough
CT: control target
= control target key end

     0   :  { %15 = vsyncpa [#allocation8], 0  ;;  %s6255_s13 = smov 0   ;;  %s9884_s0 = inlined_call_operand.vmem [shape: f32[2,3,256], index: 0, kind: input, shape index: {}]   ;;  %s9885_s1 = inlined_call_operand.vmem [shape: f32[2,128,3], index: 1, kind: input, shape index: {}]   ;;  %s9886_s2 = inlined_call_operand.vmem [shape: f32[2,4,256], index: 2, kind: input, shape index: {}]   ;;  %s9887_s3 = inlined_call_operand.vmem [shape: f32[16,3], index: 3, kind: input, shape index: {}]   ;;  %s9888_s4 = inlined_call_operand.vmem [shape: f32[16,4], index: 4, kind: input, shape index: {}]   ;;  %s9889_s5 = inlined_call_operand.vmem [shape: f32[16,1], index: 5, kind: input, shape index: {}]   ;;  %s9890_s6 = inlined_call_operand.vmem [shape: f32[16,1], index: 6, kind: input, shape index: {}]   ;;  %s9891_s7 = inlined_call_operand.vmem [shape: f32[32,16], index: 7, kind: input, shape index: {}]   ;;  %s9892_s8 = inlined_call_operand.vmem [shape: f32[32,1], index: 8, kind: input, shape index: {}]   ;;  %s9893_s9 = inlined_call_operand.vmem [shape: f32[32,1], index: 9, kind: input, shape index: {}]   ;;  %s9894_s10 = inlined_call_operand.hbm [shape: f32[2,32,128], index: 10, kind: output, shape index: {}]  }
   0x1 LB: > { %s6261_s14 = sadd.s32 4294967295, %s6112_s13   ;;  %p5154_p0 = scmp.ge.s32.totalorder %s6112_s13, 1  ;;  %s6112_s13 = sphi %s6255_s13, %s21_s13  }
   0x2   : > { %p328_p1 = scmp.lt.s32.totalorder %s6112_s13, 3 }
   0x4   : > { %p329_p2 = pnand %p5154_p0, %p328_p1 }
   0x5   : > { %p371_p3 = scmp.lt.s32.totalorder (!%p329_p2), %s6261_s14, 1  ;;  %p5461_p4 = scmp.ne.s32.totalorder (!%p329_p2), %s6261_s14, 0 }
   0x6   : > { %332 = sbr.rel (%p329_p2) target bundleno = 3851 (0xf0b), region = 60 }
   0xb   : > { %v6190_v0 = vmov 0.0   ;;  %s6269_s15 = scalar_select %p371_p3, %s6261_s14, 1  ;;  %vm424_vm0 = vcmask 1042432   ;;  %vm9895_vm1 = vcmask 23552   ;;  %vm3201_vm2 = vcmask 1043456  }
   0xc   : > { %558 = vmatprep.mubr.f32.mxu0 %v6190_v0  ;;  %3270 = vmatprep.mubr.f32.mxu1 %v6190_v0  ;;  %vm3194_vm3 = vcmask 31744  }
   0xd   : > { %s5492_s16 = sshll.u32 %s6269_s15, 3  ;;  %s5493_s17 = sshll.u32 %s6269_s15, 7 }
   0xe   : > { %s375_s20 = scalar_lea.vmem %s9884_s0, %s5492_s16  ;;  %s6281_s23 = scalar_lea.vmem %s9885_s1, %s5493_s17 }
   0xf   : > { %v6283_v1 = vld [vmem:[%s375_s20] sm:$0x77]  ;;  %v6294_v5 = vld [vmem:[%s6281_s23 + $0x8] sm:$0xff]  ;;  %v6303_v7 = vld [vmem:[%s6281_s23 + $0x78] sm:$0xff]  ;;  %s385_s26 = scalar_lea.vmem %s9886_s2, %s5492_s16 }
  0x10   : > { %v6286_v2 = vld [vmem:[%s6281_s23] sm:$0xff]  ;;  %v6290_v3 = vcombine.high %v6283_v1, %v6283_v1  ;;  %v405_v6 = vmul.f32 -2.0, %v6294_v5  ;;  %v6307_v8 = vld [vmem:[%s6281_s23 + $0x10] sm:$0xff]  ;;  %v6322_v11 = vld [vmem:[%s6281_s23 + $0x18] sm:$0xff]  ;;  %v419_v34 = vmul.f32 -2.0, %v6303_v7  ;;  %v420_v46 = vmul.f32 %v6283_v1, %v6283_v1 }
  0x11   : > { %v404_v4 = vmul.f32 -2.0, %v6286_v2  ;;  %v6312_v9 = vld [vmem:[%s6281_s23 + $0x70] sm:$0xff]  ;;  %v406_v10 = vmul.f32 -2.0, %v6307_v8  ;;  %v6325_v12 = vld [vmem:[%s6281_s23 + $0x68] sm:$0xff]  ;;  %v407_v13 = vmul.f32 -2.0, %v6322_v11  ;;  %v392_v14 = vld [vmem:[%s6281_s23 + $0x20] sm:$0xff] }
  0x12   : > { %5161 = vmatprep.subr.msk.mxu0 %vm424_vm0, %v6290_v3  ;;  %v400_v15 = vld [vmem:[%s6281_s23 + $0x60] sm:$0xff]  ;;  %v408_v16 = vmul.f32 -2.0, %v392_v14  ;;  %v393_v17 = vld [vmem:[%s6281_s23 + $0x28] sm:$0xff]  ;;  %v399_v18 = vld [vmem:[%s6281_s23 + $0x58] sm:$0xff]  ;;  %v417_v32 = vmul.f32 -2.0, %v6325_v12  ;;  %v418_v33 = vmul.f32 -2.0, %v6312_v9  ;;  %v422_v49 = vcombine.high %v420_v46, %v420_v46 }
  0x13   : > { %5162 = vmatpush1.msk.msra.mxu0 %vm424_vm0, %v6283_v1  ;;  %v409_v19 = vmul.f32 -2.0, %v393_v17  ;;  %v394_v20 = vld [vmem:[%s6281_s23 + $0x30] sm:$0xff]  ;;  %v395_v23 = vld [vmem:[%s6281_s23 + $0x38] sm:$0xff]  ;;  %v397_v24 = vld [vmem:[%s6281_s23 + $0x48] sm:$0xff]  ;;  %v415_v30 = vmul.f32 -2.0, %v399_v18  ;;  %v416_v31 = vmul.f32 -2.0, %v400_v15 }
  0x14   : > { %5163 = vmatmul.mubr.msk.f32.vlgmr.msra.gmra.mxu0 %vm9895_vm1, %v404_v4  ;;  %5771 = vmatprep.subr.msk.mxu0 %vm9895_vm1, %v6303_v7  ;;  %v398_v21 = vld [vmem:[%s6281_s23 + $0x50] sm:$0xff]  ;;  %v410_v22 = vmul.f32 -2.0, %v394_v20  ;;  %v411_v25 = vmul.f32 -2.0, %v395_v23  ;;  %v396_v26 = vld [vmem:[%s6281_s23 + $0x40] sm:$0xff]  ;;  %v413_v28 = vmul.f32 -2.0, %v397_v24  ;;  %v425_v52 = vsel %vm424_vm0, %v420_v46, 0.0 }
  0x15   : > { %564 = vmatprep.mubr.f32.mxu0 %v6190_v0  ;;  %5772 = vmatpush3.xpose.msk.msra.mxu0 %vm9895_vm1, %v6303_v7  ;;  %v412_v27 = vmul.f32 -2.0, %v396_v26  ;;  %v414_v29 = vmul.f32 -2.0, %v398_v21  ;;  %v432_v53 = vsel %vm424_vm0, %v422_v49, 0.0  ;;  %v426_v56 = vrot.slane %v425_v52, 4 }
  0x16   : > { %5773 = vmatprep.subr.msk.mxu0 %vm9895_vm1, %v6312_v9  ;;  %v433_v57 = vrot.slane %v432_v53, 4 }
  0x17   : > { %v427_v60 = vadd.f32 %v426_v56, %v425_v52 }
  0x18   : > { %5164 = vmatmul.mubr.msk.f32.gmra.mxu0 %vm9895_vm1, %v405_v6  ;;  %v434_v61 = vadd.f32 %v433_v57, %v432_v53 }
  0x19   : > { %570 = vmatprep.mubr.f32.mxu0 %v6190_v0  ;;  %5774 = vmatpush3.xpose.msk.msra.mxu0 %vm9895_vm1, %v6312_v9 }
  0x1a   : > { %5775 = vmatprep.subr.msk.mxu0 %vm9895_vm1, %v6325_v12  ;;  %v435_v4 = vrot.slane %v434_v61, 2 }
  0x1c   : > { %5165 = vmatmul.mubr.msk.f32.gmra.mxu0 %vm9895_vm1, %v406_v10 }
  0x1d   : > { %576 = vmatprep.mubr.f32.mxu0 %v6190_v0  ;;  %5776 = vmatpush3.xpose.msk.msra.mxu0 %vm9895_vm1, %v6325_v12 }
  0x1e   : > { %5777 = vmatprep.subr.msk.mxu0 %vm9895_vm1, %v400_v15 }
  0x20   : > { %5166 = vmatmul.mubr.msk.f32.gmra.mxu0 %vm9895_vm1, %v407_v13 }
  0x21   : > { %582 = vmatprep.mubr.f32.mxu0 %v6190_v0  ;;  %5778 = vmatpush3.xpose.msk.msra.mxu0 %vm9895_vm1, %v400_v15 }
  0x22   : > { %5779 = vmatprep.subr.msk.mxu0 %vm9895_vm1, %v399_v18 }
  0x24   : > { %5167 = vmatmul.mubr.msk.f32.gmra.mxu0 %vm9895_vm1, %v408_v16 }
  0x25   : > { %588 = vmatprep.mubr.f32.mxu0 %v6190_v0  ;;  %5780 = vmatpush3.xpose.msk.msra.mxu0 %vm9895_vm1, %v399_v18 }
  0x26   : > { %5781 = vmatprep.subr.msk.mxu0 %vm9895_vm1, %v398_v21 }
  0x28   : > { %5168 = vmatmul.mubr.msk.f32.gmra.mxu0 %vm9895_vm1, %v409_v19 }
  0x29   : > { %594 = vmatprep.mubr.f32.mxu0 %v6190_v0  ;;  %5782 = vmatpush3.xpose.msk.msra.mxu0 %vm9895_vm1, %v398_v21 }
  0x2a   : > { %5783 = vmatprep.subr.msk.mxu0 %vm9895_vm1, %v397_v24 }
  0x2c   : > { %5169 = vmatmul.mubr.msk.f32.gmra.mxu0 %vm9895_vm1, %v410_v22 }
  0x2d   : > { %600 = vmatprep.mubr.f32.mxu0 %v6190_v0  ;;  %5784 = vmatpush3.xpose.msk.msra.mxu0 %vm9895_vm1, %v397_v24 }
  0x2e   : > { %5785 = vmatprep.subr.msk.mxu0 %vm9895_vm1, %v396_v26 }
  0x30   : > { %5170 = vmatmul.mubr.msk.f32.gmra.mxu0 %vm9895_vm1, %v411_v25 }
  0x31   : > { %606 = vmatprep.mubr.f32.mxu0 %v6190_v0  ;;  %5786 = vmatpush3.xpose.msk.msra.mxu0 %vm9895_vm1, %v396_v26 }
  0x32   : > { %5787 = vmatprep.subr.msk.mxu0 %vm9895_vm1, %v395_v23 }
  0x34   : > { %5171 = vmatmul.mubr.msk.f32.gmra.mxu0 %vm9895_vm1, %v412_v27 }
  0x35   : > { %612 = vmatprep.mubr.f32.mxu0 %v6190_v0  ;;  %5788 = vmatpush3.xpose.msk.msra.mxu0 %vm9895_vm1, %v395_v23 }
  0x36   : > { %5789 = vmatprep.subr.msk.mxu0 %vm9895_vm1, %v394_v20 }
  0x38   : > { %5172 = vmatmul.mubr.msk.f32.gmra.mxu0 %vm9895_vm1, %v413_v28 }
  0x39   : > { %618 = vmatprep.mubr.f32.mxu0 %v6190_v0  ;;  %5790 = vmatpush3.xpose.msk.msra.mxu0 %vm9895_vm1, %v394_v20 }
  0x3a   : > { %5791 = vmatprep.subr.msk.mxu0 %vm9895_vm1, %v393_v17 }
  0x3c   : > { %5173 = vmatmul.mubr.msk.f32.gmra.mxu0 %vm9895_vm1, %v414_v29 }
  0x3d   : > { %624 = vmatprep.mubr.f32.mxu0 %v6190_v0  ;;  %5792 = vmatpush3.xpose.msk.msra.mxu0 %vm9895_vm1, %v393_v17 }
  0x3e   : > { %5793 = vmatprep.subr.msk.mxu0 %vm9895_vm1, %v392_v14 }
  0x40   : > { %5174 = vmatmul.mubr.msk.f32.gmra.mxu0 %vm9895_vm1, %v415_v30 }
  0x41   : > { %630 = vmatprep.mubr.f32.mxu0 %v6190_v0  ;;  %5794 = vmatpush3.xpose.msk.msra.mxu0 %vm9895_vm1, %v392_v14 }
  0x42   : > { %5795 = vmatprep.subr.msk.mxu0 %vm9895_vm1, %v6322_v11 }
  0x44   : > { %5175 = vmatmul.mubr.msk.f32.gmra.mxu0 %vm9895_vm1, %v416_v31 }
  0x45   : > { %636 = vmatprep.mubr.f32.mxu0 %v6190_v0  ;;  %5796 = vmatpush3.xpose.msk.msra.mxu0 %vm9895_vm1, %v6322_v11 }
  0x46   : > { %5797 = vmatprep.subr.msk.mxu0 %vm9895_vm1, %v6307_v8 }
  0x48   : > { %5176 = vmatmul.mubr.msk.f32.gmra.mxu0 %vm9895_vm1, %v417_v32 }
  0x49   : > { %642 = vmatprep.mubr.f32.mxu0 %v6190_v0  ;;  %5798 = vmatpush3.xpose.msk.msra.mxu0 %vm9895_vm1, %v6307_v8  ;;  %v436_v8 = vadd.f32 %v435_v4, %v434_v61 }
  0x4a   : > { %5799 = vmatprep.subr.msk.mxu0 %vm9895_vm1, %v6294_v5 }
  0x4b   : > { %v437_v12 = vrot.slane %v436_v8, 1 }
  0x4c   : > { %5177 = vmatmul.mubr.msk.f32.gmra.mxu0 %vm9895_vm1, %v418_v33 }
  0x4d   : > { %648 = vmatprep.mubr.f32.mxu0 %v6190_v0  ;;  %5800 = vmatpush3.xpose.msk.msra.mxu0 %vm9895_vm1, %v6294_v5  ;;  %v6441_v16 = vadd.f32 %v437_v12, %v436_v8  ;;  %v3190_v12 = vld [vmem:[%s9888_s4] sm:$0xff] }
  0x4e   : > { %5801 = vmatprep.subr.msk.mxu0 %vm9895_vm1, %v6286_v2 }
  0x50   : > { %5178 = vmatmul.mubr.msk.f32.gmra.mxu0 %vm9895_vm1, %v419_v34 }
  0x51   : > { %5802 = vmatpush3.xpose.msk.msra.mxu0 %vm9895_vm1, %v6286_v2  ;;  %v428_v2 = vrot.slane %v427_v60, 2 }
  0x53   : > { %v429_v7 = vadd.f32 %v428_v2, %v427_v60 }
  0x55   : > { %v430_v11 = vrot.slane %v429_v7, 1 }
  0x57   : > { %v6439_v15 = vadd.f32 %v430_v11, %v429_v7 }
  0xd4   : > { %v6407_v35 = vpop.f32.mrf.mxu0 }
  0xd6   : > { %v6409_v36 = vpop.f32.mrf.mxu0 }
  0xd8   : > { %v6411_v37 = vpop.f32.mrf.mxu0 }
  0xda   : > { %v6413_v38 = vpop.f32.mrf.mxu0 }
  0xdc   : > { %v6415_v39 = vpop.f32.mrf.mxu0 }
  0xde   : > { %v6417_v40 = vpop.f32.mrf.mxu0 }
  0xe0   : > { %v6419_v41 = vpop.f32.mrf.mxu0 }
  0xe2   : > { %v6421_v42 = vpop.f32.mrf.mxu0 }
  0xe4   : > { %v6423_v43 = vpop.f32.mrf.mxu0 }
  0xe6   : > { %v6425_v44 = vpop.f32.mrf.mxu0 }
  0xe8   : > { %v6427_v45 = vpop.f32.mrf.mxu0 }
  0xe9   : > { %v6559_v8 = vadd.f32 %v6427_v45, %v6439_v15  ;;  %v6575_v45 = vadd.f32 %v6413_v38, %v6441_v16 }
  0xea   : > { %v6431_v47 = vpop.f32.mrf.mxu0 }
  0xec   : > { %v596_v48 = vpop.f32.mrf.mxu0 }
  0xee   : > { %v598_v50 = vpop.f32.mrf.mxu0 }
  0xef   : > { %v6488_v53 = vadd.f32 %v598_v50, %v6441_v16  ;;  %v6505_v50 = vadd.f32 %v6425_v44, %v6441_v16  ;;  %v6523_v44 = vadd.f32 %v6417_v40, %v6441_v16  ;;  %v6543_v40 = vadd.f32 %v6409_v36, %v6441_v16 }
  0xf0   : > { %v6433_v51 = vpop.f32.mrf.mxu0  ;;  %v6563_v36 = vadd.f32 %v6421_v42, %v6441_v16 }
  0xf2   : > { %v6437_v54 = vpop.f32.mrf.mxu0 }
  0xf4   : > { %v608_v55 = vpop.f32.mrf.mxu0 }
  0xf5   : > { %v6482_v49 = vadd.f32 %v608_v55, %v6439_v15  ;;  %v6498_v55 = vadd.f32 %v596_v48, %v6439_v15  ;;  %v6516_v48 = vadd.f32 %v6423_v43, %v6439_v15 }
  0xf6   : > { %v610_v58 = vpop.f32.mrf.mxu0 }
  0xf7   : > { %v6472_v32 = vadd.f32 %v610_v58, %v6441_v16  ;;  %v678_v2 = vmin.f32 %v6498_v55, %v6488_v53  ;;  %v672_v43 = vmin.f32 %v6516_v48, %v6505_v50 }
  0xf8   : > { %v614_v59 = vpop.f32.mrf.mxu0 }
  0xf9   : > { %v684_v58 = vmin.f32 %v6482_v49, %v6472_v32  ;;  %v6519_v4 = vadd.f32 %v614_v59, %v6439_v15  ;;  %v6535_v59 = vadd.f32 %v6415_v39, %v6439_v15 }
  0xfa   : > { %v616_v62 = vpop.f32.mrf.mxu0 }
  0xfb   : > { %v6508_v61 = vadd.f32 %v616_v62, %v6441_v16  ;;  %v6527_v62 = vadd.f32 %v6437_v54, %v6441_v16  ;;  %v6547_v54 = vadd.f32 %v6431_v47, %v6441_v16  ;;  %v666_v39 = vmin.f32 %v6535_v59, %v6523_v44 }
  0xfc   : > { %v620_v63 = vpop.f32.mrf.mxu0 }
  0xfd   : > { %v6463_v29 = vadd.f32 %v620_v63, %v6439_v15  ;;  %v675_v47 = vmin.f32 %v6559_v8, %v6547_v54 }
  0xfe   : > { %v622_v5 = vpop.f32.mrf.mxu0 }
  0xff   : > { %v6458_v26 = vadd.f32 %v622_v5, %v6441_v16  ;;  %v687_v5 = vmin.f32 %v6519_v4, %v6508_v61 }
 0x100   : > { %v626_v6 = vpop.f32.mrf.mxu0 }
 0x101   : > { %v690_v46 = vmin.f32 %v6463_v29, %v6458_v26  ;;  %v6501_v60 = vadd.f32 %v626_v6, %v6439_v15  ;;  %v6539_v6 = vadd.f32 %v6433_v51, %v6439_v15  ;;  %v6555_v51 = vadd.f32 %v6407_v35, %v6439_v15 }
 0x102   : > { %v628_v9 = vpop.f32.mrf.mxu0  ;;  %v6571_v35 = vadd.f32 %v6419_v41, %v6439_v15  ;;  %v387_v41 = vld [vmem:[%s385_s26] sm:$0xff] }
 0x103   : > { %v6491_v56 = vadd.f32 %v628_v9, %v6441_v16  ;;  %v681_v7 = vmin.f32 %v6539_v6, %v6527_v62  ;;  %v660_v9 = vmin.f32 %v6555_v51, %v6543_v40  ;;  %v3193_v38 = vcombine.high %v387_v41, %v387_v41 }
 0x104   : > { %v632_v10 = vpop.f32.mrf.mxu0  ;;  %v669_v42 = vmin.f32 %v6571_v35, %v6563_v36 }
 0x105   : > { %v6455_v24 = vadd.f32 %v632_v10, %v6439_v15  ;;  %v693_v63 = vmin.f32 %v6501_v60, %v6491_v56  ;;  %v6581_v10 = vadd.f32 %v6411_v37, %v6439_v15  ;;  %5435 = vmatprep.subr.msk.mxu1 %vm3201_vm2, %v3193_v38  ;;  %v3191_v37 = vld [vmem:[%s9888_s4 + $0x8] sm:$0xff] }
 0x106   : > { %v634_v13 = vpop.f32.mrf.mxu0  ;;  %5436 = vmatpush1.msk.msra.mxu1 %vm3201_vm2, %v387_v41 }
 0x107   : > { %v6450_v21 = vadd.f32 %v634_v13, %v6441_v16  ;;  %v663_v11 = vmin.f32 %v6581_v10, %v6575_v45  ;;  %5437 = vmatmul.mubr.msk.f32.vlgmr.msra.gmra.mxu1 %vm3194_vm3, %v3190_v12  ;;  %5439 = vmatprep.subr.msk.mxu1 %vm424_vm0, %v6290_v3  ;;  %v655_v13 = vlaneseq }
 0x108   : > { %v638_v14 = vpop.f32.mrf.mxu0  ;;  %3276 = vmatprep.mubr.f32.mxu1 %v6190_v0  ;;  %5440 = vmatpush1.msk.msra.mxu1 %vm424_vm0, %v6283_v1 }
 0x109   : > { %v6444_v18 = vadd.f32 %v638_v14, %v6439_v15  ;;  %v696_v27 = vmin.f32 %v6455_v24, %v6450_v21 }
 0x10a   : > { %v640_v17 = vpop.f32.mrf.mxu0 }
 0x10b   : > { %v6447_v19 = vadd.f32 %v640_v17, %v6441_v16  ;;  %5438 = vmatmul.mubr.msk.f32.gmra.mxu1 %vm3194_vm3, %v3191_v37 }
 0x10c   : > { %v644_v20 = vpop.f32.mrf.mxu0  ;;  %3353 = vmatprep.mubr.f32.mxu1 %v6190_v0 }
 0x10d   : > { %v699_v22 = vmin.f32 %v6444_v18, %v6447_v19  ;;  %v6485_v52 = vadd.f32 %v644_v20, %v6439_v15 }
 0x10e   : > { %v646_v23 = vpop.f32.mrf.mxu0 }
 0x10f   : > { %700 = vmin.xlane.f32.xlu1 %v699_v22  ;;  %v6475_v33 = vadd.f32 %v646_v23, %v6441_v16 }
 0x110   : > { %v650_v25 = vpop.f32.mrf.mxu0 }
 0x111   : > { %v6466_v30 = vadd.f32 %v650_v25, %v6439_v15  ;;  %v702_v57 = vmin.f32 %v6485_v52, %v6475_v33  ;;  %v656_v15 = vand.u32 127, %v655_v13 }
 0x112   : > { %v652_v28 = vpop.f32.mrf.mxu0 }
 0x113   : > { %v6469_v31 = vadd.f32 %v652_v28, %v6441_v16  ;;  %697 = vmin.xlane.f32.xlu1 %v696_v27  ;;  %v657_v17 = vadd.s32 128, %v656_v15  ;;  %v6602_v3 = vcvt.s32.f32 %v656_v15 }
 0x115   : > { %v705_v34 = vmin.f32 %v6466_v30, %v6469_v31  ;;  %v6604_v23 = vcvt.s32.f32 %v657_v17 }
 0x117   : > { %706 = vmin.xlane.f32.xlu0 %v705_v34  ;;  %691 = vmin.xlane.f32.xlu1 %v690_v46 }
 0x11b   : > { %703 = vmin.xlane.f32.xlu0 %v702_v57  ;;  %685 = vmin.xlane.f32.xlu1 %v684_v58 }
 0x11f   : > { %694 = vmin.xlane.f32.xlu0 %v693_v63  ;;  %679 = vmin.xlane.f32.xlu1 %v678_v2 }
 0x123   : > { %688 = vmin.xlane.f32.xlu0 %v687_v5  ;;  %673 = vmin.xlane.f32.xlu1 %v672_v43 }
 0x127   : > { %682 = vmin.xlane.f32.xlu0 %v681_v7  ;;  %667 = vmin.xlane.f32.xlu1 %v666_v39 }
 0x12b   : > { %676 = vmin.xlane.f32.xlu0 %v675_v47  ;;  %661 = vmin.xlane.f32.xlu1 %v660_v9 }
 0x12f   : > { %670 = vmin.xlane.f32.xlu0 %v669_v42 }
 0x133   : > { %664 = vmin.xlane.f32.xlu0 %v663_v11 }
 0x198   : > { %v701_v14 = vpop.xlane.xlu1 %700 }
 0x199   : > { %vm734_vm6 = vcmp.le.f32.partialorder %v6444_v18, %v701_v14  ;;  %vm735_vm7 = vcmp.le.f32.partialorder %v6447_v19, %v701_v14 }
 0x19a   : > { %v766_v46 = vsel %vm734_vm6, %v6602_v3, 256.0  ;;  %v767_v57 = vsel %vm735_vm7, %v6604_v23, 256.0 }
 0x19b   : > { %v811_v2 = vmin.f32 %v766_v46, %v767_v57 }
 0x19c   : > { %v698_v16 = vpop.xlane.xlu1 %697 }
 0x19d   : > { %vm732_vm10 = vcmp.le.f32.partialorder %v6455_v24, %v698_v16  ;;  %vm733_vm11 = vcmp.le.f32.partialorder %v6450_v21, %v698_v16 }
 0x19e   : > { %v764_v39 = vsel %vm732_vm10, %v6602_v3, 256.0  ;;  %v765_v47 = vsel %vm733_vm11, %v6604_v23, 256.0 }
 0x19f   : > { %v808_v41 = vmin.f32 %v764_v39, %v765_v47 }
 0x1a0   : > { %v707_v20 = vpop.xlane.xlu0 %706  ;;  %v692_v22 = vpop.xlane.xlu1 %691 }
 0x1a1   : > { %vm738_vm4 = vcmp.le.f32.partialorder %v6466_v30, %v707_v20  ;;  %vm739_vm5 = vcmp.le.f32.partialorder %v6469_v31, %v707_v20  ;;  %vm728_vm12 = vcmp.le.f32.partialorder %v6463_v29, %v692_v22  ;;  %vm729_vm15 = vcmp.le.f32.partialorder %v6458_v26, %v692_v22 }
 0x1a2   : > { %v770_v1 = vsel %vm738_vm4, %v6602_v3, 256.0  ;;  %v771_v25 = vsel %vm739_vm5, %v6604_v23, 256.0  ;;  %v760_v12 = vsel %vm728_vm12, %v6602_v3, 256.0  ;;  %v761_v37 = vsel %vm729_vm15, %v6604_v23, 256.0 }
 0x1a3   : > { %v817_v27 = vmin.f32 %v770_v1, %v771_v25  ;;  %v802_v17 = vmin.f32 %v760_v12, %v761_v37  ;;  %v3188_v25 = vld [vmem:[%s9887_s3] sm:$0xff] }
 0x1a4   : > { %v704_v28 = vpop.xlane.xlu0 %703  ;;  %v686_v34 = vpop.xlane.xlu1 %685  ;;  %5441 = vmatmul.mubr.msk.f32.vlgmr.msra.gmra.mxu1 %vm9895_vm1, %v3188_v25  ;;  %5803 = vmatprep.mubr.msk.f32.mxu0 %vm9895_vm1, %v3188_v25 }
 0x1a5   : > { %818 = vmin.xlane.f32.xlu0 %v817_v27  ;;  %vm736_vm8 = vcmp.le.f32.partialorder %v6485_v52, %v704_v28  ;;  %vm737_vm9 = vcmp.le.f32.partialorder %v6475_v33, %v704_v28  ;;  %vm724_vm0 = vcmp.le.f32.partialorder %v6482_v49, %v686_v34  ;;  %vm725_vm4 = vcmp.le.f32.partialorder %v6472_v32, %v686_v34 }
 0x1a6   : > { %v768_v58 = vsel %vm736_vm8, %v6602_v3, 256.0  ;;  %v769_v63 = vsel %vm737_vm9, %v6604_v23, 256.0  ;;  %v756_v22 = vsel %vm724_vm0, %v6602_v3, 256.0  ;;  %v757_v1 = vsel %vm725_vm4, %v6604_v23, 256.0  ;;  %3359 = vmatprep.mubr.f32.mxu1 %v6190_v0 }
 0x1a7   : > { %v814_v5 = vmin.f32 %v768_v58, %v769_v63  ;;  %v796_v57 = vmin.f32 %v756_v22, %v757_v1 }
 0x1a8   : > { %v695_v43 = vpop.xlane.xlu0 %694  ;;  %v680_v7 = vpop.xlane.xlu1 %679 }
 0x1a9   : > { %812 = vmin.xlane.f32.xlu0 %v811_v2  ;;  %815 = vmin.xlane.f32.xlu1 %v814_v5  ;;  %vm730_vm13 = vcmp.le.f32.partialorder %v6501_v60, %v695_v43  ;;  %vm731_vm14 = vcmp.le.f32.partialorder %v6491_v56, %v695_v43  ;;  %vm720_vm5 = vcmp.le.f32.partialorder %v6498_v55, %v680_v7 }
 0x1aa   : > { %v762_v9 = vsel %vm730_vm13, %v6602_v3, 256.0  ;;  %v763_v42 = vsel %vm731_vm14, %v6604_v23, 256.0  ;;  %vm721_vm8 = vcmp.le.f32.partialorder %v6488_v53, %v680_v7  ;;  %v752_v63 = vsel %vm720_vm5, %v6602_v3, 256.0 }
 0x1ab   : > { %v805_v11 = vmin.f32 %v762_v9, %v763_v42  ;;  %v753_v2 = vsel %vm721_vm8, %v6604_v23, 256.0 }
 0x1ac   : > { %v689_v38 = vpop.xlane.xlu0 %688  ;;  %v674_v13 = vpop.xlane.xlu1 %673  ;;  %v790_v39 = vmin.f32 %v752_v63, %v753_v2 }
 0x1ad   : > { %806 = vmin.xlane.f32.xlu0 %v805_v11  ;;  %809 = vmin.xlane.f32.xlu1 %v808_v41  ;;  %vm726_vm2 = vcmp.le.f32.partialorder %v6519_v4, %v689_v38  ;;  %vm727_vm3 = vcmp.le.f32.partialorder %v6508_v61, %v689_v38  ;;  %vm716_vm9 = vcmp.le.f32.partialorder %v6516_v48, %v674_v13 }
 0x1ae   : > { %v758_v14 = vsel %vm726_vm2, %v6602_v3, 256.0  ;;  %v759_v15 = vsel %vm727_vm3, %v6604_v23, 256.0  ;;  %vm717_vm12 = vcmp.le.f32.partialorder %v6505_v50, %v674_v13  ;;  %v748_v47 = vsel %vm716_vm9, %v6602_v3, 256.0 }
 0x1af   : > { %v799_v16 = vmin.f32 %v758_v14, %v759_v15  ;;  %v749_v9 = vsel %vm717_vm12, %v6604_v23, 256.0 }
 0x1b0   : > { %v683_v20 = vpop.xlane.xlu0 %682  ;;  %v668_v34 = vpop.xlane.xlu1 %667  ;;  %v784_v12 = vmin.f32 %v748_v47, %v749_v9 }
 0x1b1   : > { %800 = vmin.xlane.f32.xlu0 %v799_v16  ;;  %803 = vmin.xlane.f32.xlu1 %v802_v17  ;;  %vm722_vm6 = vcmp.le.f32.partialorder %v6539_v6, %v683_v20  ;;  %vm723_vm7 = vcmp.le.f32.partialorder %v6527_v62, %v683_v20  ;;  %vm712_vm13 = vcmp.le.f32.partialorder %v6535_v59, %v668_v34 }
 0x1b2   : > { %v754_v27 = vsel %vm722_vm6, %v6602_v3, 256.0  ;;  %v755_v28 = vsel %vm723_vm7, %v6604_v23, 256.0  ;;  %vm713_vm0 = vcmp.le.f32.partialorder %v6523_v44, %v668_v34  ;;  %v744_v13 = vsel %vm712_vm13, %v6602_v3, 256.0 }
 0x1b3   : > { %v793_v46 = vmin.f32 %v754_v27, %v755_v28  ;;  %v745_v14 = vsel %vm713_vm0, %v6604_v23, 256.0  ;;  %v6191_v28 = vmov 1.0  }
 0x1b4   : > { %v677_v58 = vpop.xlane.xlu0 %676  ;;  %v662_v42 = vpop.xlane.xlu1 %661  ;;  %v778_v20 = vmin.f32 %v744_v13, %v745_v14 }
 0x1b5   : > { %794 = vmin.xlane.f32.xlu0 %v793_v46  ;;  %797 = vmin.xlane.f32.xlu1 %v796_v57  ;;  %vm718_vm10 = vcmp.le.f32.partialorder %v6559_v8, %v677_v58  ;;  %vm719_vm11 = vcmp.le.f32.partialorder %v6547_v54, %v677_v58  ;;  %vm708_vm2 = vcmp.le.f32.partialorder %v6555_v51, %v662_v42 }
 0x1b6   : > { %v750_v5 = vsel %vm718_vm10, %v6602_v3, 256.0  ;;  %v751_v0 = vsel %vm719_vm11, %v6604_v23, 256.0  ;;  %vm709_vm5 = vcmp.le.f32.partialorder %v6543_v40, %v662_v42  ;;  %v740_v22 = vsel %vm708_vm2, %v6602_v3, 256.0 }
 0x1b7   : > { %v787_v43 = vmin.f32 %v750_v5, %v751_v0  ;;  %v741_v1 = vsel %vm709_vm5, %v6604_v23, 256.0 }
 0x1b8   : > { %v671_v7 = vpop.xlane.xlu0 %670  ;;  %v772_v25 = vmin.f32 %v740_v22, %v741_v1 }
 0x1b9   : > { %788 = vmin.xlane.f32.xlu0 %v787_v43  ;;  %791 = vmin.xlane.f32.xlu1 %v790_v39  ;;  %vm714_vm14 = vcmp.le.f32.partialorder %v6571_v35, %v671_v7  ;;  %vm715_vm15 = vcmp.le.f32.partialorder %v6563_v36, %v671_v7 }
 0x1ba   : > { %v746_v11 = vsel %vm714_vm14, %v6602_v3, 256.0  ;;  %v747_v41 = vsel %vm715_vm15, %v6604_v23, 256.0 }
 0x1bb   : > { %v781_v38 = vmin.f32 %v746_v11, %v747_v41 }
 0x1bc   : > { %v665_v37 = vpop.xlane.xlu0 %664 }
 0x1bd   : > { %782 = vmin.xlane.f32.xlu0 %v781_v38  ;;  %785 = vmin.xlane.f32.xlu1 %v784_v12  ;;  %vm710_vm3 = vcmp.le.f32.partialorder %v6581_v10, %v665_v37  ;;  %vm711_vm4 = vcmp.le.f32.partialorder %v6575_v45, %v665_v37 }
 0x1be   : > { %v742_v15 = vsel %vm710_vm3, %v6602_v3, 256.0  ;;  %v743_v16 = vsel %vm711_vm4, %v6604_v23, 256.0 }
 0x1bf   : > { %v775_v17 = vmin.f32 %v742_v15, %v743_v16 }
 0x1c1   : > { %776 = vmin.xlane.f32.xlu0 %v775_v17  ;;  %779 = vmin.xlane.f32.xlu1 %v778_v20 }
 0x1c5   : > { %773 = vmin.xlane.f32.xlu1 %v772_v25 }
 0x22e   : > { %v819_v27 = vpop.xlane.xlu0 %818 }
 0x22f   : > { %vm850_vm6 = vcmp.eq.f32.partialorder %v6602_v3, %v819_v27  ;;  %vm851_vm7 = vcmp.eq.f32.partialorder %v6604_v23, %v819_v27 }
 0x230   : > { %5497 = vmatprep.subr.msk.mxu1 %vm851_vm7, %v6191_v28  ;;  %v6682_v34 = vsel %vm850_vm6, inf, %v6466_v30  ;;  %v6685_v46 = vsel %vm851_vm7, inf, %v6469_v31 }
 0x231   : > { %5498 = vmatpush1.xpose.msk.msra.mxu1 %vm850_vm6, %v6191_v28  ;;  %v1025_v57 = vmin.f32 %v6682_v34, %v6685_v46 }
 0x232   : > { %v813_v58 = vpop.xlane.xlu0 %812  ;;  %v816_v63 = vpop.xlane.xlu1 %815 }
 0x233   : > { %vm846_vm8 = vcmp.eq.f32.partialorder %v6602_v3, %v813_v58  ;;  %vm848_vm9 = vcmp.eq.f32.partialorder %v6602_v3, %v816_v63  ;;  %1026 = vmin.xlane.f32.xlu0 %v1025_v57  ;;  %vm849_vm10 = vcmp.eq.f32.partialorder %v6604_v23, %v816_v63  ;;  %vm847_vm11 = vcmp.eq.f32.partialorder %v6604_v23, %v813_v58 }
 0x234   : > { %5499 = vmatprep.subr.msk.mxu1 %vm849_vm10, %v6191_v28  ;;  %v6698_v30 = vsel %vm846_vm8, inf, %v6444_v18  ;;  %v6701_v31 = vsel %vm847_vm11, inf, %v6447_v19  ;;  %v6704_v2 = vsel %vm848_vm9, inf, %v6485_v52  ;;  %v6707_v5 = vsel %vm849_vm10, inf, %v6475_v33 }
 0x235   : > { %5500 = vmatpush1.xpose.msk.msra.mxu1 %vm848_vm9, %v6191_v28  ;;  %v1019_v0 = vmin.f32 %v6698_v30, %v6701_v31  ;;  %v1022_v43 = vmin.f32 %v6704_v2, %v6707_v5 }
 0x236   : > { %v807_v39 = vpop.xlane.xlu0 %806  ;;  %5501 = vmatprep.subr.msk.mxu1 %vm847_vm11, %v6191_v28  ;;  %v810_v18 = vpop.xlane.xlu1 %809 }
 0x237   : > { %vm842_vm12 = vcmp.eq.f32.partialorder %v6602_v3, %v807_v39  ;;  %vm843_vm13 = vcmp.eq.f32.partialorder %v6604_v23, %v807_v39  ;;  %vm844_vm14 = vcmp.eq.f32.partialorder %v6602_v3, %v810_v18  ;;  %1020 = vmin.xlane.f32.xlu0 %v1019_v0  ;;  %1023 = vmin.xlane.f32.xlu1 %v1022_v43 }
 0x238   : > { %vm845_vm15 = vcmp.eq.f32.partialorder %v6604_v23, %v810_v18  ;;  %v6722_v19 = vsel %vm842_vm12, inf, %v6501_v60  ;;  %v6727_v33 = vsel %vm843_vm13, inf, %v6491_v56  ;;  %v6732_v52 = vsel %vm844_vm14, inf, %v6455_v24 }
 0x239   : > { %5502 = vmatpush1.xpose.msk.msra.mxu1 %vm846_vm8, %v6191_v28  ;;  %v1013_v7 = vmin.f32 %v6722_v19, %v6727_v33  ;;  %v6740_v60 = vsel %vm845_vm15, inf, %v6450_v21 }
 0x23a   : > { %v6742_v47 = vpop.xlane.xlu0 %800  ;;  %5503 = vmatprep.subr.msk.mxu1 %vm845_vm15, %v6191_v28  ;;  %v804_v56 = vpop.xlane.xlu1 %803  ;;  %v1016_v9 = vmin.f32 %v6732_v52, %v6740_v60 }
 0x23b   : > { %vm838_vm0 = vcmp.eq.f32.partialorder %v6602_v3, %v6742_v47  ;;  %vm839_vm2 = vcmp.eq.f32.partialorder %v6604_v23, %v6742_v47  ;;  %vm840_vm3 = vcmp.eq.f32.partialorder %v6602_v3, %v804_v56  ;;  %vm841_vm4 = vcmp.eq.f32.partialorder %v6604_v23, %v804_v56  ;;  %1014 = vmin.xlane.f32.xlu0 %v1013_v7 }
 0x23c   : > { %1017 = vmin.xlane.f32.xlu1 %v1016_v9  ;;  %v6757_v21 = vsel %vm838_vm0, inf, %v6519_v4  ;;  %v6763_v24 = vsel %vm839_vm2, inf, %v6508_v61  ;;  %v6768_v42 = vsel %vm840_vm3, inf, %v6463_v29  ;;  %v6773_v11 = vsel %vm841_vm4, inf, %v6458_v26 }
 0x23d   : > { %5504 = vmatpush1.xpose.msk.msra.mxu1 %vm844_vm14, %v6191_v28  ;;  %v1007_v4 = vmin.f32 %v6757_v21, %v6763_v24  ;;  %v1010_v61 = vmin.f32 %v6768_v42, %v6773_v11 }
 0x23e   : > { %v6782_v41 = vpop.xlane.xlu0 %794  ;;  %5505 = vmatprep.subr.msk.mxu1 %vm843_vm13, %v6191_v28  ;;  %v798_v29 = vpop.xlane.xlu1 %797 }
 0x23f   : > { %vm834_vm5 = vcmp.eq.f32.partialorder %v6602_v3, %v6782_v41  ;;  %vm835_vm6 = vcmp.eq.f32.partialorder %v6604_v23, %v6782_v41  ;;  %vm836_vm7 = vcmp.eq.f32.partialorder %v6602_v3, %v798_v29  ;;  %vm837_vm8 = vcmp.eq.f32.partialorder %v6604_v23, %v798_v29  ;;  %1008 = vmin.xlane.f32.xlu0 %v1007_v4 }
 0x240   : > { %1011 = vmin.xlane.f32.xlu1 %v1010_v61  ;;  %v6797_v26 = vsel %vm834_vm5, inf, %v6539_v6  ;;  %v6803_v38 = vsel %vm835_vm6, inf, %v6527_v62  ;;  %v6808_v12 = vsel %vm836_vm7, inf, %v6482_v49  ;;  %v6813_v37 = vsel %vm837_vm8, inf, %v6472_v32 }
 0x241   : > { %5506 = vmatpush1.xpose.msk.msra.mxu1 %vm842_vm12, %v6191_v28  ;;  %v1001_v6 = vmin.f32 %v6797_v26, %v6803_v38  ;;  %v1004_v62 = vmin.f32 %v6808_v12, %v6813_v37 }
 0x242   : > { %v6822_v13 = vpop.xlane.xlu0 %788  ;;  %5507 = vmatprep.subr.msk.mxu1 %vm841_vm4, %v6191_v28  ;;  %v792_v49 = vpop.xlane.xlu1 %791 }
 0x243   : > { %vm830_vm9 = vcmp.eq.f32.partialorder %v6602_v3, %v6822_v13  ;;  %vm831_vm10 = vcmp.eq.f32.partialorder %v6604_v23, %v6822_v13  ;;  %vm832_vm11 = vcmp.eq.f32.partialorder %v6602_v3, %v792_v49  ;;  %vm833_vm12 = vcmp.eq.f32.partialorder %v6604_v23, %v792_v49  ;;  %1002 = vmin.xlane.f32.xlu0 %v1001_v6 }
 0x244   : > { %1005 = vmin.xlane.f32.xlu1 %v1004_v62  ;;  %v6837_v32 = vsel %vm830_vm9, inf, %v6559_v8  ;;  %v6843_v14 = vsel %vm831_vm10, inf, %v6547_v54  ;;  %v6848_v15 = vsel %vm832_vm11, inf, %v6498_v55  ;;  %v6853_v16 = vsel %vm833_vm12, inf, %v6488_v53 }
 0x245   : > { %5508 = vmatpush1.xpose.msk.msra.mxu1 %vm840_vm3, %v6191_v28  ;;  %v995_v8 = vmin.f32 %v6837_v32, %v6843_v14  ;;  %v998_v54 = vmin.f32 %v6848_v15, %v6853_v16 }
 0x246   : > { %v783_v17 = vpop.xlane.xlu0 %782  ;;  %5509 = vmatprep.subr.msk.mxu1 %vm839_vm2, %v6191_v28  ;;  %v786_v55 = vpop.xlane.xlu1 %785 }
 0x247   : > { %vm826_vm13 = vcmp.eq.f32.partialorder %v6602_v3, %v783_v17  ;;  %vm827_vm14 = vcmp.eq.f32.partialorder %v6604_v23, %v783_v17  ;;  %vm828_vm15 = vcmp.eq.f32.partialorder %v6602_v3, %v786_v55  ;;  %vm829_vm3 = vcmp.eq.f32.partialorder %v6604_v23, %v786_v55  ;;  %996 = vmin.xlane.f32.xlu0 %v995_v8 }
 0x248   : > { %999 = vmin.xlane.f32.xlu1 %v998_v54  ;;  %v6873_v53 = vsel %vm826_vm13, inf, %v6571_v35  ;;  %v6878_v20 = vsel %vm827_vm14, inf, %v6563_v36  ;;  %v6883_v22 = vsel %vm828_vm15, inf, %v6516_v48  ;;  %v6888_v1 = vsel %vm829_vm3, inf, %v6505_v50 }
 0x249   : > { %5510 = vmatpush1.xpose.msk.msra.mxu1 %vm838_vm0, %v6191_v28  ;;  %v989_v35 = vmin.f32 %v6873_v53, %v6878_v20  ;;  %v992_v36 = vmin.f32 %v6883_v22, %v6888_v1 }
 0x24a   : > { %v777_v25 = vpop.xlane.xlu0 %776  ;;  %5511 = vmatprep.subr.msk.mxu1 %vm837_vm8, %v6191_v28  ;;  %v780_v48 = vpop.xlane.xlu1 %779 }
 0x24b   : > { %vm9896_vm2 = vcmp.eq.f32.partialorder %v6602_v3, %v777_v25  ;;  %vm823_vm4 = vcmp.eq.f32.partialorder %v6604_v23, %v777_v25  ;;  %vm824_vm1 = vcmp.eq.f32.partialorder %v6602_v3, %v780_v48  ;;  %vm825_vm0 = vcmp.eq.f32.partialorder %v6604_v23, %v780_v48  ;;  %990 = vmin.xlane.f32.xlu0 %v989_v35 }
 0x24c   : > { %993 = vmin.xlane.f32.xlu1 %v992_v36  ;;  %v6908_v50 = vsel %vm9896_vm2, inf, %v6581_v10  ;;  %v6913_v27 = vsel %vm823_vm4, inf, %v6575_v45  ;;  %v6918_v57 = vsel %vm824_vm1, inf, %v6535_v59  ;;  %v6923_v58 = vsel %vm825_vm0, inf, %v6523_v44 }
 0x24d   : > { %5512 = vmatpush1.xpose.msk.msra.mxu1 %vm836_vm7, %v6191_v28  ;;  %v983_v10 = vmin.f32 %v6908_v50, %v6913_v27  ;;  %v986_v45 = vmin.f32 %v6918_v57, %v6923_v58 }
 0x24e   : > { %5513 = vmatprep.subr.msk.mxu1 %vm835_vm6, %v6191_v28  ;;  %v774_v59 = vpop.xlane.xlu1 %773 }
 0x24f   : > { %vm820_vm8 = vcmp.eq.f32.partialorder %v6602_v3, %v774_v59  ;;  %vm821_vm2 = vcmp.eq.f32.partialorder %v6604_v23, %v774_v59  ;;  %984 = vmin.xlane.f32.xlu0 %v983_v10 }
 0x250   : > { %987 = vmin.xlane.f32.xlu1 %v986_v45  ;;  %v6941_v44 = vsel %vm820_vm8, inf, %v6555_v51  ;;  %v6946_v63 = vsel %vm821_vm2, inf, %v6543_v40 }
 0x251   : > { %5514 = vmatpush1.xpose.msk.msra.mxu1 %vm834_vm5, %v6191_v28  ;;  %v980_v0 = vmin.f32 %v6941_v44, %v6946_v63  ;;  %vm9902_vm5 = vcmp.eq.f32.partialorder %v6602_v3, %v777_v25 }
 0x252   : > { %5515 = vmatprep.subr.msk.mxu1 %vm833_vm12, %v6191_v28 }
 0x254   : > { %981 = vmin.xlane.f32.xlu1 %v980_v0 }
 0x255   : > { %5516 = vmatpush1.xpose.msk.msra.mxu1 %vm832_vm11, %v6191_v28 }
 0x256   : > { %5517 = vmatprep.subr.msk.mxu1 %vm831_vm10, %v6191_v28 }
 0x259   : > { %5518 = vmatpush1.xpose.msk.msra.mxu1 %vm830_vm9, %v6191_v28 }
 0x25a   : > { %5519 = vmatprep.subr.msk.mxu1 %vm829_vm3, %v6191_v28 }
 0x25d   : > { %5520 = vmatpush1.xpose.msk.msra.mxu1 %vm828_vm15, %v6191_v28 }
 0x25e   : > { %5521 = vmatprep.subr.msk.mxu1 %vm827_vm14, %v6191_v28 }
 0x261   : > { %5522 = vmatpush1.xpose.msk.msra.mxu1 %vm826_vm13, %v6191_v28 }
 0x262   : > { %5523 = vmatprep.subr.msk.mxu1 %vm825_vm0, %v6191_v28 }
 0x265   : > { %5524 = vmatpush1.xpose.msk.msra.mxu1 %vm824_vm1, %v6191_v28 }
 0x266   : > { %5525 = vmatprep.subr.msk.mxu1 %vm823_vm4, %v6191_v28 }
 0x269   : > { %5526 = vmatpush1.xpose.msk.msra.mxu1 %vm9902_vm5, %v6191_v28 }
 0x26a   : > { %5527 = vmatprep.subr.msk.mxu1 %vm821_vm2, %v6191_v28 }
 0x26d   : > { %5528 = vmatpush1.xpose.msk.msra.mxu1 %vm820_vm8, %v6191_v28 }
 0x2bc   : > { %v1027_v40 = vpop.xlane.xlu0 %1026 }
 0x2bd   : > { %vm1058_vm6 = vcmp.le.f32.partialorder %v6682_v34, %v1027_v40  ;;  %vm1059_vm1 = vcmp.le.f32.partialorder %v6685_v46, %v1027_v40 }
 0x2be   : > { %v1090_v51 = vsel %vm1058_vm6, %v6602_v3, 256.0  ;;  %v1091_v43 = vsel %vm1059_vm1, %v6604_v23, 256.0 }
 0x2bf   : > { %v1137_v39 = vmin.f32 %v1090_v51, %v1091_v43 }
 0x2c0   : > { %v1021_v18 = vpop.xlane.xlu0 %1020  ;;  %v1024_v7 = vpop.xlane.xlu1 %1023 }
 0x2c1   : > { %1138 = vmin.xlane.f32.xlu0 %v1137_v39  ;;  %vm1054_vm7 = vcmp.le.f32.partialorder %v6698_v30, %v1021_v18  ;;  %vm1055_vm9 = vcmp.le.f32.partialorder %v6701_v31, %v1021_v18  ;;  %vm1056_vm10 = vcmp.le.f32.partialorder %v6704_v2, %v1024_v7  ;;  %vm1057_vm11 = vcmp.le.f32.partialorder %v6707_v5, %v1024_v7 }
 0x2c2   : > { %v1086_v47 = vsel %vm1054_vm7, %v6602_v3, 256.0  ;;  %v1087_v56 = vsel %vm1055_vm9, %v6604_v23, 256.0  ;;  %v1088_v9 = vsel %vm1056_vm10, %v6602_v3, 256.0  ;;  %v1089_v4 = vsel %vm1057_vm11, %v6604_v23, 256.0 }
 0x2c3   : > { %v1131_v61 = vmin.f32 %v1086_v47, %v1087_v56  ;;  %v1134_v41 = vmin.f32 %v1088_v9, %v1089_v4 }
 0x2c4   : > { %v1015_v29 = vpop.xlane.xlu0 %1014 }
 0x2c5   : > { %v1018_v6 = vpop.xlane.xlu1 %1017  ;;  %1132 = vmin.xlane.f32.xlu0 %v1131_v61  ;;  %1135 = vmin.xlane.f32.xlu1 %v1134_v41  ;;  %vm1050_vm12 = vcmp.le.f32.partialorder %v6722_v19, %v1015_v29  ;;  %vm1051_vm13 = vcmp.le.f32.partialorder %v6727_v33, %v1015_v29 }
 0x2c6   : > { %v1082_v62 = vsel %vm1050_vm12, %v6602_v3, 256.0  ;;  %v1083_v13 = vsel %vm1051_vm13, %v6604_v23, 256.0  ;;  %vm1052_vm14 = vcmp.le.f32.partialorder %v6732_v52, %v1018_v6  ;;  %vm1053_vm15 = vcmp.le.f32.partialorder %v6740_v60, %v1018_v6 }
 0x2c7   : > { %v1125_v49 = vmin.f32 %v1082_v62, %v1083_v13  ;;  %v1084_v8 = vsel %vm1052_vm14, %v6602_v3, 256.0  ;;  %v1085_v54 = vsel %vm1053_vm15, %v6604_v23, 256.0 }
 0x2c8   : > { %v1009_v17 = vpop.xlane.xlu0 %1008  ;;  %v1128_v55 = vmin.f32 %v1084_v8, %v1085_v54 }
 0x2c9   : > { %v1012_v35 = vpop.xlane.xlu1 %1011  ;;  %1126 = vmin.xlane.f32.xlu0 %v1125_v49  ;;  %vm1046_vm3 = vcmp.le.f32.partialorder %v6757_v21, %v1009_v17  ;;  %vm1047_vm2 = vcmp.le.f32.partialorder %v6763_v24, %v1009_v17 }
 0x2ca   : > { %1129 = vmin.xlane.f32.xlu1 %v1128_v55  ;;  %v1078_v36 = vsel %vm1046_vm3, %v6602_v3, 256.0  ;;  %v1079_v25 = vsel %vm1047_vm2, %v6604_v23, 256.0  ;;  %vm1048_vm4 = vcmp.le.f32.partialorder %v6768_v42, %v1012_v35  ;;  %vm1049_vm0 = vcmp.le.f32.partialorder %v6773_v11, %v1012_v35 }
 0x2cb   : > { %v1119_v48 = vmin.f32 %v1078_v36, %v1079_v25  ;;  %v1080_v10 = vsel %vm1048_vm4, %v6602_v3, 256.0  ;;  %v1081_v45 = vsel %vm1049_vm0, %v6604_v23, 256.0 }
 0x2cc   : > { %v1003_v59 = vpop.xlane.xlu0 %1002  ;;  %v1122_v0 = vmin.f32 %v1080_v10, %v1081_v45 }
 0x2cd   : > { %v1006_v40 = vpop.xlane.xlu1 %1005  ;;  %1120 = vmin.xlane.f32.xlu0 %v1119_v48  ;;  %vm1042_vm8 = vcmp.le.f32.partialorder %v6797_v26, %v1003_v59  ;;  %vm1043_vm5 = vcmp.le.f32.partialorder %v6803_v38, %v1003_v59 }
 0x2ce   : > { %1123 = vmin.xlane.f32.xlu1 %v1122_v0  ;;  %v1074_v51 = vsel %vm1042_vm8, %v6602_v3, 256.0  ;;  %v1075_v43 = vsel %vm1043_vm5, %v6604_v23, 256.0  ;;  %vm1044_vm6 = vcmp.le.f32.partialorder %v6808_v12, %v1006_v40  ;;  %vm1045_vm1 = vcmp.le.f32.partialorder %v6813_v37, %v1006_v40 }
 0x2cf   : > { %v1113_v39 = vmin.f32 %v1074_v51, %v1075_v43  ;;  %v1076_v18 = vsel %vm1044_vm6, %v6602_v3, 256.0  ;;  %v1077_v7 = vsel %vm1045_vm1, %v6604_v23, 256.0 }
 0x2d0   : > { %v997_v47 = vpop.xlane.xlu0 %996  ;;  %v1116_v56 = vmin.f32 %v1076_v18, %v1077_v7 }
 0x2d1   : > { %v1000_v9 = vpop.xlane.xlu1 %999  ;;  %1114 = vmin.xlane.f32.xlu0 %v1113_v39  ;;  %vm1038_vm7 = vcmp.le.f32.partialorder %v6837_v32, %v997_v47  ;;  %vm1039_vm9 = vcmp.le.f32.partialorder %v6843_v14, %v997_v47 }
 0x2d2   : > { %1117 = vmin.xlane.f32.xlu1 %v1116_v56  ;;  %v1070_v4 = vsel %vm1038_vm7, %v6602_v3, 256.0  ;;  %v1071_v61 = vsel %vm1039_vm9, %v6604_v23, 256.0  ;;  %vm1040_vm10 = vcmp.le.f32.partialorder %v6848_v15, %v1000_v9  ;;  %vm1041_vm11 = vcmp.le.f32.partialorder %v6853_v16, %v1000_v9 }
 0x2d3   : > { %v1107_v41 = vmin.f32 %v1070_v4, %v1071_v61  ;;  %v1072_v29 = vsel %vm1040_vm10, %v6602_v3, 256.0  ;;  %v1073_v6 = vsel %vm1041_vm11, %v6604_v23, 256.0 }
 0x2d4   : > { %v991_v62 = vpop.xlane.xlu0 %990  ;;  %v1110_v13 = vmin.f32 %v1072_v29, %v1073_v6 }
 0x2d5   : > { %v994_v49 = vpop.xlane.xlu1 %993  ;;  %1108 = vmin.xlane.f32.xlu0 %v1107_v41  ;;  %vm1034_vm12 = vcmp.le.f32.partialorder %v6873_v53, %v991_v62  ;;  %vm1035_vm13 = vcmp.le.f32.partialorder %v6878_v20, %v991_v62 }
 0x2d6   : > { %1111 = vmin.xlane.f32.xlu1 %v1110_v13  ;;  %v1066_v8 = vsel %vm1034_vm12, %v6602_v3, 256.0  ;;  %v1067_v54 = vsel %vm1035_vm13, %v6604_v23, 256.0  ;;  %vm1036_vm14 = vcmp.le.f32.partialorder %v6883_v22, %v994_v49  ;;  %vm1037_vm15 = vcmp.le.f32.partialorder %v6888_v1, %v994_v49 }
 0x2d7   : > { %v1101_v17 = vmin.f32 %v1066_v8, %v1067_v54  ;;  %v1068_v55 = vsel %vm1036_vm14, %v6602_v3, 256.0  ;;  %v1069_v35 = vsel %vm1037_vm15, %v6604_v23, 256.0 }
 0x2d8   : > { %v985_v36 = vpop.xlane.xlu0 %984  ;;  %v1104_v25 = vmin.f32 %v1068_v55, %v1069_v35 }
 0x2d9   : > { %v988_v48 = vpop.xlane.xlu1 %987  ;;  %1102 = vmin.xlane.f32.xlu0 %v1101_v17  ;;  %vm1030_vm3 = vcmp.le.f32.partialorder %v6908_v50, %v985_v36  ;;  %vm1031_vm2 = vcmp.le.f32.partialorder %v6913_v27, %v985_v36 }
 0x2da   : > { %1105 = vmin.xlane.f32.xlu1 %v1104_v25  ;;  %v1062_v10 = vsel %vm1030_vm3, %v6602_v3, 256.0  ;;  %v1063_v45 = vsel %vm1031_vm2, %v6604_v23, 256.0  ;;  %vm1032_vm4 = vcmp.le.f32.partialorder %v6918_v57, %v988_v48  ;;  %vm1033_vm0 = vcmp.le.f32.partialorder %v6923_v58, %v988_v48 }
 0x2db   : > { %v1095_v59 = vmin.f32 %v1062_v10, %v1063_v45  ;;  %v1064_v0 = vsel %vm1032_vm4, %v6602_v3, 256.0  ;;  %v1065_v40 = vsel %vm1033_vm0, %v6604_v23, 256.0 }
 0x2dc   : > { %v1098_v51 = vmin.f32 %v1064_v0, %v1065_v40 }
 0x2dd   : > { %v982_v43 = vpop.xlane.xlu1 %981  ;;  %1096 = vmin.xlane.f32.xlu0 %v1095_v59 }
 0x2de   : > { %1099 = vmin.xlane.f32.xlu1 %v1098_v51  ;;  %vm1028_vm8 = vcmp.le.f32.partialorder %v6941_v44, %v982_v43  ;;  %vm1029_vm5 = vcmp.le.f32.partialorder %v6946_v63, %v982_v43 }
 0x2df   : > { %v1060_v39 = vsel %vm1028_vm8, %v6602_v3, 256.0  ;;  %v1061_v18 = vsel %vm1029_vm5, %v6604_v23, 256.0 }
 0x2e0   : > { %v1092_v7 = vmin.f32 %v1060_v39, %v1061_v18 }
 0x2e2   : > { %1093 = vmin.xlane.f32.xlu1 %v1092_v7 }
 0x34a   : > { %v1139_v47 = vpop.xlane.xlu0 %1138 }
 0x34b   : > { %vm1170_vm6 = vcmp.eq.f32.partialorder %v6602_v3, %v1139_v47  ;;  %vm1171_vm1 = vcmp.eq.f32.partialorder %v6604_v23, %v1139_v47 }
 0x34c   : > { %5529 = vmatprep.subr.msk.mxu1 %vm1171_vm1, %v6191_v28  ;;  %v7066_v56 = vsel %vm1170_vm6, inf, %v6682_v34  ;;  %v7069_v9 = vsel %vm1171_vm1, inf, %v6685_v46 }
 0x34d   : > { %5530 = vmatpush2.xpose.msk.msra.mxu1 %vm1170_vm6, %v6191_v28  ;;  %v1345_v4 = vmin.f32 %v7066_v56, %v7069_v9 }
 0x34e   : > { %v1133_v61 = vpop.xlane.xlu0 %1132  ;;  %v1136_v41 = vpop.xlane.xlu1 %1135 }
 0x34f   : > { %vm1166_vm7 = vcmp.eq.f32.partialorder %v6602_v3, %v1133_v61  ;;  %vm1168_vm9 = vcmp.eq.f32.partialorder %v6602_v3, %v1136_v41  ;;  %1346 = vmin.xlane.f32.xlu0 %v1345_v4  ;;  %vm1169_vm10 = vcmp.eq.f32.partialorder %v6604_v23, %v1136_v41  ;;  %vm1167_vm11 = vcmp.eq.f32.partialorder %v6604_v23, %v1133_v61 }
 0x350   : > { %5531 = vmatprep.subr.msk.mxu1 %vm1169_vm10, %v6191_v28  ;;  %v7082_v34 = vsel %vm1166_vm7, inf, %v6698_v30  ;;  %v7085_v46 = vsel %vm1167_vm11, inf, %v6701_v31  ;;  %v7088_v29 = vsel %vm1168_vm9, inf, %v6704_v2  ;;  %v7091_v6 = vsel %vm1169_vm10, inf, %v6707_v5 }
 0x351   : > { %5532 = vmatpush2.xpose.msk.msra.mxu1 %vm1168_vm9, %v6191_v28  ;;  %v1339_v62 = vmin.f32 %v7082_v34, %v7085_v46  ;;  %v1342_v13 = vmin.f32 %v7088_v29, %v7091_v6 }
 0x352   : > { %v1127_v49 = vpop.xlane.xlu0 %1126  ;;  %5533 = vmatprep.subr.msk.mxu1 %vm1167_vm11, %v6191_v28 }
 0x353   : > { %vm1162_vm12 = vcmp.eq.f32.partialorder %v6602_v3, %v1127_v49  ;;  %vm1163_vm13 = vcmp.eq.f32.partialorder %v6604_v23, %v1127_v49  ;;  %v1130_v30 = vpop.xlane.xlu1 %1129  ;;  %1340 = vmin.xlane.f32.xlu0 %v1339_v62  ;;  %1343 = vmin.xlane.f32.xlu1 %v1342_v13 }
 0x354   : > { %vm1164_vm14 = vcmp.eq.f32.partialorder %v6602_v3, %v1130_v30  ;;  %vm1165_vm15 = vcmp.eq.f32.partialorder %v6604_v23, %v1130_v30  ;;  %v7106_v31 = vsel %vm1162_vm12, inf, %v6722_v19  ;;  %v7111_v2 = vsel %vm1163_vm13, inf, %v6727_v33 }
 0x355   : > { %5534 = vmatpush2.xpose.msk.msra.mxu1 %vm1166_vm7, %v6191_v28  ;;  %v1333_v5 = vmin.f32 %v7106_v31, %v7111_v2  ;;  %v7121_v8 = vsel %vm1164_vm14, inf, %v6732_v52  ;;  %v7124_v19 = vsel %vm1165_vm15, inf, %v6740_v60 }
 0x356   : > { %v1121_v54 = vpop.xlane.xlu0 %1120  ;;  %5535 = vmatprep.subr.msk.mxu1 %vm1165_vm15, %v6191_v28  ;;  %v1336_v33 = vmin.f32 %v7121_v8, %v7124_v19 }
 0x357   : > { %vm1158_vm3 = vcmp.eq.f32.partialorder %v6602_v3, %v1121_v54  ;;  %vm1159_vm2 = vcmp.eq.f32.partialorder %v6604_v23, %v1121_v54  ;;  %v1124_v17 = vpop.xlane.xlu1 %1123  ;;  %1334 = vmin.xlane.f32.xlu0 %v1333_v5 }
 0x358   : > { %vm1160_vm4 = vcmp.eq.f32.partialorder %v6602_v3, %v1124_v17  ;;  %vm1161_vm0 = vcmp.eq.f32.partialorder %v6604_v23, %v1124_v17  ;;  %1337 = vmin.xlane.f32.xlu1 %v1336_v33  ;;  %v7136_v52 = vsel %vm1158_vm3, inf, %v6757_v21  ;;  %v7141_v60 = vsel %vm1159_vm2, inf, %v6763_v24 }
 0x359   : > { %5536 = vmatpush2.xpose.msk.msra.mxu1 %vm1164_vm14, %v6191_v28  ;;  %v1327_v55 = vmin.f32 %v7136_v52, %v7141_v60  ;;  %v7151_v35 = vsel %vm1160_vm4, inf, %v6768_v42  ;;  %v7156_v21 = vsel %vm1161_vm0, inf, %v6773_v11 }
 0x35a   : > { %v7158_v36 = vpop.xlane.xlu0 %1114  ;;  %5537 = vmatprep.subr.msk.mxu1 %vm1163_vm13, %v6191_v28  ;;  %v1330_v24 = vmin.f32 %v7151_v35, %v7156_v21 }
 0x35b   : > { %vm1154_vm8 = vcmp.eq.f32.partialorder %v6602_v3, %v7158_v36  ;;  %vm1155_vm5 = vcmp.eq.f32.partialorder %v6604_v23, %v7158_v36  ;;  %v1118_v42 = vpop.xlane.xlu1 %1117  ;;  %1328 = vmin.xlane.f32.xlu0 %v1327_v55 }
 0x35c   : > { %vm1156_vm6 = vcmp.eq.f32.partialorder %v6602_v3, %v1118_v42  ;;  %vm1157_vm1 = vcmp.eq.f32.partialorder %v6604_v23, %v1118_v42  ;;  %1331 = vmin.xlane.f32.xlu1 %v1330_v24  ;;  %v7175_v11 = vsel %vm1154_vm8, inf, %v6797_v26  ;;  %v7181_v25 = vsel %vm1155_vm5, inf, %v6803_v38 }
 0x35d   : > { %5538 = vmatpush2.xpose.msk.msra.mxu1 %vm1162_vm12, %v6191_v28  ;;  %v1321_v48 = vmin.f32 %v7175_v11, %v7181_v25  ;;  %v7191_v10 = vsel %vm1156_vm6, inf, %v6808_v12  ;;  %v7196_v26 = vsel %vm1157_vm1, inf, %v6813_v37 }
 0x35e   : > { %v7198_v45 = vpop.xlane.xlu0 %1108  ;;  %5539 = vmatprep.subr.msk.mxu1 %vm1161_vm0, %v6191_v28  ;;  %v1324_v38 = vmin.f32 %v7191_v10, %v7196_v26 }
 0x35f   : > { %vm1150_vm7 = vcmp.eq.f32.partialorder %v6602_v3, %v7198_v45  ;;  %vm1151_vm9 = vcmp.eq.f32.partialorder %v6604_v23, %v7198_v45  ;;  %v1112_v12 = vpop.xlane.xlu1 %1111  ;;  %1322 = vmin.xlane.f32.xlu0 %v1321_v48 }
 0x360   : > { %vm1152_vm10 = vcmp.eq.f32.partialorder %v6602_v3, %v1112_v12  ;;  %vm1153_vm11 = vcmp.eq.f32.partialorder %v6604_v23, %v1112_v12  ;;  %1325 = vmin.xlane.f32.xlu1 %v1324_v38  ;;  %v7215_v37 = vsel %vm1150_vm7, inf, %v6837_v32  ;;  %v7221_v59 = vsel %vm1151_vm9, inf, %v6843_v14 }
 0x361   : > { %5540 = vmatpush2.xpose.msk.msra.mxu1 %vm1160_vm4, %v6191_v28  ;;  %v1315_v0 = vmin.f32 %v7215_v37, %v7221_v59  ;;  %v7231_v40 = vsel %vm1152_vm10, inf, %v6848_v15  ;;  %v7236_v32 = vsel %vm1153_vm11, inf, %v6853_v16 }
 0x362   : > { %v1103_v51 = vpop.xlane.xlu0 %1102  ;;  %5541 = vmatprep.subr.msk.mxu1 %vm1159_vm2, %v6191_v28  ;;  %v1318_v14 = vmin.f32 %v7231_v40, %v7236_v32 }
 0x363   : > { %vm1146_vm12 = vcmp.eq.f32.partialorder %v6602_v3, %v1103_v51  ;;  %vm1147_vm13 = vcmp.eq.f32.partialorder %v6604_v23, %v1103_v51  ;;  %v1106_v43 = vpop.xlane.xlu1 %1105  ;;  %1316 = vmin.xlane.f32.xlu0 %v1315_v0 }
 0x364   : > { %vm1148_vm14 = vcmp.eq.f32.partialorder %v6602_v3, %v1106_v43  ;;  %vm1149_vm15 = vcmp.eq.f32.partialorder %v6604_v23, %v1106_v43  ;;  %1319 = vmin.xlane.f32.xlu1 %v1318_v14  ;;  %v7250_v15 = vsel %vm1146_vm12, inf, %v6873_v53  ;;  %v7255_v16 = vsel %vm1147_vm13, inf, %v6878_v20 }
 0x365   : > { %5542 = vmatpush2.xpose.msk.msra.mxu1 %vm1158_vm3, %v6191_v28  ;;  %v1309_v39 = vmin.f32 %v7250_v15, %v7255_v16  ;;  %v7265_v18 = vsel %vm1148_vm14, inf, %v6883_v22  ;;  %v7270_v53 = vsel %vm1149_vm15, inf, %v6888_v1 }
 0x366   : > { %v1097_v7 = vpop.xlane.xlu0 %1096  ;;  %5543 = vmatprep.subr.msk.mxu1 %vm1157_vm1, %v6191_v28  ;;  %v1312_v20 = vmin.f32 %v7265_v18, %v7270_v53 }
 0x367   : > { %vm1142_vm3 = vcmp.eq.f32.partialorder %v6602_v3, %v1097_v7  ;;  %vm1143_vm2 = vcmp.eq.f32.partialorder %v6604_v23, %v1097_v7  ;;  %v1100_v47 = vpop.xlane.xlu1 %1099  ;;  %1310 = vmin.xlane.f32.xlu0 %v1309_v39 }
 0x368   : > { %vm1144_vm4 = vcmp.eq.f32.partialorder %v6602_v3, %v1100_v47  ;;  %vm1145_vm0 = vcmp.eq.f32.partialorder %v6604_v23, %v1100_v47  ;;  %1313 = vmin.xlane.f32.xlu1 %v1312_v20  ;;  %v7284_v22 = vsel %vm1142_vm3, inf, %v6908_v50  ;;  %v7289_v1 = vsel %vm1143_vm2, inf, %v6913_v27 }
 0x369   : > { %5544 = vmatpush2.xpose.msk.msra.mxu1 %vm1156_vm6, %v6191_v28  ;;  %v1303_v4 = vmin.f32 %v7284_v22, %v7289_v1  ;;  %v7299_v61 = vsel %vm1144_vm4, inf, %v6918_v57  ;;  %v7304_v50 = vsel %vm1145_vm0, inf, %v6923_v58 }
 0x36a   : > { %5545 = vmatprep.subr.msk.mxu1 %vm1155_vm5, %v6191_v28  ;;  %v1306_v27 = vmin.f32 %v7299_v61, %v7304_v50 }
 0x36b   : > { %v1094_v41 = vpop.xlane.xlu1 %1093  ;;  %1304 = vmin.xlane.f32.xlu0 %v1303_v4 }
 0x36c   : > { %vm1140_vm6 = vcmp.eq.f32.partialorder %v6602_v3, %v1094_v41  ;;  %vm1141_vm1 = vcmp.eq.f32.partialorder %v6604_v23, %v1094_v41  ;;  %1307 = vmin.xlane.f32.xlu1 %v1306_v27 }
 0x36d   : > { %5546 = vmatpush2.xpose.msk.msra.mxu1 %vm1154_vm8, %v6191_v28  ;;  %v7321_v57 = vsel %vm1140_vm6, inf, %v6941_v44  ;;  %v7326_v58 = vsel %vm1141_vm1, inf, %v6946_v63 }
 0x36e   : > { %5547 = vmatprep.subr.msk.mxu1 %vm1153_vm11, %v6191_v28  ;;  %v1300_v62 = vmin.f32 %v7321_v57, %v7326_v58 }
 0x370   : > { %1301 = vmin.xlane.f32.xlu1 %v1300_v62 }
 0x371   : > { %5548 = vmatpush2.xpose.msk.msra.mxu1 %vm1152_vm10, %v6191_v28 }
 0x372   : > { %5549 = vmatprep.subr.msk.mxu1 %vm1151_vm9, %v6191_v28 }
 0x375   : > { %5550 = vmatpush2.xpose.msk.msra.mxu1 %vm1150_vm7, %v6191_v28 }
 0x376   : > { %5551 = vmatprep.subr.msk.mxu1 %vm1149_vm15, %v6191_v28 }
 0x379   : > { %5552 = vmatpush2.xpose.msk.msra.mxu1 %vm1148_vm14, %v6191_v28 }
 0x37a   : > { %5553 = vmatprep.subr.msk.mxu1 %vm1147_vm13, %v6191_v28 }
 0x37d   : > { %5554 = vmatpush2.xpose.msk.msra.mxu1 %vm1146_vm12, %v6191_v28 }
 0x37e   : > { %5555 = vmatprep.subr.msk.mxu1 %vm1145_vm0, %v6191_v28 }
 0x381   : > { %5556 = vmatpush2.xpose.msk.msra.mxu1 %vm1144_vm4, %v6191_v28 }
 0x382   : > { %5557 = vmatprep.subr.msk.mxu1 %vm1143_vm2, %v6191_v28 }
 0x385   : > { %5558 = vmatpush2.xpose.msk.msra.mxu1 %vm1142_vm3, %v6191_v28 }
 0x386   : > { %5559 = vmatprep.subr.msk.mxu1 %vm1141_vm1, %v6191_v28 }
 0x389   : > { %5560 = vmatpush2.xpose.msk.msra.mxu1 %vm1140_vm6, %v6191_v28 }
 0x3d8   : > { %v1347_v44 = vpop.xlane.xlu0 %1346 }
 0x3d9   : > { %vm1378_vm8 = vcmp.le.f32.partialorder %v7066_v56, %v1347_v44  ;;  %vm1379_vm5 = vcmp.le.f32.partialorder %v7069_v9, %v1347_v44  ;;  %v3189_v44 = vld [vmem:[%s9887_s3 + $0x8] sm:$0xff] }
 0x3da   : > { %v1410_v63 = vsel %vm1378_vm8, %v6602_v3, 256.0  ;;  %v1411_v13 = vsel %vm1379_vm5, %v6604_v23, 256.0  ;;  %vm9903_vm8 = vcmask 23552  }
 0x3db   : > { %v1457_v49 = vmin.f32 %v1410_v63, %v1411_v13  ;;  %5804 = vmatmul.mubr.msk.f32.vlgmr.msra.gmra.mxu0 %vm9903_vm8, %v3189_v44 }
 0x3dc   : > { %v1341_v30 = vpop.xlane.xlu0 %1340  ;;  %v1344_v5 = vpop.xlane.xlu1 %1343 }
 0x3dd   : > { %1458 = vmin.xlane.f32.xlu0 %v1457_v49  ;;  %vm1374_vm7 = vcmp.le.f32.partialorder %v7082_v34, %v1341_v30  ;;  %vm1375_vm9 = vcmp.le.f32.partialorder %v7085_v46, %v1341_v30  ;;  %vm1376_vm10 = vcmp.le.f32.partialorder %v7088_v29, %v1344_v5  ;;  %vm1377_vm11 = vcmp.le.f32.partialorder %v7091_v6, %v1344_v5 }
 0x3de   : > { %v1406_v54 = vsel %vm1374_vm7, %v6602_v3, 256.0  ;;  %v1407_v33 = vsel %vm1375_vm9, %v6604_v23, 256.0  ;;  %v1408_v17 = vsel %vm1376_vm10, %v6602_v3, 256.0  ;;  %v1409_v55 = vsel %vm1377_vm11, %v6604_v23, 256.0  ;;  %vm9904_vm9 = vmmov %vm9903_vm8 }
 0x3df   : > { %v1451_v36 = vmin.f32 %v1406_v54, %v1407_v33  ;;  %v1454_v24 = vmin.f32 %v1408_v17, %v1409_v55  ;;  %5442 = vmatmul.mubr.msk.f32.gmra.mxu1 %vm9904_vm9, %v3189_v44 }
 0x3e0   : > { %v1335_v42 = vpop.xlane.xlu0 %1334 }
 0x3e1   : > { %v1338_v48 = vpop.xlane.xlu1 %1337  ;;  %1452 = vmin.xlane.f32.xlu0 %v1451_v36  ;;  %1455 = vmin.xlane.f32.xlu1 %v1454_v24  ;;  %vm1370_vm12 = vcmp.le.f32.partialorder %v7106_v31, %v1335_v42  ;;  %vm1371_vm13 = vcmp.le.f32.partialorder %v7111_v2, %v1335_v42 }
 0x3e2   : > { %v1402_v45 = vsel %vm1370_vm12, %v6602_v3, 256.0  ;;  %v1403_v38 = vsel %vm1371_vm13, %v6604_v23, 256.0  ;;  %vm1372_vm14 = vcmp.le.f32.partialorder %v7121_v8, %v1338_v48  ;;  %vm1373_vm15 = vcmp.le.f32.partialorder %v7124_v19, %v1338_v48 }
 0x3e3   : > { %v1445_v12 = vmin.f32 %v1402_v45, %v1403_v38  ;;  %v1404_v0 = vsel %vm1372_vm14, %v6602_v3, 256.0  ;;  %v1405_v51 = vsel %vm1373_vm15, %v6604_v23, 256.0 }
 0x3e4   : > { %v1329_v14 = vpop.xlane.xlu0 %1328  ;;  %v1448_v43 = vmin.f32 %v1404_v0, %v1405_v51 }
 0x3e5   : > { %v1332_v39 = vpop.xlane.xlu1 %1331  ;;  %1446 = vmin.xlane.f32.xlu0 %v1445_v12  ;;  %vm1366_vm3 = vcmp.le.f32.partialorder %v7136_v52, %v1329_v14  ;;  %vm1367_vm2 = vcmp.le.f32.partialorder %v7141_v60, %v1329_v14 }
 0x3e6   : > { %1449 = vmin.xlane.f32.xlu1 %v1448_v43  ;;  %v1398_v7 = vsel %vm1366_vm3, %v6602_v3, 256.0  ;;  %v1399_v20 = vsel %vm1367_vm2, %v6604_v23, 256.0  ;;  %vm1368_vm4 = vcmp.le.f32.partialorder %v7151_v35, %v1332_v39  ;;  %vm1369_vm0 = vcmp.le.f32.partialorder %v7156_v21, %v1332_v39 }
 0x3e7   : > { %v1439_v47 = vmin.f32 %v1398_v7, %v1399_v20  ;;  %v1400_v4 = vsel %vm1368_vm4, %v6602_v3, 256.0  ;;  %v1401_v27 = vsel %vm1369_vm0, %v6604_v23, 256.0 }
 0x3e8   : > { %v1323_v41 = vpop.xlane.xlu0 %1322  ;;  %v1442_v62 = vmin.f32 %v1400_v4, %v1401_v27 }
 0x3e9   : > { %v1326_v63 = vpop.xlane.xlu1 %1325  ;;  %1440 = vmin.xlane.f32.xlu0 %v1439_v47  ;;  %vm1362_vm6 = vcmp.le.f32.partialorder %v7175_v11, %v1323_v41  ;;  %vm1363_vm1 = vcmp.le.f32.partialorder %v7181_v25, %v1323_v41 }
 0x3ea   : > { %1443 = vmin.xlane.f32.xlu1 %v1442_v62  ;;  %v1394_v13 = vsel %vm1362_vm6, %v6602_v3, 256.0  ;;  %v1395_v49 = vsel %vm1363_vm1, %v6604_v23, 256.0  ;;  %vm1364_vm5 = vcmp.le.f32.partialorder %v7191_v10, %v1326_v63  ;;  %vm1365_vm7 = vcmp.le.f32.partialorder %v7196_v26, %v1326_v63 }
 0x3eb   : > { %v1433_v30 = vmin.f32 %v1394_v13, %v1395_v49  ;;  %v1396_v5 = vsel %vm1364_vm5, %v6602_v3, 256.0  ;;  %v1397_v54 = vsel %vm1365_vm7, %v6604_v23, 256.0 }
 0x3ec   : > { %v1317_v33 = vpop.xlane.xlu0 %1316  ;;  %v1436_v17 = vmin.f32 %v1396_v5, %v1397_v54 }
 0x3ed   : > { %v1320_v55 = vpop.xlane.xlu1 %1319  ;;  %1434 = vmin.xlane.f32.xlu0 %v1433_v30  ;;  %vm1358_vm10 = vcmp.le.f32.partialorder %v7215_v37, %v1317_v33  ;;  %vm1359_vm11 = vcmp.le.f32.partialorder %v7221_v59, %v1317_v33 }
 0x3ee   : > { %1437 = vmin.xlane.f32.xlu1 %v1436_v17  ;;  %v1390_v36 = vsel %vm1358_vm10, %v6602_v3, 256.0  ;;  %v1391_v24 = vsel %vm1359_vm11, %v6604_v23, 256.0  ;;  %vm1360_vm12 = vcmp.le.f32.partialorder %v7231_v40, %v1320_v55  ;;  %vm1361_vm13 = vcmp.le.f32.partialorder %v7236_v32, %v1320_v55 }
 0x3ef   : > { %v1427_v42 = vmin.f32 %v1390_v36, %v1391_v24  ;;  %v1392_v48 = vsel %vm1360_vm12, %v6602_v3, 256.0  ;;  %v1393_v45 = vsel %vm1361_vm13, %v6604_v23, 256.0 }
 0x3f0   : > { %v1311_v38 = vpop.xlane.xlu0 %1310  ;;  %v1430_v12 = vmin.f32 %v1392_v48, %v1393_v45 }
 0x3f1   : > { %v1314_v0 = vpop.xlane.xlu1 %1313  ;;  %1428 = vmin.xlane.f32.xlu0 %v1427_v42  ;;  %vm1354_vm14 = vcmp.le.f32.partialorder %v7250_v15, %v1311_v38  ;;  %vm1355_vm15 = vcmp.le.f32.partialorder %v7255_v16, %v1311_v38 }
 0x3f2   : > { %1431 = vmin.xlane.f32.xlu1 %v1430_v12  ;;  %v1386_v51 = vsel %vm1354_vm14, %v6602_v3, 256.0  ;;  %v1387_v14 = vsel %vm1355_vm15, %v6604_v23, 256.0  ;;  %vm1356_vm3 = vcmp.le.f32.partialorder %v7265_v18, %v1314_v0  ;;  %vm1357_vm2 = vcmp.le.f32.partialorder %v7270_v53, %v1314_v0 }
 0x3f3   : > { %v1421_v43 = vmin.f32 %v1386_v51, %v1387_v14  ;;  %v1388_v39 = vsel %vm1356_vm3, %v6602_v3, 256.0  ;;  %v1389_v7 = vsel %vm1357_vm2, %v6604_v23, 256.0 }
 0x3f4   : > { %v1305_v20 = vpop.xlane.xlu0 %1304  ;;  %v1424_v47 = vmin.f32 %v1388_v39, %v1389_v7 }
 0x3f5   : > { %v1308_v4 = vpop.xlane.xlu1 %1307  ;;  %1422 = vmin.xlane.f32.xlu0 %v1421_v43  ;;  %vm1350_vm4 = vcmp.le.f32.partialorder %v7284_v22, %v1305_v20  ;;  %vm1351_vm0 = vcmp.le.f32.partialorder %v7289_v1, %v1305_v20 }
 0x3f6   : > { %1425 = vmin.xlane.f32.xlu1 %v1424_v47  ;;  %v1382_v27 = vsel %vm1350_vm4, %v6602_v3, 256.0  ;;  %v1383_v41 = vsel %vm1351_vm0, %v6604_v23, 256.0  ;;  %vm1352_vm6 = vcmp.le.f32.partialorder %v7299_v61, %v1308_v4  ;;  %vm1353_vm1 = vcmp.le.f32.partialorder %v7304_v50, %v1308_v4 }
 0x3f7   : > { %v1415_v62 = vmin.f32 %v1382_v27, %v1383_v41  ;;  %v1384_v44 = vsel %vm1352_vm6, %v6602_v3, 256.0  ;;  %v1385_v63 = vsel %vm1353_vm1, %v6604_v23, 256.0 }
 0x3f8   : > { %v1418_v13 = vmin.f32 %v1384_v44, %v1385_v63 }
 0x3f9   : > { %v1302_v49 = vpop.xlane.xlu1 %1301  ;;  %1416 = vmin.xlane.f32.xlu0 %v1415_v62 }
 0x3fa   : > { %1419 = vmin.xlane.f32.xlu1 %v1418_v13  ;;  %vm1348_vm8 = vcmp.le.f32.partialorder %v7321_v57, %v1302_v49  ;;  %vm1349_vm5 = vcmp.le.f32.partialorder %v7326_v58, %v1302_v49 }
 0x3fb   : > { %v1380_v30 = vsel %vm1348_vm8, %v6602_v3, 256.0  ;;  %v1381_v5 = vsel %vm1349_vm5, %v6604_v23, 256.0 }
 0x3fc   : > { %v1412_v54 = vmin.f32 %v1380_v30, %v1381_v5 }
 0x3fe   : > { %1413 = vmin.xlane.f32.xlu1 %v1412_v54 }
 0x466   : > { %v1459_v33 = vpop.xlane.xlu0 %1458 }
 0x467   : > { %vm1490_vm7 = vcmp.eq.f32.partialorder %v6602_v3, %v1459_v33  ;;  %vm1491_vm9 = vcmp.eq.f32.partialorder %v6604_v23, %v1459_v33 }
 0x468   : > { %5561 = vmatprep.subr.msk.mxu0 %vm1491_vm9, %v6191_v28  ;;  %v7447_v17 = vsel %vm1490_vm7, inf, %v7066_v56  ;;  %v7450_v55 = vsel %vm1491_vm9, inf, %v7069_v9 }
 0x469   : > { %5562 = vmatpush1.xpose.msk.msra.mxu0 %vm1490_vm7, %v6191_v28  ;;  %v1665_v36 = vmin.f32 %v7447_v17, %v7450_v55 }
 0x46a   : > { %v1453_v24 = vpop.xlane.xlu0 %1452  ;;  %v1456_v42 = vpop.xlane.xlu1 %1455 }
 0x46b   : > { %vm1486_vm10 = vcmp.eq.f32.partialorder %v6602_v3, %v1453_v24  ;;  %vm1488_vm11 = vcmp.eq.f32.partialorder %v6602_v3, %v1456_v42  ;;  %1666 = vmin.xlane.f32.xlu0 %v1665_v36  ;;  %vm1489_vm12 = vcmp.eq.f32.partialorder %v6604_v23, %v1456_v42  ;;  %vm1487_vm13 = vcmp.eq.f32.partialorder %v6604_v23, %v1453_v24 }
 0x46c   : > { %v7462_v56 = vsel %vm1486_vm10, inf, %v7082_v34  ;;  %5563 = vmatprep.subr.msk.mxu0 %vm1489_vm12, %v6191_v28  ;;  %v7466_v9 = vsel %vm1487_vm13, inf, %v7085_v46  ;;  %v7469_v48 = vsel %vm1488_vm11, inf, %v7088_v29  ;;  %v7472_v45 = vsel %vm1489_vm12, inf, %v7091_v6 }
 0x46d   : > { %5564 = vmatpush1.xpose.msk.msra.mxu0 %vm1488_vm11, %v6191_v28  ;;  %v1659_v38 = vmin.f32 %v7462_v56, %v7466_v9  ;;  %v1662_v34 = vmin.f32 %v7469_v48, %v7472_v45 }
 0x46e   : > { %v1447_v12 = vpop.xlane.xlu0 %1446  ;;  %5565 = vmatprep.subr.msk.mxu0 %vm1487_vm13, %v6191_v28 }
 0x46f   : > { %vm1482_vm14 = vcmp.eq.f32.partialorder %v6602_v3, %v1447_v12  ;;  %vm1483_vm15 = vcmp.eq.f32.partialorder %v6604_v23, %v1447_v12  ;;  %v1450_v46 = vpop.xlane.xlu1 %1449  ;;  %1660 = vmin.xlane.f32.xlu0 %v1659_v38  ;;  %1663 = vmin.xlane.f32.xlu1 %v1662_v34 }
 0x470   : > { %v7485_v29 = vsel %vm1482_vm14, inf, %v7106_v31  ;;  %v7490_v6 = vsel %vm1483_vm15, inf, %v7111_v2  ;;  %vm1484_vm3 = vcmp.eq.f32.partialorder %v6602_v3, %v1450_v46  ;;  %vm1485_vm2 = vcmp.eq.f32.partialorder %v6604_v23, %v1450_v46 }
 0x471   : > { %v7497_v0 = vsel %vm1484_vm3, inf, %v7121_v8  ;;  %5566 = vmatpush1.xpose.msk.msra.mxu0 %vm1486_vm10, %v6191_v28  ;;  %v7503_v31 = vsel %vm1485_vm2, inf, %v7124_v19  ;;  %v1653_v2 = vmin.f32 %v7485_v29, %v7490_v6 }
 0x472   : > { %v7507_v51 = vpop.xlane.xlu0 %1440  ;;  %5567 = vmatprep.subr.msk.mxu0 %vm1485_vm2, %v6191_v28  ;;  %v1656_v14 = vmin.f32 %v7497_v0, %v7503_v31 }
 0x473   : > { %vm1478_vm4 = vcmp.eq.f32.partialorder %v6602_v3, %v7507_v51  ;;  %vm1479_vm0 = vcmp.eq.f32.partialorder %v6604_v23, %v7507_v51  ;;  %v1444_v8 = vpop.xlane.xlu1 %1443  ;;  %1654 = vmin.xlane.f32.xlu0 %v1653_v2 }
 0x474   : > { %v7520_v19 = vsel %vm1478_vm4, inf, %v7136_v52  ;;  %v7526_v43 = vsel %vm1479_vm0, inf, %v7141_v60  ;;  %vm1480_vm6 = vcmp.eq.f32.partialorder %v6602_v3, %v1444_v8  ;;  %vm1481_vm1 = vcmp.eq.f32.partialorder %v6604_v23, %v1444_v8  ;;  %1657 = vmin.xlane.f32.xlu1 %v1656_v14 }
 0x475   : > { %v7533_v39 = vsel %vm1480_vm6, inf, %v7151_v35  ;;  %v7538_v52 = vsel %vm1481_vm1, inf, %v7156_v21  ;;  %5568 = vmatpush1.xpose.msk.msra.mxu0 %vm1484_vm3, %v6191_v28  ;;  %v1647_v60 = vmin.f32 %v7520_v19, %v7526_v43 }
 0x476   : > { %v7545_v7 = vpop.xlane.xlu0 %1434  ;;  %5569 = vmatprep.subr.msk.mxu0 %vm1483_vm15, %v6191_v28  ;;  %v1650_v35 = vmin.f32 %v7533_v39, %v7538_v52 }
 0x477   : > { %vm1474_vm8 = vcmp.eq.f32.partialorder %v6602_v3, %v7545_v7  ;;  %vm1475_vm5 = vcmp.eq.f32.partialorder %v6604_v23, %v7545_v7  ;;  %v1438_v21 = vpop.xlane.xlu1 %1437  ;;  %1648 = vmin.xlane.f32.xlu0 %v1647_v60 }
 0x478   : > { %v7560_v20 = vsel %vm1474_vm8, inf, %v7175_v11  ;;  %v7566_v47 = vsel %vm1475_vm5, inf, %v7181_v25  ;;  %vm1476_vm7 = vcmp.eq.f32.partialorder %v6602_v3, %v1438_v21  ;;  %vm1477_vm9 = vcmp.eq.f32.partialorder %v6604_v23, %v1438_v21  ;;  %1651 = vmin.xlane.f32.xlu1 %v1650_v35 }
 0x479   : > { %v7573_v4 = vsel %vm1476_vm7, inf, %v7191_v10  ;;  %v7578_v11 = vsel %vm1477_vm9, inf, %v7196_v26  ;;  %5570 = vmatpush1.xpose.msk.msra.mxu0 %vm1482_vm14, %v6191_v28  ;;  %v1641_v25 = vmin.f32 %v7560_v20, %v7566_v47 }
 0x47a   : > { %v7585_v27 = vpop.xlane.xlu0 %1428  ;;  %5571 = vmatprep.subr.msk.mxu0 %vm1481_vm1, %v6191_v28  ;;  %v1644_v10 = vmin.f32 %v7573_v4, %v7578_v11 }
 0x47b   : > { %vm1470_vm10 = vcmp.eq.f32.partialorder %v6602_v3, %v7585_v27  ;;  %vm1471_vm11 = vcmp.eq.f32.partialorder %v6604_v23, %v7585_v27  ;;  %v1432_v26 = vpop.xlane.xlu1 %1431  ;;  %1642 = vmin.xlane.f32.xlu0 %v1641_v25 }
 0x47c   : > { %v7600_v41 = vsel %vm1470_vm10, inf, %v7215_v37  ;;  %v7606_v62 = vsel %vm1471_vm11, inf, %v7221_v59  ;;  %vm1472_vm12 = vcmp.eq.f32.partialorder %v6602_v3, %v1432_v26  ;;  %vm1473_vm13 = vcmp.eq.f32.partialorder %v6604_v23, %v1432_v26  ;;  %1645 = vmin.xlane.f32.xlu1 %v1644_v10 }
 0x47d   : > { %v7613_v44 = vsel %vm1472_vm12, inf, %v7231_v40  ;;  %v7618_v37 = vsel %vm1473_vm13, inf, %v7236_v32  ;;  %5572 = vmatpush1.xpose.msk.msra.mxu0 %vm1480_vm6, %v6191_v28  ;;  %v1635_v59 = vmin.f32 %v7600_v41, %v7606_v62 }
 0x47e   : > { %v1423_v63 = vpop.xlane.xlu0 %1422  ;;  %5573 = vmatprep.subr.msk.mxu0 %vm1479_vm0, %v6191_v28  ;;  %v1638_v40 = vmin.f32 %v7613_v44, %v7618_v37 }
 0x47f   : > { %vm1466_vm14 = vcmp.eq.f32.partialorder %v6602_v3, %v1423_v63  ;;  %vm1467_vm15 = vcmp.eq.f32.partialorder %v6604_v23, %v1423_v63  ;;  %v1426_v32 = vpop.xlane.xlu1 %1425  ;;  %1636 = vmin.xlane.f32.xlu0 %v1635_v59 }
 0x480   : > { %v7636_v13 = vsel %vm1466_vm14, inf, %v7250_v15  ;;  %v7641_v49 = vsel %vm1467_vm15, inf, %v7255_v16  ;;  %vm1468_vm3 = vcmp.eq.f32.partialorder %v6602_v3, %v1426_v32  ;;  %vm1469_vm2 = vcmp.eq.f32.partialorder %v6604_v23, %v1426_v32  ;;  %1639 = vmin.xlane.f32.xlu1 %v1638_v40 }
 0x481   : > { %v7648_v30 = vsel %vm1468_vm3, inf, %v7265_v18  ;;  %v7653_v15 = vsel %vm1469_vm2, inf, %v7270_v53  ;;  %5574 = vmatpush1.xpose.msk.msra.mxu0 %vm1478_vm4, %v6191_v28  ;;  %v1629_v16 = vmin.f32 %v7636_v13, %v7641_v49 }
 0x482   : > { %v1417_v5 = vpop.xlane.xlu0 %1416  ;;  %5575 = vmatprep.subr.msk.mxu0 %vm1477_vm9, %v6191_v28  ;;  %v1632_v18 = vmin.f32 %v7648_v30, %v7653_v15 }
 0x483   : > { %vm9897_vm0 = vcmp.eq.f32.partialorder %v6602_v3, %v1417_v5  ;;  %vm1463_vm6 = vcmp.eq.f32.partialorder %v6604_v23, %v1417_v5  ;;  %v1420_v53 = vpop.xlane.xlu1 %1419  ;;  %1630 = vmin.xlane.f32.xlu0 %v1629_v16 }
 0x484   : > { %v7671_v54 = vsel %vm9897_vm0, inf, %v7284_v22  ;;  %v7676_v33 = vsel %vm1463_vm6, inf, %v7289_v1  ;;  %vm1464_vm4 = vcmp.eq.f32.partialorder %v6602_v3, %v1420_v53  ;;  %vm1465_vm1 = vcmp.eq.f32.partialorder %v6604_v23, %v1420_v53  ;;  %1633 = vmin.xlane.f32.xlu1 %v1632_v18 }
 0x485   : > { %v7683_v36 = vsel %vm1464_vm4, inf, %v7299_v61  ;;  %v7688_v22 = vsel %vm1465_vm1, inf, %v7304_v50  ;;  %5576 = vmatpush1.xpose.msk.msra.mxu0 %vm1476_vm7, %v6191_v28  ;;  %v1623_v1 = vmin.f32 %v7671_v54, %v7676_v33 }
 0x486   : > { %5577 = vmatprep.subr.msk.mxu0 %vm1475_vm5, %v6191_v28  ;;  %v1626_v61 = vmin.f32 %v7683_v36, %v7688_v22 }
 0x487   : > { %v1414_v24 = vpop.xlane.xlu1 %1413  ;;  %1624 = vmin.xlane.f32.xlu0 %v1623_v1 }
 0x488   : > { %vm1460_vm9 = vcmp.eq.f32.partialorder %v6602_v3, %v1414_v24  ;;  %vm1461_vm0 = vcmp.eq.f32.partialorder %v6604_v23, %v1414_v24  ;;  %1627 = vmin.xlane.f32.xlu1 %v1626_v61 }
 0x489   : > { %v7706_v50 = vsel %vm1460_vm9, inf, %v7321_v57  ;;  %v7711_v42 = vsel %vm1461_vm0, inf, %v7326_v58  ;;  %5578 = vmatpush1.xpose.msk.msra.mxu0 %vm1474_vm8, %v6191_v28  ;;  %vm9905_vm8 = vcmp.eq.f32.partialorder %v6602_v3, %v1417_v5 }
 0x48a   : > { %5579 = vmatprep.subr.msk.mxu0 %vm1473_vm13, %v6191_v28  ;;  %v1620_v38 = vmin.f32 %v7706_v50, %v7711_v42 }
 0x48c   : > { %1621 = vmin.xlane.f32.xlu1 %v1620_v38 }
 0x48d   : > { %5580 = vmatpush1.xpose.msk.msra.mxu0 %vm1472_vm12, %v6191_v28 }
 0x48e   : > { %5581 = vmatprep.subr.msk.mxu0 %vm1471_vm11, %v6191_v28 }
 0x491   : > { %5582 = vmatpush1.xpose.msk.msra.mxu0 %vm1470_vm10, %v6191_v28 }
 0x492   : > { %5583 = vmatprep.subr.msk.mxu0 %vm1469_vm2, %v6191_v28 }
 0x495   : > { %5584 = vmatpush1.xpose.msk.msra.mxu0 %vm1468_vm3, %v6191_v28 }
 0x496   : > { %5585 = vmatprep.subr.msk.mxu0 %vm1467_vm15, %v6191_v28 }
 0x499   : > { %5586 = vmatpush1.xpose.msk.msra.mxu0 %vm1466_vm14, %v6191_v28 }
 0x49a   : > { %5587 = vmatprep.subr.msk.mxu0 %vm1465_vm1, %v6191_v28 }
 0x49d   : > { %5588 = vmatpush1.xpose.msk.msra.mxu0 %vm1464_vm4, %v6191_v28 }
 0x49e   : > { %5589 = vmatprep.subr.msk.mxu0 %vm1463_vm6, %v6191_v28 }
 0x4a1   : > { %5590 = vmatpush1.xpose.msk.msra.mxu0 %vm9905_vm8, %v6191_v28 }
 0x4a2   : > { %5591 = vmatprep.subr.msk.mxu0 %vm1461_vm0, %v6191_v28 }
 0x4a5   : > { %5592 = vmatpush1.xpose.msk.msra.mxu0 %vm1460_vm9, %v6191_v28 }
 0x4f4   : > { %v1667_v57 = vpop.xlane.xlu0 %1666 }
 0x4f5   : > { %vm1698_vm5 = vcmp.le.f32.partialorder %v7447_v17, %v1667_v57  ;;  %vm1699_vm7 = vcmp.le.f32.partialorder %v7450_v55, %v1667_v57 }
 0x4f6   : > { %v1730_v58 = vsel %vm1698_vm5, %v6602_v3, 256.0  ;;  %v1731_v34 = vsel %vm1699_vm7, %v6604_v23, 256.0 }
 0x4f7   : > { %v1777_v12 = vmin.f32 %v1730_v58, %v1731_v34 }
 0x4f8   : > { %v1661_v46 = vpop.xlane.xlu0 %1660  ;;  %v1664_v2 = vpop.xlane.xlu1 %1663 }
 0x4f9   : > { %vm1694_vm10 = vcmp.le.f32.partialorder %v7462_v56, %v1661_v46  ;;  %vm1695_vm11 = vcmp.le.f32.partialorder %v7466_v9, %v1661_v46  ;;  %vm1696_vm12 = vcmp.le.f32.partialorder %v7469_v48, %v1664_v2  ;;  %vm1697_vm13 = vcmp.le.f32.partialorder %v7472_v45, %v1664_v2  ;;  %1778 = vmin.xlane.f32.xlu0 %v1777_v12 }
 0x4fa   : > { %v1726_v51 = vsel %vm1694_vm10, %v6602_v3, 256.0  ;;  %v1727_v14 = vsel %vm1695_vm11, %v6604_v23, 256.0  ;;  %v1728_v8 = vsel %vm1696_vm12, %v6602_v3, 256.0  ;;  %v1729_v60 = vsel %vm1697_vm13, %v6604_v23, 256.0 }
 0x4fb   : > { %v1771_v7 = vmin.f32 %v1726_v51, %v1727_v14  ;;  %v1774_v35 = vmin.f32 %v1728_v8, %v1729_v60 }
 0x4fc   : > { %v1655_v21 = vpop.xlane.xlu0 %1654 }
 0x4fd   : > { %vm1690_vm14 = vcmp.le.f32.partialorder %v7485_v29, %v1655_v21  ;;  %vm1691_vm15 = vcmp.le.f32.partialorder %v7490_v6, %v1655_v21  ;;  %v1658_v25 = vpop.xlane.xlu1 %1657  ;;  %1772 = vmin.xlane.f32.xlu0 %v1771_v7  ;;  %1775 = vmin.xlane.f32.xlu1 %v1774_v35 }
 0x4fe   : > { %v1722_v27 = vsel %vm1690_vm14, %v6602_v3, 256.0  ;;  %v1723_v10 = vsel %vm1691_vm15, %v6604_v23, 256.0  ;;  %vm1692_vm3 = vcmp.le.f32.partialorder %v7497_v0, %v1658_v25  ;;  %vm1693_vm2 = vcmp.le.f32.partialorder %v7503_v31, %v1658_v25 }
 0x4ff   : > { %v1724_v26 = vsel %vm1692_vm3, %v6602_v3, 256.0  ;;  %v1725_v59 = vsel %vm1693_vm2, %v6604_v23, 256.0  ;;  %v1765_v63 = vmin.f32 %v1722_v27, %v1723_v10 }
 0x500   : > { %v1649_v40 = vpop.xlane.xlu0 %1648  ;;  %v1768_v32 = vmin.f32 %v1724_v26, %v1725_v59 }
 0x501   : > { %vm1686_vm0 = vcmp.le.f32.partialorder %v7520_v19, %v1649_v40  ;;  %vm1687_vm6 = vcmp.le.f32.partialorder %v7526_v43, %v1649_v40  ;;  %v1652_v16 = vpop.xlane.xlu1 %1651  ;;  %1766 = vmin.xlane.f32.xlu0 %v1765_v63 }
 0x502   : > { %v1718_v5 = vsel %vm1686_vm0, %v6602_v3, 256.0  ;;  %v1719_v18 = vsel %vm1687_vm6, %v6604_v23, 256.0  ;;  %vm1688_vm4 = vcmp.le.f32.partialorder %v7533_v39, %v1652_v16  ;;  %vm1689_vm1 = vcmp.le.f32.partialorder %v7538_v52, %v1652_v16  ;;  %1769 = vmin.xlane.f32.xlu1 %v1768_v32 }
 0x503   : > { %v1720_v53 = vsel %vm1688_vm4, %v6602_v3, 256.0  ;;  %v1721_v1 = vsel %vm1689_vm1, %v6604_v23, 256.0  ;;  %v1759_v61 = vmin.f32 %v1718_v5, %v1719_v18 }
 0x504   : > { %v1643_v24 = vpop.xlane.xlu0 %1642  ;;  %v1762_v38 = vmin.f32 %v1720_v53, %v1721_v1 }
 0x505   : > { %vm1682_vm9 = vcmp.le.f32.partialorder %v7560_v20, %v1643_v24  ;;  %vm1683_vm8 = vcmp.le.f32.partialorder %v7566_v47, %v1643_v24  ;;  %v1646_v57 = vpop.xlane.xlu1 %1645  ;;  %1760 = vmin.xlane.f32.xlu0 %v1759_v61 }
 0x506   : > { %v1714_v58 = vsel %vm1682_vm9, %v6602_v3, 256.0  ;;  %v1715_v34 = vsel %vm1683_vm8, %v6604_v23, 256.0  ;;  %vm1684_vm5 = vcmp.le.f32.partialorder %v7573_v4, %v1646_v57  ;;  %vm1685_vm7 = vcmp.le.f32.partialorder %v7578_v11, %v1646_v57  ;;  %1763 = vmin.xlane.f32.xlu1 %v1762_v38 }
 0x507   : > { %v1716_v12 = vsel %vm1684_vm5, %v6602_v3, 256.0  ;;  %v1717_v46 = vsel %vm1685_vm7, %v6604_v23, 256.0  ;;  %v1753_v2 = vmin.f32 %v1714_v58, %v1715_v34 }
 0x508   : > { %v1637_v51 = vpop.xlane.xlu0 %1636  ;;  %v1756_v14 = vmin.f32 %v1716_v12, %v1717_v46 }
 0x509   : > { %vm1678_vm10 = vcmp.le.f32.partialorder %v7600_v41, %v1637_v51  ;;  %vm1679_vm11 = vcmp.le.f32.partialorder %v7606_v62, %v1637_v51  ;;  %v1640_v8 = vpop.xlane.xlu1 %1639  ;;  %1754 = vmin.xlane.f32.xlu0 %v1753_v2 }
 0x50a   : > { %v1710_v60 = vsel %vm1678_vm10, %v6602_v3, 256.0  ;;  %v1711_v7 = vsel %vm1679_vm11, %v6604_v23, 256.0  ;;  %vm1680_vm12 = vcmp.le.f32.partialorder %v7613_v44, %v1640_v8  ;;  %vm1681_vm13 = vcmp.le.f32.partialorder %v7618_v37, %v1640_v8  ;;  %1757 = vmin.xlane.f32.xlu1 %v1756_v14 }
 0x50b   : > { %v1712_v35 = vsel %vm1680_vm12, %v6602_v3, 256.0  ;;  %v1713_v21 = vsel %vm1681_vm13, %v6604_v23, 256.0  ;;  %v1747_v25 = vmin.f32 %v1710_v60, %v1711_v7 }
 0x50c   : > { %v1631_v27 = vpop.xlane.xlu0 %1630  ;;  %v1750_v10 = vmin.f32 %v1712_v35, %v1713_v21 }
 0x50d   : > { %vm1674_vm14 = vcmp.le.f32.partialorder %v7636_v13, %v1631_v27  ;;  %vm1675_vm15 = vcmp.le.f32.partialorder %v7641_v49, %v1631_v27  ;;  %v1634_v26 = vpop.xlane.xlu1 %1633  ;;  %1748 = vmin.xlane.f32.xlu0 %v1747_v25 }
 0x50e   : > { %v1706_v59 = vsel %vm1674_vm14, %v6602_v3, 256.0  ;;  %v1707_v63 = vsel %vm1675_vm15, %v6604_v23, 256.0  ;;  %vm1676_vm3 = vcmp.le.f32.partialorder %v7648_v30, %v1634_v26  ;;  %vm1677_vm2 = vcmp.le.f32.partialorder %v7653_v15, %v1634_v26  ;;  %1751 = vmin.xlane.f32.xlu1 %v1750_v10 }
 0x50f   : > { %v1708_v40 = vsel %vm1676_vm3, %v6602_v3, 256.0  ;;  %v1709_v32 = vsel %vm1677_vm2, %v6604_v23, 256.0  ;;  %v1741_v16 = vmin.f32 %v1706_v59, %v1707_v63 }
 0x510   : > { %v1625_v5 = vpop.xlane.xlu0 %1624  ;;  %v1744_v18 = vmin.f32 %v1708_v40, %v1709_v32 }
 0x511   : > { %vm1670_vm0 = vcmp.le.f32.partialorder %v7671_v54, %v1625_v5  ;;  %vm1671_vm6 = vcmp.le.f32.partialorder %v7676_v33, %v1625_v5  ;;  %v1628_v53 = vpop.xlane.xlu1 %1627  ;;  %1742 = vmin.xlane.f32.xlu0 %v1741_v16 }
 0x512   : > { %v1702_v1 = vsel %vm1670_vm0, %v6602_v3, 256.0  ;;  %v1703_v61 = vsel %vm1671_vm6, %v6604_v23, 256.0  ;;  %vm1672_vm4 = vcmp.le.f32.partialorder %v7683_v36, %v1628_v53  ;;  %vm1673_vm1 = vcmp.le.f32.partialorder %v7688_v22, %v1628_v53  ;;  %1745 = vmin.xlane.f32.xlu1 %v1744_v18 }
 0x513   : > { %v1704_v24 = vsel %vm1672_vm4, %v6602_v3, 256.0  ;;  %v1705_v38 = vsel %vm1673_vm1, %v6604_v23, 256.0  ;;  %v1735_v57 = vmin.f32 %v1702_v1, %v1703_v61 }
 0x514   : > { %v1738_v58 = vmin.f32 %v1704_v24, %v1705_v38 }
 0x515   : > { %v1622_v34 = vpop.xlane.xlu1 %1621  ;;  %1736 = vmin.xlane.f32.xlu0 %v1735_v57 }
 0x516   : > { %vm1668_vm9 = vcmp.le.f32.partialorder %v7706_v50, %v1622_v34  ;;  %vm1669_vm8 = vcmp.le.f32.partialorder %v7711_v42, %v1622_v34  ;;  %1739 = vmin.xlane.f32.xlu1 %v1738_v58 }
 0x517   : > { %v1700_v12 = vsel %vm1668_vm9, %v6602_v3, 256.0  ;;  %v1701_v46 = vsel %vm1669_vm8, %v6604_v23, 256.0 }
 0x518   : > { %v1732_v2 = vmin.f32 %v1700_v12, %v1701_v46 }
 0x51a   : > { %1733 = vmin.xlane.f32.xlu1 %v1732_v2 }
 0x582   : > { %v1779_v51 = vpop.xlane.xlu0 %1778 }
 0x583   : > { %vm1810_vm5 = vcmp.eq.f32.partialorder %v6602_v3, %v1779_v51  ;;  %vm1811_vm7 = vcmp.eq.f32.partialorder %v6604_v23, %v1779_v51 }
 0x584   : > { %v7830_v14 = vsel %vm1810_vm5, inf, %v7447_v17  ;;  %v7833_v8 = vsel %vm1811_vm7, inf, %v7450_v55  ;;  %5593 = vmatprep.subr.msk.mxu0 %vm1811_vm7, %v6191_v28 }
 0x585   : > { %5594 = vmatpush2.xpose.msk.msra.mxu0 %vm1810_vm5, %v6191_v28  ;;  %v1985_v60 = vmin.f32 %v7830_v14, %v7833_v8 }
 0x586   : > { %v1773_v7 = vpop.xlane.xlu0 %1772  ;;  %v1776_v35 = vpop.xlane.xlu1 %1775 }
 0x587   : > { %vm1806_vm10 = vcmp.eq.f32.partialorder %v6602_v3, %v1773_v7  ;;  %vm1808_vm11 = vcmp.eq.f32.partialorder %v6602_v3, %v1776_v35  ;;  %1986 = vmin.xlane.f32.xlu0 %v1985_v60  ;;  %vm1809_vm12 = vcmp.eq.f32.partialorder %v6604_v23, %v1776_v35  ;;  %vm1807_vm13 = vcmp.eq.f32.partialorder %v6604_v23, %v1773_v7 }
 0x588   : > { %v7846_v17 = vsel %vm1806_vm10, inf, %v7462_v56  ;;  %v7849_v55 = vsel %vm1808_vm11, inf, %v7469_v48  ;;  %v7852_v21 = vsel %vm1809_vm12, inf, %v7472_v45  ;;  %5595 = vmatprep.subr.msk.mxu0 %vm1809_vm12, %v6191_v28  ;;  %v7856_v25 = vsel %vm1807_vm13, inf, %v7466_v9 }
 0x589   : > { %5596 = vmatpush2.xpose.msk.msra.mxu0 %vm1808_vm11, %v6191_v28  ;;  %v1979_v27 = vmin.f32 %v7846_v17, %v7856_v25  ;;  %v1982_v56 = vmin.f32 %v7849_v55, %v7852_v21 }
 0x58a   : > { %v1767_v10 = vpop.xlane.xlu0 %1766  ;;  %5597 = vmatprep.subr.msk.mxu0 %vm1807_vm13, %v6191_v28 }
 0x58b   : > { %vm1802_vm14 = vcmp.eq.f32.partialorder %v6602_v3, %v1767_v10  ;;  %vm1803_vm15 = vcmp.eq.f32.partialorder %v6604_v23, %v1767_v10  ;;  %v1770_v48 = vpop.xlane.xlu1 %1769  ;;  %1980 = vmin.xlane.f32.xlu0 %v1979_v27  ;;  %1983 = vmin.xlane.f32.xlu1 %v1982_v56 }
 0x58c   : > { %v7869_v9 = vsel %vm1802_vm14, inf, %v7485_v29  ;;  %v7874_v45 = vsel %vm1803_vm15, inf, %v7490_v6  ;;  %vm1804_vm3 = vcmp.eq.f32.partialorder %v6602_v3, %v1770_v48  ;;  %vm1805_vm2 = vcmp.eq.f32.partialorder %v6604_v23, %v1770_v48 }
 0x58d   : > { %v7881_v26 = vsel %vm1804_vm3, inf, %v7497_v0  ;;  %5598 = vmatpush2.xpose.msk.msra.mxu0 %vm1806_vm10, %v6191_v28  ;;  %v7887_v29 = vsel %vm1805_vm2, inf, %v7503_v31  ;;  %v1973_v6 = vmin.f32 %v7869_v9, %v7874_v45 }
 0x58e   : > { %v7891_v59 = vpop.xlane.xlu0 %1760  ;;  %5599 = vmatprep.subr.msk.mxu0 %vm1805_vm2, %v6191_v28  ;;  %v1976_v63 = vmin.f32 %v7881_v26, %v7887_v29 }
 0x58f   : > { %vm1798_vm0 = vcmp.eq.f32.partialorder %v6602_v3, %v7891_v59  ;;  %vm1799_vm6 = vcmp.eq.f32.partialorder %v6604_v23, %v7891_v59  ;;  %v1764_v0 = vpop.xlane.xlu1 %1763  ;;  %1974 = vmin.xlane.f32.xlu0 %v1973_v6 }
 0x590   : > { %v7904_v31 = vsel %vm1798_vm0, inf, %v7520_v19  ;;  %v7910_v40 = vsel %vm1799_vm6, inf, %v7526_v43  ;;  %vm1800_vm4 = vcmp.eq.f32.partialorder %v6602_v3, %v1764_v0  ;;  %vm1801_vm1 = vcmp.eq.f32.partialorder %v6604_v23, %v1764_v0  ;;  %1977 = vmin.xlane.f32.xlu1 %v1976_v63 }
 0x591   : > { %v7917_v32 = vsel %vm1800_vm4, inf, %v7533_v39  ;;  %v7922_v19 = vsel %vm1801_vm1, inf, %v7538_v52  ;;  %5600 = vmatpush2.xpose.msk.msra.mxu0 %vm1804_vm3, %v6191_v28  ;;  %v1967_v43 = vmin.f32 %v7904_v31, %v7910_v40 }
 0x592   : > { %v7929_v16 = vpop.xlane.xlu0 %1754  ;;  %5601 = vmatprep.subr.msk.mxu0 %vm1803_vm15, %v6191_v28  ;;  %v1970_v39 = vmin.f32 %v7917_v32, %v7922_v19 }
 0x593   : > { %vm1794_vm9 = vcmp.eq.f32.partialorder %v6602_v3, %v7929_v16  ;;  %vm1795_vm8 = vcmp.eq.f32.partialorder %v6604_v23, %v7929_v16  ;;  %v1758_v52 = vpop.xlane.xlu1 %1757  ;;  %1968 = vmin.xlane.f32.xlu0 %v1967_v43 }
 0x594   : > { %v7944_v5 = vsel %vm1794_vm9, inf, %v7560_v20  ;;  %v7950_v18 = vsel %vm1795_vm8, inf, %v7566_v47  ;;  %vm1796_vm5 = vcmp.eq.f32.partialorder %v6602_v3, %v1758_v52  ;;  %vm1797_vm7 = vcmp.eq.f32.partialorder %v6604_v23, %v1758_v52  ;;  %1971 = vmin.xlane.f32.xlu1 %v1970_v39 }
 0x595   : > { %v7957_v53 = vsel %vm1796_vm5, inf, %v7573_v4  ;;  %v7962_v20 = vsel %vm1797_vm7, inf, %v7578_v11  ;;  %5602 = vmatpush2.xpose.msk.msra.mxu0 %vm1802_vm14, %v6191_v28  ;;  %v1961_v47 = vmin.f32 %v7944_v5, %v7950_v18 }
 0x596   : > { %v7969_v1 = vpop.xlane.xlu0 %1748  ;;  %5603 = vmatprep.subr.msk.mxu0 %vm1801_vm1, %v6191_v28  ;;  %v1964_v4 = vmin.f32 %v7957_v53, %v7962_v20 }
 0x597   : > { %vm1790_vm10 = vcmp.eq.f32.partialorder %v6602_v3, %v7969_v1  ;;  %vm1791_vm11 = vcmp.eq.f32.partialorder %v6604_v23, %v7969_v1  ;;  %v1752_v11 = vpop.xlane.xlu1 %1751  ;;  %1962 = vmin.xlane.f32.xlu0 %v1961_v47 }
 0x598   : > { %v7984_v61 = vsel %vm1790_vm10, inf, %v7600_v41  ;;  %v7990_v24 = vsel %vm1791_vm11, inf, %v7606_v62  ;;  %vm1792_vm12 = vcmp.eq.f32.partialorder %v6602_v3, %v1752_v11  ;;  %vm1793_vm13 = vcmp.eq.f32.partialorder %v6604_v23, %v1752_v11  ;;  %1965 = vmin.xlane.f32.xlu1 %v1964_v4 }
 0x599   : > { %v7997_v38 = vsel %vm1792_vm12, inf, %v7613_v44  ;;  %v8002_v41 = vsel %vm1793_vm13, inf, %v7618_v37  ;;  %5604 = vmatpush2.xpose.msk.msra.mxu0 %vm1800_vm4, %v6191_v28  ;;  %v1955_v62 = vmin.f32 %v7984_v61, %v7990_v24 }
 0x59a   : > { %v1743_v57 = vpop.xlane.xlu0 %1742  ;;  %5605 = vmatprep.subr.msk.mxu0 %vm1799_vm6, %v6191_v28  ;;  %v1958_v44 = vmin.f32 %v7997_v38, %v8002_v41 }
 0x59b   : > { %vm1786_vm14 = vcmp.eq.f32.partialorder %v6602_v3, %v1743_v57  ;;  %vm1787_vm15 = vcmp.eq.f32.partialorder %v6604_v23, %v1743_v57  ;;  %v1746_v37 = vpop.xlane.xlu1 %1745  ;;  %1956 = vmin.xlane.f32.xlu0 %v1955_v62 }
 0x59c   : > { %v8020_v58 = vsel %vm1786_vm14, inf, %v7636_v13  ;;  %v8025_v34 = vsel %vm1787_vm15, inf, %v7641_v49  ;;  %vm1788_vm3 = vcmp.eq.f32.partialorder %v6602_v3, %v1746_v37  ;;  %vm1789_vm2 = vcmp.eq.f32.partialorder %v6604_v23, %v1746_v37  ;;  %1959 = vmin.xlane.f32.xlu1 %v1958_v44 }
 0x59d   : > { %v8032_v12 = vsel %vm1788_vm3, inf, %v7648_v30  ;;  %v8037_v13 = vsel %vm1789_vm2, inf, %v7653_v15  ;;  %5606 = vmatpush2.xpose.msk.msra.mxu0 %vm1798_vm0, %v6191_v28  ;;  %v1949_v49 = vmin.f32 %v8020_v58, %v8025_v34 }
 0x59e   : > { %v1737_v46 = vpop.xlane.xlu0 %1736  ;;  %5607 = vmatprep.subr.msk.mxu0 %vm1797_vm7, %v6191_v28  ;;  %v1952_v30 = vmin.f32 %v8032_v12, %v8037_v13 }
 0x59f   : > { %vm9898_vm6 = vcmp.eq.f32.partialorder %v6602_v3, %v1737_v46  ;;  %vm1783_vm4 = vcmp.eq.f32.partialorder %v6604_v23, %v1737_v46  ;;  %v1740_v15 = vpop.xlane.xlu1 %1739  ;;  %1950 = vmin.xlane.f32.xlu0 %v1949_v49 }
 0x5a0   : > { %v8055_v2 = vsel %vm9898_vm6, inf, %v7671_v54  ;;  %v8060_v51 = vsel %vm1783_vm4, inf, %v7676_v33  ;;  %vm1784_vm0 = vcmp.eq.f32.partialorder %v6602_v3, %v1740_v15  ;;  %vm1785_vm1 = vcmp.eq.f32.partialorder %v6604_v23, %v1740_v15  ;;  %1953 = vmin.xlane.f32.xlu1 %v1952_v30 }
 0x5a1   : > { %v8067_v60 = vsel %vm1784_vm0, inf, %v7683_v36  ;;  %v8072_v54 = vsel %vm1785_vm1, inf, %v7688_v22  ;;  %5608 = vmatpush2.xpose.msk.msra.mxu0 %vm1796_vm5, %v6191_v28  ;;  %v1943_v33 = vmin.f32 %v8055_v2, %v8060_v51 }
 0x5a2   : > { %5609 = vmatprep.subr.msk.mxu0 %vm1795_vm8, %v6191_v28  ;;  %v1946_v36 = vmin.f32 %v8067_v60, %v8072_v54 }
 0x5a3   : > { %v1734_v7 = vpop.xlane.xlu1 %1733  ;;  %1944 = vmin.xlane.f32.xlu0 %v1943_v33 }
 0x5a4   : > { %vm1780_vm7 = vcmp.eq.f32.partialorder %v6602_v3, %v1734_v7  ;;  %vm1781_vm6 = vcmp.eq.f32.partialorder %v6604_v23, %v1734_v7  ;;  %1947 = vmin.xlane.f32.xlu1 %v1946_v36 }
 0x5a5   : > { %v8090_v22 = vsel %vm1780_vm7, inf, %v7706_v50  ;;  %v8095_v35 = vsel %vm1781_vm6, inf, %v7711_v42  ;;  %5610 = vmatpush2.xpose.msk.msra.mxu0 %vm1794_vm9, %v6191_v28  ;;  %v3272_v50 = vpop.f32.mrf.mxu1  ;;  %vm9906_vm9 = vcmp.eq.f32.partialorder %v6602_v3, %v1737_v46 }
 0x5a6   : > { %5611 = vmatprep.subr.msk.mxu0 %vm1793_vm13, %v6191_v28  ;;  %v1940_v27 = vmin.f32 %v8090_v22, %v8095_v35 }
 0x5a7   : > { %v3274_v42 = vpop.f32.mrf.mxu1 }
 0x5a8   : > { %1941 = vmin.xlane.f32.xlu1 %v1940_v27 }
 0x5a9   : > { %5612 = vmatpush2.xpose.msk.msra.mxu0 %vm1792_vm12, %v6191_v28  ;;  %v8138_v56 = vpop.f32.mrf.mxu1 }
 0x5aa   : > { %5613 = vmatprep.subr.msk.mxu0 %vm1791_vm11, %v6191_v28 }
 0x5ab   : > { %v8140_v10 = vpop.f32.mrf.mxu1 }
 0x5ad   : > { %5614 = vmatpush2.xpose.msk.msra.mxu0 %vm1790_vm10, %v6191_v28  ;;  %v3355_v48 = vpop.f32.mrf.mxu1 }
 0x5ae   : > { %5615 = vmatprep.subr.msk.mxu0 %vm1789_vm2, %v6191_v28  ;;  %v8148_v6 = vadd.f32 %v3355_v48, %v3272_v50 }
 0x5af   : > { %v3357_v59 = vpop.f32.mrf.mxu1 }
 0x5b0   : > { %v8153_v63 = vadd.f32 %v3357_v59, %v3274_v42 }
 0x5b1   : > { %5616 = vmatpush2.xpose.msk.msra.mxu0 %vm1788_vm3, %v6191_v28 }
 0x5b2   : > { %5617 = vmatprep.subr.msk.mxu0 %vm1787_vm15, %v6191_v28  ;;  %3811 = vmatprep.mubr.f32.mxu1 %v8153_v63 }
 0x5b3   : > { %3888 = vmatprep.mubr.f32.mxu0 %v8153_v63  ;;  %3812 = vmatmul.mubr.f32.vlgmr.msra.gmra.mxu1 %v8148_v6 }
 0x5b5   : > { %5618 = vmatpush2.xpose.msk.msra.mxu0 %vm1786_vm14, %v6191_v28 }
 0x5b6   : > { %5619 = vmatprep.subr.msk.mxu0 %vm1785_vm1, %v6191_v28 }
 0x5b9   : > { %5620 = vmatpush2.xpose.msk.msra.mxu0 %vm1784_vm0, %v6191_v28 }
 0x5ba   : > { %5621 = vmatprep.subr.msk.mxu0 %vm1783_vm4, %v6191_v28 }
 0x5bd   : > { %5622 = vmatpush2.xpose.msk.msra.mxu0 %vm9906_vm9, %v6191_v28 }
 0x5be   : > { %5623 = vmatprep.subr.msk.mxu0 %vm1781_vm6, %v6191_v28 }
 0x5c1   : > { %5624 = vmatpush2.xpose.msk.msra.mxu0 %vm1780_vm7, %v6191_v28 }
 0x5c4   : > { %3889 = vmatmul.mubr.f32.vlgmr.msra.gmra.mxu0 %v8148_v6 }
 0x610   : > { %v1987_v0 = vpop.xlane.xlu0 %1986 }
 0x611   : > { %vm2018_vm8 = vcmp.le.f32.partialorder %v7830_v14, %v1987_v0  ;;  %vm2019_vm5 = vcmp.le.f32.partialorder %v7833_v8, %v1987_v0 }
 0x612   : > { %v2050_v43 = vsel %vm2018_vm8, %v6602_v3, 256.0  ;;  %v2051_v16 = vsel %vm2019_vm5, %v6604_v23, 256.0 }
 0x613   : > { %v2097_v39 = vmin.f32 %v2050_v43, %v2051_v16 }
 0x614   : > { %v1981_v52 = vpop.xlane.xlu0 %1980  ;;  %v1984_v47 = vpop.xlane.xlu1 %1983 }
 0x615   : > { %vm2014_vm10 = vcmp.le.f32.partialorder %v7846_v17, %v1981_v52  ;;  %vm2015_vm11 = vcmp.le.f32.partialorder %v7856_v25, %v1981_v52  ;;  %vm2016_vm12 = vcmp.le.f32.partialorder %v7849_v55, %v1984_v47  ;;  %vm2017_vm13 = vcmp.le.f32.partialorder %v7852_v21, %v1984_v47  ;;  %2098 = vmin.xlane.f32.xlu0 %v2097_v39 }
 0x616   : > { %v2046_v1 = vsel %vm2014_vm10, %v6602_v3, 256.0  ;;  %v2047_v4 = vsel %vm2015_vm11, %v6604_v23, 256.0  ;;  %v2048_v11 = vsel %vm2016_vm12, %v6602_v3, 256.0  ;;  %v2049_v62 = vsel %vm2017_vm13, %v6604_v23, 256.0 }
 0x617   : > { %v2091_v57 = vmin.f32 %v2046_v1, %v2047_v4  ;;  %v2094_v44 = vmin.f32 %v2048_v11, %v2049_v62 }
 0x618   : > { %v1975_v37 = vpop.xlane.xlu0 %1974 }
 0x619   : > { %vm2010_vm14 = vcmp.le.f32.partialorder %v7869_v9, %v1975_v37  ;;  %vm2011_vm15 = vcmp.le.f32.partialorder %v7874_v45, %v1975_v37  ;;  %v1978_v49 = vpop.xlane.xlu1 %1977  ;;  %2092 = vmin.xlane.f32.xlu0 %v2091_v57  ;;  %2095 = vmin.xlane.f32.xlu1 %v2094_v44 }
 0x61a   : > { %v2042_v46 = vsel %vm2010_vm14, %v6602_v3, 256.0  ;;  %v2043_v30 = vsel %vm2011_vm15, %v6604_v23, 256.0  ;;  %vm2012_vm3 = vcmp.le.f32.partialorder %v7881_v26, %v1978_v49  ;;  %vm2013_vm2 = vcmp.le.f32.partialorder %v7887_v29, %v1978_v49 }
 0x61b   : > { %v2044_v15 = vsel %vm2012_vm3, %v6602_v3, 256.0  ;;  %v2045_v33 = vsel %vm2013_vm2, %v6604_v23, 256.0  ;;  %v2085_v36 = vmin.f32 %v2042_v46, %v2043_v30 }
 0x61c   : > { %v1969_v7 = vpop.xlane.xlu0 %1968  ;;  %v2088_v27 = vmin.f32 %v2044_v15, %v2045_v33 }
 0x61d   : > { %vm2006_vm6 = vcmp.le.f32.partialorder %v7904_v31, %v1969_v7  ;;  %vm2007_vm4 = vcmp.le.f32.partialorder %v7910_v40, %v1969_v7  ;;  %v1972_v50 = vpop.xlane.xlu1 %1971  ;;  %2086 = vmin.xlane.f32.xlu0 %v2085_v36 }
 0x61e   : > { %v2038_v42 = vsel %vm2006_vm6, %v6602_v3, 256.0  ;;  %v2039_v48 = vsel %vm2007_vm4, %v6604_v23, 256.0  ;;  %vm2008_vm0 = vcmp.le.f32.partialorder %v7917_v32, %v1972_v50  ;;  %vm2009_vm1 = vcmp.le.f32.partialorder %v7922_v19, %v1972_v50  ;;  %2089 = vmin.xlane.f32.xlu1 %v2088_v27 }
 0x61f   : > { %v2040_v59 = vsel %vm2008_vm0, %v6602_v3, 256.0  ;;  %v2041_v0 = vsel %vm2009_vm1, %v6604_v23, 256.0  ;;  %v2079_v43 = vmin.f32 %v2038_v42, %v2039_v48 }
 0x620   : > { %v1963_v16 = vpop.xlane.xlu0 %1962  ;;  %v2082_v39 = vmin.f32 %v2040_v59, %v2041_v0 }
 0x621   : > { %vm2002_vm7 = vcmp.le.f32.partialorder %v7944_v5, %v1963_v16  ;;  %vm2003_vm9 = vcmp.le.f32.partialorder %v7950_v18, %v1963_v16  ;;  %v1966_v52 = vpop.xlane.xlu1 %1965  ;;  %2080 = vmin.xlane.f32.xlu0 %v2079_v43 }
 0x622   : > { %v2034_v47 = vsel %vm2002_vm7, %v6602_v3, 256.0  ;;  %v2035_v1 = vsel %vm2003_vm9, %v6604_v23, 256.0  ;;  %vm2004_vm8 = vcmp.le.f32.partialorder %v7957_v53, %v1966_v52  ;;  %vm2005_vm5 = vcmp.le.f32.partialorder %v7962_v20, %v1966_v52  ;;  %2083 = vmin.xlane.f32.xlu1 %v2082_v39 }
 0x623   : > { %v2036_v4 = vsel %vm2004_vm8, %v6602_v3, 256.0  ;;  %v2037_v11 = vsel %vm2005_vm5, %v6604_v23, 256.0  ;;  %v2073_v62 = vmin.f32 %v2034_v47, %v2035_v1 }
 0x624   : > { %v1957_v57 = vpop.xlane.xlu0 %1956  ;;  %v2076_v44 = vmin.f32 %v2036_v4, %v2037_v11 }
 0x625   : > { %vm1998_vm10 = vcmp.le.f32.partialorder %v7984_v61, %v1957_v57  ;;  %vm1999_vm11 = vcmp.le.f32.partialorder %v7990_v24, %v1957_v57  ;;  %v1960_v37 = vpop.xlane.xlu1 %1959  ;;  %2074 = vmin.xlane.f32.xlu0 %v2073_v62 }
 0x626   : > { %v2030_v49 = vsel %vm1998_vm10, %v6602_v3, 256.0  ;;  %v2031_v46 = vsel %vm1999_vm11, %v6604_v23, 256.0  ;;  %vm2000_vm12 = vcmp.le.f32.partialorder %v7997_v38, %v1960_v37  ;;  %vm2001_vm13 = vcmp.le.f32.partialorder %v8002_v41, %v1960_v37  ;;  %2077 = vmin.xlane.f32.xlu1 %v2076_v44 }
 0x627   : > { %v2032_v30 = vsel %vm2000_vm12, %v6602_v3, 256.0  ;;  %v2033_v15 = vsel %vm2001_vm13, %v6604_v23, 256.0  ;;  %v2067_v33 = vmin.f32 %v2030_v49, %v2031_v46 }
 0x628   : > { %v1951_v36 = vpop.xlane.xlu0 %1950  ;;  %v2070_v7 = vmin.f32 %v2032_v30, %v2033_v15 }
 0x629   : > { %vm1994_vm14 = vcmp.le.f32.partialorder %v8020_v58, %v1951_v36  ;;  %vm1995_vm15 = vcmp.le.f32.partialorder %v8025_v34, %v1951_v36  ;;  %v1954_v27 = vpop.xlane.xlu1 %1953  ;;  %2068 = vmin.xlane.f32.xlu0 %v2067_v33 }
 0x62a   : > { %v2026_v50 = vsel %vm1994_vm14, %v6602_v3, 256.0  ;;  %v2027_v42 = vsel %vm1995_vm15, %v6604_v23, 256.0  ;;  %vm1996_vm3 = vcmp.le.f32.partialorder %v8032_v12, %v1954_v27  ;;  %vm1997_vm2 = vcmp.le.f32.partialorder %v8037_v13, %v1954_v27  ;;  %2071 = vmin.xlane.f32.xlu1 %v2070_v7 }
 0x62b   : > { %v2028_v48 = vsel %vm1996_vm3, %v6602_v3, 256.0  ;;  %v2029_v59 = vsel %vm1997_vm2, %v6604_v23, 256.0  ;;  %v2061_v0 = vmin.f32 %v2026_v50, %v2027_v42 }
 0x62c   : > { %v1945_v43 = vpop.xlane.xlu0 %1944  ;;  %v2064_v16 = vmin.f32 %v2028_v48, %v2029_v59 }
 0x62d   : > { %vm1990_vm6 = vcmp.le.f32.partialorder %v8055_v2, %v1945_v43  ;;  %vm1991_vm4 = vcmp.le.f32.partialorder %v8060_v51, %v1945_v43  ;;  %v1948_v39 = vpop.xlane.xlu1 %1947  ;;  %2062 = vmin.xlane.f32.xlu0 %v2061_v0 }
 0x62e   : > { %v2022_v52 = vsel %vm1990_vm6, %v6602_v3, 256.0  ;;  %v2023_v47 = vsel %vm1991_vm4, %v6604_v23, 256.0  ;;  %vm1992_vm0 = vcmp.le.f32.partialorder %v8067_v60, %v1948_v39  ;;  %vm1993_vm1 = vcmp.le.f32.partialorder %v8072_v54, %v1948_v39  ;;  %2065 = vmin.xlane.f32.xlu1 %v2064_v16 }
 0x62f   : > { %v2024_v1 = vsel %vm1992_vm0, %v6602_v3, 256.0  ;;  %v2025_v4 = vsel %vm1993_vm1, %v6604_v23, 256.0  ;;  %v2055_v11 = vmin.f32 %v2022_v52, %v2023_v47 }
 0x630   : > { %v2058_v62 = vmin.f32 %v2024_v1, %v2025_v4 }
 0x631   : > { %v1942_v57 = vpop.xlane.xlu1 %1941  ;;  %2056 = vmin.xlane.f32.xlu0 %v2055_v11 }
 0x632   : > { %vm1988_vm7 = vcmp.le.f32.partialorder %v8090_v22, %v1942_v57  ;;  %vm1989_vm9 = vcmp.le.f32.partialorder %v8095_v35, %v1942_v57  ;;  %2059 = vmin.xlane.f32.xlu1 %v2058_v62 }
 0x633   : > { %v2020_v44 = vsel %vm1988_vm7, %v6602_v3, 256.0  ;;  %v2021_v37 = vsel %vm1989_vm9, %v6604_v23, 256.0 }
 0x634   : > { %v2052_v49 = vmin.f32 %v2020_v44, %v2021_v37 }
 0x636   : > { %2053 = vmin.xlane.f32.xlu1 %v2052_v49 }
 0x69e   : > { %v2099_v46 = vpop.xlane.xlu0 %2098 }
 0x69f   : > { %vm2130_vm8 = vcmp.eq.f32.partialorder %v6602_v3, %v2099_v46  ;;  %vm2131_vm5 = vcmp.eq.f32.partialorder %v6604_v23, %v2099_v46 }
 0x6a0   : > { %v8226_v30 = vsel %vm2130_vm8, inf, %v7830_v14  ;;  %v8229_v15 = vsel %vm2131_vm5, inf, %v7833_v8  ;;  %5625 = vmatprep.subr.msk.mxu1 %vm2131_vm5, %v6191_v28 }
 0x6a1   : > { %5626 = vmatpush1.xpose.msk.msra.mxu1 %vm2130_vm8, %v6191_v28  ;;  %v2305_v33 = vmin.f32 %v8226_v30, %v8229_v15 }
 0x6a2   : > { %v2093_v36 = vpop.xlane.xlu0 %2092  ;;  %v2096_v7 = vpop.xlane.xlu1 %2095 }
 0x6a3   : > { %vm2126_vm10 = vcmp.eq.f32.partialorder %v6602_v3, %v2093_v36  ;;  %vm2128_vm11 = vcmp.eq.f32.partialorder %v6602_v3, %v2096_v7  ;;  %2306 = vmin.xlane.f32.xlu0 %v2305_v33  ;;  %vm2129_vm12 = vcmp.eq.f32.partialorder %v6604_v23, %v2096_v7  ;;  %vm2127_vm13 = vcmp.eq.f32.partialorder %v6604_v23, %v2093_v36 }
 0x6a4   : > { %v8242_v14 = vsel %vm2126_vm10, inf, %v7846_v17  ;;  %v8245_v8 = vsel %vm2128_vm11, inf, %v7849_v55  ;;  %v8248_v27 = vsel %vm2129_vm12, inf, %v7852_v21  ;;  %5627 = vmatprep.subr.msk.mxu1 %vm2129_vm12, %v6191_v28  ;;  %v8252_v50 = vsel %vm2127_vm13, inf, %v7856_v25 }
 0x6a5   : > { %5628 = vmatpush1.xpose.msk.msra.mxu1 %vm2128_vm11, %v6191_v28  ;;  %v2299_v42 = vmin.f32 %v8242_v14, %v8252_v50  ;;  %v2302_v17 = vmin.f32 %v8245_v8, %v8248_v27 }
 0x6a6   : > { %v2087_v48 = vpop.xlane.xlu0 %2086  ;;  %5629 = vmatprep.subr.msk.mxu1 %vm2127_vm13, %v6191_v28 }
 0x6a7   : > { %vm2122_vm14 = vcmp.eq.f32.partialorder %v6602_v3, %v2087_v48  ;;  %vm2123_vm15 = vcmp.eq.f32.partialorder %v6604_v23, %v2087_v48  ;;  %v2090_v55 = vpop.xlane.xlu1 %2089  ;;  %2300 = vmin.xlane.f32.xlu0 %v2299_v42  ;;  %2303 = vmin.xlane.f32.xlu1 %v2302_v17 }
 0x6a8   : > { %v8265_v21 = vsel %vm2122_vm14, inf, %v7869_v9  ;;  %v8270_v25 = vsel %vm2123_vm15, inf, %v7874_v45  ;;  %vm2124_vm3 = vcmp.eq.f32.partialorder %v6602_v3, %v2090_v55  ;;  %vm2125_vm2 = vcmp.eq.f32.partialorder %v6604_v23, %v2090_v55 }
 0x6a9   : > { %v8277_v59 = vsel %vm2124_vm3, inf, %v7881_v26  ;;  %5630 = vmatpush1.xpose.msk.msra.mxu1 %vm2126_vm10, %v6191_v28  ;;  %v8283_v9 = vsel %vm2125_vm2, inf, %v7887_v29  ;;  %v2293_v45 = vmin.f32 %v8265_v21, %v8270_v25 }
 0x6aa   : > { %v8287_v0 = vpop.xlane.xlu0 %2080  ;;  %5631 = vmatprep.subr.msk.mxu1 %vm2125_vm2, %v6191_v28  ;;  %v2296_v43 = vmin.f32 %v8277_v59, %v8283_v9 }
 0x6ab   : > { %vm2118_vm6 = vcmp.eq.f32.partialorder %v6602_v3, %v8287_v0  ;;  %vm2119_vm4 = vcmp.eq.f32.partialorder %v6604_v23, %v8287_v0  ;;  %v2084_v26 = vpop.xlane.xlu1 %2083  ;;  %2294 = vmin.xlane.f32.xlu0 %v2293_v45 }
 0x6ac   : > { %v8300_v29 = vsel %vm2118_vm6, inf, %v7904_v31  ;;  %v8306_v16 = vsel %vm2119_vm4, inf, %v7910_v40  ;;  %vm2120_vm0 = vcmp.eq.f32.partialorder %v6602_v3, %v2084_v26  ;;  %vm2121_vm1 = vcmp.eq.f32.partialorder %v6604_v23, %v2084_v26  ;;  %2297 = vmin.xlane.f32.xlu1 %v2296_v43 }
 0x6ad   : > { %v8313_v39 = vsel %vm2120_vm0, inf, %v7917_v32  ;;  %v8318_v31 = vsel %vm2121_vm1, inf, %v7922_v19  ;;  %5632 = vmatpush1.xpose.msk.msra.mxu1 %vm2124_vm3, %v6191_v28  ;;  %v2287_v40 = vmin.f32 %v8300_v29, %v8306_v16 }
 0x6ae   : > { %v8325_v52 = vpop.xlane.xlu0 %2074  ;;  %5633 = vmatprep.subr.msk.mxu1 %vm2123_vm15, %v6191_v28  ;;  %v2290_v32 = vmin.f32 %v8313_v39, %v8318_v31 }
 0x6af   : > { %vm2114_vm7 = vcmp.eq.f32.partialorder %v6602_v3, %v8325_v52  ;;  %vm2115_vm9 = vcmp.eq.f32.partialorder %v6604_v23, %v8325_v52  ;;  %v2078_v19 = vpop.xlane.xlu1 %2077  ;;  %2288 = vmin.xlane.f32.xlu0 %v2287_v40 }
 0x6b0   : > { %v8340_v47 = vsel %vm2114_vm7, inf, %v7944_v5  ;;  %v8346_v1 = vsel %vm2115_vm9, inf, %v7950_v18  ;;  %vm2116_vm8 = vcmp.eq.f32.partialorder %v6602_v3, %v2078_v19  ;;  %vm2117_vm5 = vcmp.eq.f32.partialorder %v6604_v23, %v2078_v19  ;;  %2291 = vmin.xlane.f32.xlu1 %v2290_v32 }
 0x6b1   : > { %v8353_v4 = vsel %vm2116_vm8, inf, %v7957_v53  ;;  %v8358_v5 = vsel %vm2117_vm5, inf, %v7962_v20  ;;  %5634 = vmatpush1.xpose.msk.msra.mxu1 %vm2122_vm14, %v6191_v28  ;;  %v2281_v18 = vmin.f32 %v8340_v47, %v8346_v1 }
 0x6b2   : > { %v8365_v11 = vpop.xlane.xlu0 %2068  ;;  %5635 = vmatprep.subr.msk.mxu1 %vm2121_vm1, %v6191_v28  ;;  %v2284_v53 = vmin.f32 %v8353_v4, %v8358_v5 }
 0x6b3   : > { %vm2110_vm10 = vcmp.eq.f32.partialorder %v6602_v3, %v8365_v11  ;;  %vm2111_vm11 = vcmp.eq.f32.partialorder %v6604_v23, %v8365_v11  ;;  %v2072_v20 = vpop.xlane.xlu1 %2071  ;;  %2282 = vmin.xlane.f32.xlu0 %v2281_v18 }
 0x6b4   : > { %v8380_v62 = vsel %vm2110_vm10, inf, %v7984_v61  ;;  %v8386_v57 = vsel %vm2111_vm11, inf, %v7990_v24  ;;  %vm2112_vm12 = vcmp.eq.f32.partialorder %v6602_v3, %v2072_v20  ;;  %vm2113_vm13 = vcmp.eq.f32.partialorder %v6604_v23, %v2072_v20  ;;  %2285 = vmin.xlane.f32.xlu1 %v2284_v53 }
 0x6b5   : > { %v8393_v44 = vsel %vm2112_vm12, inf, %v7997_v38  ;;  %v8398_v61 = vsel %vm2113_vm13, inf, %v8002_v41  ;;  %5636 = vmatpush1.xpose.msk.msra.mxu1 %vm2120_vm0, %v6191_v28  ;;  %v2275_v24 = vmin.f32 %v8380_v62, %v8386_v57 }
 0x6b6   : > { %v2063_v37 = vpop.xlane.xlu0 %2062  ;;  %5637 = vmatprep.subr.msk.mxu1 %vm2119_vm4, %v6191_v28  ;;  %v2278_v38 = vmin.f32 %v8393_v44, %v8398_v61 }
 0x6b7   : > { %vm2106_vm14 = vcmp.eq.f32.partialorder %v6602_v3, %v2063_v37  ;;  %vm2107_vm15 = vcmp.eq.f32.partialorder %v6604_v23, %v2063_v37  ;;  %v2066_v41 = vpop.xlane.xlu1 %2065  ;;  %2276 = vmin.xlane.f32.xlu0 %v2275_v24 }
 0x6b8   : > { %v8416_v49 = vsel %vm2106_vm14, inf, %v8020_v58  ;;  %v8421_v46 = vsel %vm2107_vm15, inf, %v8025_v34  ;;  %vm2108_vm3 = vcmp.eq.f32.partialorder %v6602_v3, %v2066_v41  ;;  %vm2109_vm2 = vcmp.eq.f32.partialorder %v6604_v23, %v2066_v41  ;;  %2279 = vmin.xlane.f32.xlu1 %v2278_v38 }
 0x6b9   : > { %v8428_v33 = vsel %vm2108_vm3, inf, %v8032_v12  ;;  %v8433_v58 = vsel %vm2109_vm2, inf, %v8037_v13  ;;  %5638 = vmatpush1.xpose.msk.msra.mxu1 %vm2118_vm6, %v6191_v28  ;;  %v2269_v34 = vmin.f32 %v8416_v49, %v8421_v46 }
 0x6ba   : > { %v2057_v36 = vpop.xlane.xlu0 %2056  ;;  %5639 = vmatprep.subr.msk.mxu1 %vm2117_vm5, %v6191_v28  ;;  %v2272_v12 = vmin.f32 %v8428_v33, %v8433_v58 }
 0x6bb   : > { %vm9899_vm4 = vcmp.eq.f32.partialorder %v6602_v3, %v2057_v36  ;;  %vm2103_vm0 = vcmp.eq.f32.partialorder %v6604_v23, %v2057_v36  ;;  %v2060_v13 = vpop.xlane.xlu1 %2059  ;;  %2270 = vmin.xlane.f32.xlu0 %v2269_v34 }
 0x6bc   : > { %v8451_v7 = vsel %vm9899_vm4, inf, %v8055_v2  ;;  %v8456_v42 = vsel %vm2103_vm0, inf, %v8060_v51  ;;  %vm2104_vm6 = vcmp.eq.f32.partialorder %v6602_v3, %v2060_v13  ;;  %vm2105_vm1 = vcmp.eq.f32.partialorder %v6604_v23, %v2060_v13  ;;  %2273 = vmin.xlane.f32.xlu1 %v2272_v12 }
 0x6bd   : > { %v8463_v17 = vsel %vm2104_vm6, inf, %v8067_v60  ;;  %v8468_v2 = vsel %vm2105_vm1, inf, %v8072_v54  ;;  %5640 = vmatpush1.xpose.msk.msra.mxu1 %vm2116_vm8, %v6191_v28  ;;  %v2263_v51 = vmin.f32 %v8451_v7, %v8456_v42 }
 0x6be   : > { %5641 = vmatprep.subr.msk.mxu1 %vm2115_vm9, %v6191_v28  ;;  %v2266_v60 = vmin.f32 %v8463_v17, %v8468_v2 }
 0x6bf   : > { %v2054_v48 = vpop.xlane.xlu1 %2053  ;;  %2264 = vmin.xlane.f32.xlu0 %v2263_v51 }
 0x6c0   : > { %vm2100_vm5 = vcmp.eq.f32.partialorder %v6602_v3, %v2054_v48  ;;  %vm2101_vm4 = vcmp.eq.f32.partialorder %v6604_v23, %v2054_v48  ;;  %2267 = vmin.xlane.f32.xlu1 %v2266_v60 }
 0x6c1   : > { %v8486_v54 = vsel %vm2100_vm5, inf, %v8090_v22  ;;  %v8491_v55 = vsel %vm2101_vm4, inf, %v8095_v35  ;;  %5642 = vmatpush1.xpose.msk.msra.mxu1 %vm2114_vm7, %v6191_v28  ;;  %vm9907_vm7 = vcmp.eq.f32.partialorder %v6602_v3, %v2057_v36 }
 0x6c2   : > { %5643 = vmatprep.subr.msk.mxu1 %vm2113_vm13, %v6191_v28  ;;  %v2260_v45 = vmin.f32 %v8486_v54, %v8491_v55 }
 0x6c4   : > { %2261 = vmin.xlane.f32.xlu1 %v2260_v45 }
 0x6c5   : > { %5644 = vmatpush1.xpose.msk.msra.mxu1 %vm2112_vm12, %v6191_v28 }
 0x6c6   : > { %5645 = vmatprep.subr.msk.mxu1 %vm2111_vm11, %v6191_v28 }
 0x6c9   : > { %5646 = vmatpush1.xpose.msk.msra.mxu1 %vm2110_vm10, %v6191_v28 }
 0x6ca   : > { %5647 = vmatprep.subr.msk.mxu1 %vm2109_vm2, %v6191_v28 }
 0x6cd   : > { %5648 = vmatpush1.xpose.msk.msra.mxu1 %vm2108_vm3, %v6191_v28 }
 0x6ce   : > { %5649 = vmatprep.subr.msk.mxu1 %vm2107_vm15, %v6191_v28 }
 0x6d1   : > { %5650 = vmatpush1.xpose.msk.msra.mxu1 %vm2106_vm14, %v6191_v28 }
 0x6d2   : > { %5651 = vmatprep.subr.msk.mxu1 %vm2105_vm1, %v6191_v28 }
 0x6d5   : > { %5652 = vmatpush1.xpose.msk.msra.mxu1 %vm2104_vm6, %v6191_v28 }
 0x6d6   : > { %5653 = vmatprep.subr.msk.mxu1 %vm2103_vm0, %v6191_v28 }
 0x6d9   : > { %5654 = vmatpush1.xpose.msk.msra.mxu1 %vm9907_vm7, %v6191_v28 }
 0x6da   : > { %5655 = vmatprep.subr.msk.mxu1 %vm2101_vm4, %v6191_v28 }
 0x6dd   : > { %5656 = vmatpush1.xpose.msk.msra.mxu1 %vm2100_vm5, %v6191_v28 }
 0x72c   : > { %v2307_v22 = vpop.xlane.xlu0 %2306 }
 0x72d   : > { %vm2338_vm9 = vcmp.le.f32.partialorder %v8226_v30, %v2307_v22  ;;  %vm2339_vm8 = vcmp.le.f32.partialorder %v8229_v15, %v2307_v22 }
 0x72e   : > { %v2370_v35 = vsel %vm2338_vm9, %v6602_v3, 256.0  ;;  %v2371_v0 = vsel %vm2339_vm8, %v6604_v23, 256.0 }
 0x72f   : > { %v2417_v43 = vmin.f32 %v2370_v35, %v2371_v0 }
 0x730   : > { %v2301_v26 = vpop.xlane.xlu0 %2300  ;;  %v2304_v40 = vpop.xlane.xlu1 %2303 }
 0x731   : > { %vm2334_vm10 = vcmp.le.f32.partialorder %v8242_v14, %v2301_v26  ;;  %vm2335_vm11 = vcmp.le.f32.partialorder %v8252_v50, %v2301_v26  ;;  %vm2336_vm12 = vcmp.le.f32.partialorder %v8245_v8, %v2304_v40  ;;  %vm2337_vm13 = vcmp.le.f32.partialorder %v8248_v27, %v2304_v40  ;;  %2418 = vmin.xlane.f32.xlu0 %v2417_v43 }
 0x732   : > { %v2366_v52 = vsel %vm2334_vm10, %v6602_v3, 256.0  ;;  %v2367_v32 = vsel %vm2335_vm11, %v6604_v23, 256.0  ;;  %v2368_v19 = vsel %vm2336_vm12, %v6602_v3, 256.0  ;;  %v2369_v18 = vsel %vm2337_vm13, %v6604_v23, 256.0 }
 0x733   : > { %v2411_v11 = vmin.f32 %v2366_v52, %v2367_v32  ;;  %v2414_v53 = vmin.f32 %v2368_v19, %v2369_v18 }
 0x734   : > { %v2295_v20 = vpop.xlane.xlu0 %2294 }
 0x735   : > { %vm2330_vm14 = vcmp.le.f32.partialorder %v8265_v21, %v2295_v20  ;;  %vm2331_vm15 = vcmp.le.f32.partialorder %v8270_v25, %v2295_v20  ;;  %v2298_v24 = vpop.xlane.xlu1 %2297  ;;  %2412 = vmin.xlane.f32.xlu0 %v2411_v11  ;;  %2415 = vmin.xlane.f32.xlu1 %v2414_v53 }
 0x736   : > { %v2362_v37 = vsel %vm2330_vm14, %v6602_v3, 256.0  ;;  %v2363_v38 = vsel %vm2331_vm15, %v6604_v23, 256.0  ;;  %vm2332_vm3 = vcmp.le.f32.partialorder %v8277_v59, %v2298_v24  ;;  %vm2333_vm2 = vcmp.le.f32.partialorder %v8283_v9, %v2298_v24 }
 0x737   : > { %v2405_v41 = vmin.f32 %v2362_v37, %v2363_v38  ;;  %v2364_v34 = vsel %vm2332_vm3, %v6602_v3, 256.0  ;;  %v2365_v36 = vsel %vm2333_vm2, %v6604_v23, 256.0 }
 0x738   : > { %v2408_v12 = vmin.f32 %v2364_v34, %v2365_v36  ;;  %v2289_v13 = vpop.xlane.xlu0 %2288 }
 0x739   : > { %vm2326_vm4 = vcmp.le.f32.partialorder %v8300_v29, %v2289_v13  ;;  %vm2327_vm0 = vcmp.le.f32.partialorder %v8306_v16, %v2289_v13  ;;  %v2292_v51 = vpop.xlane.xlu1 %2291  ;;  %2406 = vmin.xlane.f32.xlu0 %v2405_v41 }
 0x73a   : > { %v2358_v60 = vsel %vm2326_vm4, %v6602_v3, 256.0  ;;  %v2359_v48 = vsel %vm2327_vm0, %v6604_v23, 256.0  ;;  %vm2328_vm6 = vcmp.le.f32.partialorder %v8313_v39, %v2292_v51  ;;  %vm2329_vm1 = vcmp.le.f32.partialorder %v8318_v31, %v2292_v51  ;;  %2409 = vmin.xlane.f32.xlu1 %v2408_v12 }
 0x73b   : > { %v2399_v45 = vmin.f32 %v2358_v60, %v2359_v48  ;;  %v2360_v22 = vsel %vm2328_vm6, %v6602_v3, 256.0  ;;  %v2361_v35 = vsel %vm2329_vm1, %v6604_v23, 256.0 }
 0x73c   : > { %v2402_v0 = vmin.f32 %v2360_v22, %v2361_v35  ;;  %v2283_v43 = vpop.xlane.xlu0 %2282 }
 0x73d   : > { %vm2322_vm5 = vcmp.le.f32.partialorder %v8340_v47, %v2283_v43  ;;  %vm2323_vm7 = vcmp.le.f32.partialorder %v8346_v1, %v2283_v43  ;;  %v2286_v26 = vpop.xlane.xlu1 %2285  ;;  %2400 = vmin.xlane.f32.xlu0 %v2399_v45 }
 0x73e   : > { %v2354_v40 = vsel %vm2322_vm5, %v6602_v3, 256.0  ;;  %v2355_v52 = vsel %vm2323_vm7, %v6604_v23, 256.0  ;;  %vm2324_vm9 = vcmp.le.f32.partialorder %v8353_v4, %v2286_v26  ;;  %vm2325_vm8 = vcmp.le.f32.partialorder %v8358_v5, %v2286_v26  ;;  %2403 = vmin.xlane.f32.xlu1 %v2402_v0 }
 0x73f   : > { %v2393_v32 = vmin.f32 %v2354_v40, %v2355_v52  ;;  %v2356_v19 = vsel %vm2324_vm9, %v6602_v3, 256.0  ;;  %v2357_v18 = vsel %vm2325_vm8, %v6604_v23, 256.0 }
 0x740   : > { %v2396_v11 = vmin.f32 %v2356_v19, %v2357_v18  ;;  %v2277_v53 = vpop.xlane.xlu0 %2276 }
 0x741   : > { %vm2318_vm10 = vcmp.le.f32.partialorder %v8380_v62, %v2277_v53  ;;  %vm2319_vm11 = vcmp.le.f32.partialorder %v8386_v57, %v2277_v53  ;;  %v2280_v20 = vpop.xlane.xlu1 %2279  ;;  %2394 = vmin.xlane.f32.xlu0 %v2393_v32 }
 0x742   : > { %v2350_v24 = vsel %vm2318_vm10, %v6602_v3, 256.0  ;;  %v2351_v37 = vsel %vm2319_vm11, %v6604_v23, 256.0  ;;  %vm2320_vm12 = vcmp.le.f32.partialorder %v8393_v44, %v2280_v20  ;;  %vm2321_vm13 = vcmp.le.f32.partialorder %v8398_v61, %v2280_v20  ;;  %2397 = vmin.xlane.f32.xlu1 %v2396_v11 }
 0x743   : > { %v2387_v38 = vmin.f32 %v2350_v24, %v2351_v37  ;;  %v2352_v41 = vsel %vm2320_vm12, %v6602_v3, 256.0  ;;  %v2353_v34 = vsel %vm2321_vm13, %v6604_v23, 256.0 }
 0x744   : > { %v2390_v36 = vmin.f32 %v2352_v41, %v2353_v34  ;;  %v2271_v12 = vpop.xlane.xlu0 %2270 }
 0x745   : > { %vm2314_vm14 = vcmp.le.f32.partialorder %v8416_v49, %v2271_v12  ;;  %vm2315_vm15 = vcmp.le.f32.partialorder %v8421_v46, %v2271_v12  ;;  %v2274_v13 = vpop.xlane.xlu1 %2273  ;;  %2388 = vmin.xlane.f32.xlu0 %v2387_v38 }
 0x746   : > { %v2346_v51 = vsel %vm2314_vm14, %v6602_v3, 256.0  ;;  %v2347_v60 = vsel %vm2315_vm15, %v6604_v23, 256.0  ;;  %vm2316_vm3 = vcmp.le.f32.partialorder %v8428_v33, %v2274_v13  ;;  %vm2317_vm2 = vcmp.le.f32.partialorder %v8433_v58, %v2274_v13  ;;  %2391 = vmin.xlane.f32.xlu1 %v2390_v36 }
 0x747   : > { %v2381_v48 = vmin.f32 %v2346_v51, %v2347_v60  ;;  %v2348_v45 = vsel %vm2316_vm3, %v6602_v3, 256.0  ;;  %v2349_v22 = vsel %vm2317_vm2, %v6604_v23, 256.0 }
 0x748   : > { %v2384_v35 = vmin.f32 %v2348_v45, %v2349_v22  ;;  %v2265_v0 = vpop.xlane.xlu0 %2264 }
 0x749   : > { %vm2310_vm4 = vcmp.le.f32.partialorder %v8451_v7, %v2265_v0  ;;  %vm2311_vm0 = vcmp.le.f32.partialorder %v8456_v42, %v2265_v0  ;;  %v2268_v43 = vpop.xlane.xlu1 %2267  ;;  %2382 = vmin.xlane.f32.xlu0 %v2381_v48 }
 0x74a   : > { %v2342_v26 = vsel %vm2310_vm4, %v6602_v3, 256.0  ;;  %v2343_v40 = vsel %vm2311_vm0, %v6604_v23, 256.0  ;;  %vm2312_vm6 = vcmp.le.f32.partialorder %v8463_v17, %v2268_v43  ;;  %vm2313_vm1 = vcmp.le.f32.partialorder %v8468_v2, %v2268_v43  ;;  %2385 = vmin.xlane.f32.xlu1 %v2384_v35 }
 0x74b   : > { %v2375_v52 = vmin.f32 %v2342_v26, %v2343_v40  ;;  %v2344_v32 = vsel %vm2312_vm6, %v6602_v3, 256.0  ;;  %v2345_v19 = vsel %vm2313_vm1, %v6604_v23, 256.0 }
 0x74c   : > { %v2378_v18 = vmin.f32 %v2344_v32, %v2345_v19 }
 0x74d   : > { %v2262_v11 = vpop.xlane.xlu1 %2261  ;;  %2376 = vmin.xlane.f32.xlu0 %v2375_v52 }
 0x74e   : > { %vm2308_vm5 = vcmp.le.f32.partialorder %v8486_v54, %v2262_v11  ;;  %vm2309_vm7 = vcmp.le.f32.partialorder %v8491_v55, %v2262_v11  ;;  %2379 = vmin.xlane.f32.xlu1 %v2378_v18 }
 0x74f   : > { %v2340_v53 = vsel %vm2308_vm5, %v6602_v3, 256.0  ;;  %v2341_v20 = vsel %vm2309_vm7, %v6604_v23, 256.0 }
 0x750   : > { %v2372_v24 = vmin.f32 %v2340_v53, %v2341_v20 }
 0x752   : > { %2373 = vmin.xlane.f32.xlu1 %v2372_v24 }
 0x7ba   : > { %v2419_v37 = vpop.xlane.xlu0 %2418 }
 0x7bb   : > { %vm2450_vm9 = vcmp.eq.f32.partialorder %v6602_v3, %v2419_v37  ;;  %vm2451_vm8 = vcmp.eq.f32.partialorder %v6604_v23, %v2419_v37 }
 0x7bc   : > { %v8610_v38 = vsel %vm2450_vm9, inf, %v8226_v30  ;;  %v8613_v41 = vsel %vm2451_vm8, inf, %v8229_v15  ;;  %5657 = vmatprep.subr.msk.mxu1 %vm2451_vm8, %v6191_v28 }
 0x7bd   : > { %5658 = vmatpush2.xpose.msk.msra.mxu1 %vm2450_vm9, %v6191_v28  ;;  %v2625_v34 = vmin.f32 %v8610_v38, %v8613_v41 }
 0x7be   : > { %v2413_v36 = vpop.xlane.xlu0 %2412  ;;  %v2416_v12 = vpop.xlane.xlu1 %2415 }
 0x7bf   : > { %vm2446_vm10 = vcmp.eq.f32.partialorder %v6602_v3, %v2413_v36  ;;  %vm2447_vm11 = vcmp.eq.f32.partialorder %v6604_v23, %v2413_v36  ;;  %vm2448_vm12 = vcmp.eq.f32.partialorder %v6602_v3, %v2416_v12  ;;  %vm2449_vm13 = vcmp.eq.f32.partialorder %v6604_v23, %v2416_v12  ;;  %2626 = vmin.xlane.f32.xlu0 %v2625_v34 }
 0x7c0   : > { %v8626_v30 = vsel %vm2446_vm10, inf, %v8242_v14  ;;  %v8629_v15 = vsel %vm2447_vm11, inf, %v8252_v50  ;;  %v8632_v13 = vsel %vm2448_vm12, inf, %v8245_v8  ;;  %v8635_v51 = vsel %vm2449_vm13, inf, %v8248_v27  ;;  %5659 = vmatprep.subr.msk.mxu1 %vm2449_vm13, %v6191_v28 }
 0x7c1   : > { %5660 = vmatpush2.xpose.msk.msra.mxu1 %vm2448_vm12, %v6191_v28  ;;  %v2619_v60 = vmin.f32 %v8626_v30, %v8629_v15  ;;  %v2622_v14 = vmin.f32 %v8632_v13, %v8635_v51 }
 0x7c2   : > { %v2407_v48 = vpop.xlane.xlu0 %2406  ;;  %5661 = vmatprep.subr.msk.mxu1 %vm2447_vm11, %v6191_v28 }
 0x7c3   : > { %vm2442_vm14 = vcmp.eq.f32.partialorder %v6602_v3, %v2407_v48  ;;  %vm2443_vm15 = vcmp.eq.f32.partialorder %v6604_v23, %v2407_v48  ;;  %v2410_v8 = vpop.xlane.xlu1 %2409  ;;  %2620 = vmin.xlane.f32.xlu0 %v2619_v60  ;;  %2623 = vmin.xlane.f32.xlu1 %v2622_v14 }
 0x7c4   : > { %v8649_v27 = vsel %vm2442_vm14, inf, %v8265_v21  ;;  %v8654_v50 = vsel %vm2443_vm15, inf, %v8270_v25  ;;  %vm2444_vm3 = vcmp.eq.f32.partialorder %v6602_v3, %v2410_v8  ;;  %vm2445_vm2 = vcmp.eq.f32.partialorder %v6604_v23, %v2410_v8 }
 0x7c5   : > { %v8661_v45 = vsel %vm2444_vm3, inf, %v8277_v59  ;;  %v8664_v22 = vsel %vm2445_vm2, inf, %v8283_v9  ;;  %5662 = vmatpush2.xpose.msk.msra.mxu1 %vm2446_vm10, %v6191_v28  ;;  %v2613_v21 = vmin.f32 %v8649_v27, %v8654_v50 }
 0x7c6   : > { %v8671_v25 = vpop.xlane.xlu0 %2400  ;;  %5663 = vmatprep.subr.msk.mxu1 %vm2445_vm2, %v6191_v28  ;;  %v2616_v35 = vmin.f32 %v8661_v45, %v8664_v22 }
 0x7c7   : > { %vm2438_vm4 = vcmp.eq.f32.partialorder %v6602_v3, %v8671_v25  ;;  %vm2439_vm0 = vcmp.eq.f32.partialorder %v6604_v23, %v8671_v25  ;;  %v2404_v59 = vpop.xlane.xlu1 %2403  ;;  %2614 = vmin.xlane.f32.xlu0 %v2613_v21 }
 0x7c8   : > { %v8684_v9 = vsel %vm2438_vm4, inf, %v8300_v29  ;;  %v8690_v0 = vsel %vm2439_vm0, inf, %v8306_v16  ;;  %vm2440_vm6 = vcmp.eq.f32.partialorder %v6602_v3, %v2404_v59  ;;  %vm2441_vm1 = vcmp.eq.f32.partialorder %v6604_v23, %v2404_v59  ;;  %2617 = vmin.xlane.f32.xlu1 %v2616_v35 }
 0x7c9   : > { %v8697_v43 = vsel %vm2440_vm6, inf, %v8313_v39  ;;  %v8702_v29 = vsel %vm2441_vm1, inf, %v8318_v31  ;;  %5664 = vmatpush2.xpose.msk.msra.mxu1 %vm2444_vm3, %v6191_v28  ;;  %v2607_v16 = vmin.f32 %v8684_v9, %v8690_v0 }
 0x7ca   : > { %v8709_v26 = vpop.xlane.xlu0 %2394  ;;  %5665 = vmatprep.subr.msk.mxu1 %vm2443_vm15, %v6191_v28  ;;  %v2610_v39 = vmin.f32 %v8697_v43, %v8702_v29 }
 0x7cb   : > { %vm2434_vm5 = vcmp.eq.f32.partialorder %v6602_v3, %v8709_v26  ;;  %vm2435_vm7 = vcmp.eq.f32.partialorder %v6604_v23, %v8709_v26  ;;  %v2398_v31 = vpop.xlane.xlu1 %2397  ;;  %2608 = vmin.xlane.f32.xlu0 %v2607_v16 }
 0x7cc   : > { %v8724_v40 = vsel %vm2434_vm5, inf, %v8340_v47  ;;  %v8730_v52 = vsel %vm2435_vm7, inf, %v8346_v1  ;;  %vm2436_vm9 = vcmp.eq.f32.partialorder %v6602_v3, %v2398_v31  ;;  %vm2437_vm8 = vcmp.eq.f32.partialorder %v6604_v23, %v2398_v31  ;;  %2611 = vmin.xlane.f32.xlu1 %v2610_v39 }
 0x7cd   : > { %v8737_v32 = vsel %vm2436_vm9, inf, %v8353_v4  ;;  %v8742_v47 = vsel %vm2437_vm8, inf, %v8358_v5  ;;  %5666 = vmatpush2.xpose.msk.msra.mxu1 %vm2442_vm14, %v6191_v28  ;;  %v2601_v1 = vmin.f32 %v8724_v40, %v8730_v52 }
 0x7ce   : > { %v8749_v19 = vpop.xlane.xlu0 %2388  ;;  %5667 = vmatprep.subr.msk.mxu1 %vm2441_vm1, %v6191_v28  ;;  %v2604_v4 = vmin.f32 %v8737_v32, %v8742_v47 }
 0x7cf   : > { %vm2430_vm10 = vcmp.eq.f32.partialorder %v6602_v3, %v8749_v19  ;;  %vm2431_vm11 = vcmp.eq.f32.partialorder %v6604_v23, %v8749_v19  ;;  %v2392_v5 = vpop.xlane.xlu1 %2391  ;;  %2602 = vmin.xlane.f32.xlu0 %v2601_v1 }
 0x7d0   : > { %v8764_v18 = vsel %vm2430_vm10, inf, %v8380_v62  ;;  %v8770_v11 = vsel %vm2431_vm11, inf, %v8386_v57  ;;  %vm2432_vm12 = vcmp.eq.f32.partialorder %v6602_v3, %v2392_v5  ;;  %vm2433_vm13 = vcmp.eq.f32.partialorder %v6604_v23, %v2392_v5  ;;  %2605 = vmin.xlane.f32.xlu1 %v2604_v4 }
 0x7d1   : > { %v8777_v53 = vsel %vm2432_vm12, inf, %v8393_v44  ;;  %v8782_v62 = vsel %vm2433_vm13, inf, %v8398_v61  ;;  %5668 = vmatpush2.xpose.msk.msra.mxu1 %vm2440_vm6, %v6191_v28  ;;  %v2595_v57 = vmin.f32 %v8764_v18, %v8770_v11 }
 0x7d2   : > { %v2383_v20 = vpop.xlane.xlu0 %2382  ;;  %5669 = vmatprep.subr.msk.mxu1 %vm2439_vm0, %v6191_v28  ;;  %v2598_v44 = vmin.f32 %v8777_v53, %v8782_v62 }
 0x7d3   : > { %vm2426_vm14 = vcmp.eq.f32.partialorder %v6602_v3, %v2383_v20  ;;  %vm2427_vm15 = vcmp.eq.f32.partialorder %v6604_v23, %v2383_v20  ;;  %v2386_v61 = vpop.xlane.xlu1 %2385  ;;  %2596 = vmin.xlane.f32.xlu0 %v2595_v57 }
 0x7d4   : > { %v8800_v24 = vsel %vm2426_vm14, inf, %v8416_v49  ;;  %v8805_v37 = vsel %vm2427_vm15, inf, %v8421_v46  ;;  %vm2428_vm3 = vcmp.eq.f32.partialorder %v6602_v3, %v2386_v61  ;;  %vm2429_vm2 = vcmp.eq.f32.partialorder %v6604_v23, %v2386_v61  ;;  %2599 = vmin.xlane.f32.xlu1 %v2598_v44 }
 0x7d5   : > { %v8812_v34 = vsel %vm2428_vm3, inf, %v8428_v33  ;;  %v8817_v49 = vsel %vm2429_vm2, inf, %v8433_v58  ;;  %5670 = vmatpush2.xpose.msk.msra.mxu1 %vm2438_vm4, %v6191_v28  ;;  %v2589_v46 = vmin.f32 %v8800_v24, %v8805_v37 }
 0x7d6   : > { %v2377_v36 = vpop.xlane.xlu0 %2376  ;;  %5671 = vmatprep.subr.msk.mxu1 %vm2437_vm8, %v6191_v28  ;;  %v2592_v33 = vmin.f32 %v8812_v34, %v8817_v49 }
 0x7d7   : > { %vm9900_vm0 = vcmp.eq.f32.partialorder %v6602_v3, %v2377_v36  ;;  %vm2423_vm6 = vcmp.eq.f32.partialorder %v6604_v23, %v2377_v36  ;;  %v2380_v58 = vpop.xlane.xlu1 %2379  ;;  %2590 = vmin.xlane.f32.xlu0 %v2589_v46 }
 0x7d8   : > { %v8835_v12 = vsel %vm9900_vm0, inf, %v8451_v7  ;;  %v8840_v60 = vsel %vm2423_vm6, inf, %v8456_v42  ;;  %vm2424_vm4 = vcmp.eq.f32.partialorder %v6602_v3, %v2380_v58  ;;  %vm2425_vm1 = vcmp.eq.f32.partialorder %v6604_v23, %v2380_v58  ;;  %2593 = vmin.xlane.f32.xlu1 %v2592_v33 }
 0x7d9   : > { %v8847_v14 = vsel %vm2424_vm4, inf, %v8463_v17  ;;  %v8852_v7 = vsel %vm2425_vm1, inf, %v8468_v2  ;;  %5672 = vmatpush2.xpose.msk.msra.mxu1 %vm2436_vm9, %v6191_v28  ;;  %v2583_v42 = vmin.f32 %v8835_v12, %v8840_v60 }
 0x7da   : > { %5673 = vmatprep.subr.msk.mxu1 %vm2435_vm7, %v6191_v28  ;;  %v2586_v17 = vmin.f32 %v8847_v14, %v8852_v7 }
 0x7db   : > { %v2374_v48 = vpop.xlane.xlu1 %2373  ;;  %2584 = vmin.xlane.f32.xlu0 %v2583_v42 }
 0x7dc   : > { %vm2420_vm8 = vcmp.eq.f32.partialorder %v6602_v3, %v2374_v48  ;;  %vm2421_vm0 = vcmp.eq.f32.partialorder %v6604_v23, %v2374_v48  ;;  %2587 = vmin.xlane.f32.xlu1 %v2586_v17 }
 0x7dd   : > { %v8870_v2 = vsel %vm2420_vm8, inf, %v8486_v54  ;;  %v8875_v8 = vsel %vm2421_vm0, inf, %v8491_v55  ;;  %5674 = vmatpush2.xpose.msk.msra.mxu1 %vm2434_vm5, %v6191_v28  ;;  %vm9908_vm5 = vcmp.eq.f32.partialorder %v6602_v3, %v2377_v36 }
 0x7de   : > { %5675 = vmatprep.subr.msk.mxu1 %vm2433_vm13, %v6191_v28  ;;  %v2580_v21 = vmin.f32 %v8870_v2, %v8875_v8 }
 0x7e0   : > { %2581 = vmin.xlane.f32.xlu1 %v2580_v21 }
 0x7e1   : > { %5676 = vmatpush2.xpose.msk.msra.mxu1 %vm2432_vm12, %v6191_v28 }
 0x7e2   : > { %5677 = vmatprep.subr.msk.mxu1 %vm2431_vm11, %v6191_v28 }
 0x7e5   : > { %5678 = vmatpush2.xpose.msk.msra.mxu1 %vm2430_vm10, %v6191_v28 }
 0x7e6   : > { %5679 = vmatprep.subr.msk.mxu1 %vm2429_vm2, %v6191_v28 }
 0x7e9   : > { %5680 = vmatpush2.xpose.msk.msra.mxu1 %vm2428_vm3, %v6191_v28 }
 0x7ea   : > { %5681 = vmatprep.subr.msk.mxu1 %vm2427_vm15, %v6191_v28 }
 0x7ed   : > { %5682 = vmatpush2.xpose.msk.msra.mxu1 %vm2426_vm14, %v6191_v28 }
 0x7ee   : > { %5683 = vmatprep.subr.msk.mxu1 %vm2425_vm1, %v6191_v28 }
 0x7f1   : > { %5684 = vmatpush2.xpose.msk.msra.mxu1 %vm2424_vm4, %v6191_v28 }
 0x7f2   : > { %5685 = vmatprep.subr.msk.mxu1 %vm2423_vm6, %v6191_v28 }
 0x7f5   : > { %5686 = vmatpush2.xpose.msk.msra.mxu1 %vm9908_vm5, %v6191_v28 }
 0x7f6   : > { %5687 = vmatprep.subr.msk.mxu1 %vm2421_vm0, %v6191_v28 }
 0x7f9   : > { %5688 = vmatpush2.xpose.msk.msra.mxu1 %vm2420_vm8, %v6191_v28 }
 0x848   : > { %v2627_v54 = vpop.xlane.xlu0 %2626 }
 0x849   : > { %vm2658_vm7 = vcmp.le.f32.partialorder %v8610_v38, %v2627_v54  ;;  %vm2659_vm9 = vcmp.le.f32.partialorder %v8613_v41, %v2627_v54 }
 0x84a   : > { %v2690_v55 = vsel %vm2658_vm7, %v6602_v3, 256.0  ;;  %v2691_v25 = vsel %vm2659_vm9, %v6604_v23, 256.0 }
 0x84b   : > { %v2737_v35 = vmin.f32 %v2690_v55, %v2691_v25 }
 0x84c   : > { %v2621_v59 = vpop.xlane.xlu0 %2620  ;;  %v2624_v16 = vpop.xlane.xlu1 %2623 }
 0x84d   : > { %vm2654_vm10 = vcmp.le.f32.partialorder %v8626_v30, %v2621_v59  ;;  %vm2655_vm11 = vcmp.le.f32.partialorder %v8629_v15, %v2621_v59  ;;  %vm2656_vm12 = vcmp.le.f32.partialorder %v8632_v13, %v2624_v16  ;;  %vm2657_vm13 = vcmp.le.f32.partialorder %v8635_v51, %v2624_v16  ;;  %2738 = vmin.xlane.f32.xlu0 %v2737_v35 }
 0x84e   : > { %v2686_v26 = vsel %vm2654_vm10, %v6602_v3, 256.0  ;;  %v2687_v39 = vsel %vm2655_vm11, %v6604_v23, 256.0  ;;  %v2688_v31 = vsel %vm2656_vm12, %v6602_v3, 256.0  ;;  %v2689_v1 = vsel %vm2657_vm13, %v6604_v23, 256.0 }
 0x84f   : > { %v2731_v19 = vmin.f32 %v2686_v26, %v2687_v39  ;;  %v2734_v4 = vmin.f32 %v2688_v31, %v2689_v1 }
 0x850   : > { %v2615_v5 = vpop.xlane.xlu0 %2614 }
 0x851   : > { %vm2650_vm14 = vcmp.le.f32.partialorder %v8649_v27, %v2615_v5  ;;  %vm2651_vm15 = vcmp.le.f32.partialorder %v8654_v50, %v2615_v5  ;;  %v2618_v57 = vpop.xlane.xlu1 %2617  ;;  %2732 = vmin.xlane.f32.xlu0 %v2731_v19  ;;  %2735 = vmin.xlane.f32.xlu1 %v2734_v4 }
 0x852   : > { %v2682_v20 = vsel %vm2650_vm14, %v6602_v3, 256.0  ;;  %v2683_v44 = vsel %vm2651_vm15, %v6604_v23, 256.0  ;;  %vm2652_vm3 = vcmp.le.f32.partialorder %v8661_v45, %v2618_v57  ;;  %vm2653_vm2 = vcmp.le.f32.partialorder %v8664_v22, %v2618_v57 }
 0x853   : > { %v2725_v61 = vmin.f32 %v2682_v20, %v2683_v44  ;;  %v2684_v46 = vsel %vm2652_vm3, %v6602_v3, 256.0  ;;  %v2685_v36 = vsel %vm2653_vm2, %v6604_v23, 256.0 }
 0x854   : > { %v2728_v33 = vmin.f32 %v2684_v46, %v2685_v36  ;;  %v2609_v58 = vpop.xlane.xlu0 %2608 }
 0x855   : > { %vm2646_vm0 = vcmp.le.f32.partialorder %v8684_v9, %v2609_v58  ;;  %vm2647_vm6 = vcmp.le.f32.partialorder %v8690_v0, %v2609_v58  ;;  %v2612_v42 = vpop.xlane.xlu1 %2611  ;;  %2726 = vmin.xlane.f32.xlu0 %v2725_v61 }
 0x856   : > { %v2678_v17 = vsel %vm2646_vm0, %v6602_v3, 256.0  ;;  %v2679_v48 = vsel %vm2647_vm6, %v6604_v23, 256.0  ;;  %vm2648_vm4 = vcmp.le.f32.partialorder %v8697_v43, %v2612_v42  ;;  %vm2649_vm1 = vcmp.le.f32.partialorder %v8702_v29, %v2612_v42  ;;  %2729 = vmin.xlane.f32.xlu1 %v2728_v33 }
 0x857   : > { %v2719_v21 = vmin.f32 %v2678_v17, %v2679_v48  ;;  %v2680_v54 = vsel %vm2648_vm4, %v6602_v3, 256.0  ;;  %v2681_v55 = vsel %vm2649_vm1, %v6604_v23, 256.0 }
 0x858   : > { %v2722_v25 = vmin.f32 %v2680_v54, %v2681_v55  ;;  %v2603_v35 = vpop.xlane.xlu0 %2602 }
 0x859   : > { %vm2642_vm8 = vcmp.le.f32.partialorder %v8724_v40, %v2603_v35  ;;  %vm2643_vm5 = vcmp.le.f32.partialorder %v8730_v52, %v2603_v35  ;;  %v2606_v59 = vpop.xlane.xlu1 %2605  ;;  %2720 = vmin.xlane.f32.xlu0 %v2719_v21 }
 0x85a   : > { %v2674_v16 = vsel %vm2642_vm8, %v6602_v3, 256.0  ;;  %v2675_v26 = vsel %vm2643_vm5, %v6604_v23, 256.0  ;;  %vm2644_vm7 = vcmp.le.f32.partialorder %v8737_v32, %v2606_v59  ;;  %vm2645_vm9 = vcmp.le.f32.partialorder %v8742_v47, %v2606_v59  ;;  %2723 = vmin.xlane.f32.xlu1 %v2722_v25 }
 0x85b   : > { %v2713_v39 = vmin.f32 %v2674_v16, %v2675_v26  ;;  %v2676_v31 = vsel %vm2644_vm7, %v6602_v3, 256.0  ;;  %v2677_v1 = vsel %vm2645_vm9, %v6604_v23, 256.0 }
 0x85c   : > { %v2716_v19 = vmin.f32 %v2676_v31, %v2677_v1  ;;  %v2597_v4 = vpop.xlane.xlu0 %2596 }
 0x85d   : > { %vm2638_vm10 = vcmp.le.f32.partialorder %v8764_v18, %v2597_v4  ;;  %vm2639_vm11 = vcmp.le.f32.partialorder %v8770_v11, %v2597_v4  ;;  %v2600_v5 = vpop.xlane.xlu1 %2599  ;;  %2714 = vmin.xlane.f32.xlu0 %v2713_v39 }
 0x85e   : > { %v2670_v57 = vsel %vm2638_vm10, %v6602_v3, 256.0  ;;  %v2671_v20 = vsel %vm2639_vm11, %v6604_v23, 256.0  ;;  %vm2640_vm12 = vcmp.le.f32.partialorder %v8777_v53, %v2600_v5  ;;  %vm2641_vm13 = vcmp.le.f32.partialorder %v8782_v62, %v2600_v5  ;;  %2717 = vmin.xlane.f32.xlu1 %v2716_v19 }
 0x85f   : > { %v2707_v44 = vmin.f32 %v2670_v57, %v2671_v20  ;;  %v2672_v61 = vsel %vm2640_vm12, %v6602_v3, 256.0  ;;  %v2673_v46 = vsel %vm2641_vm13, %v6604_v23, 256.0  ;;  %v3361_v20 = vpop.f32.mrf.mxu1 }
 0x860   : > { %v2710_v36 = vmin.f32 %v2672_v61, %v2673_v46  ;;  %v2591_v33 = vpop.xlane.xlu0 %2590 }
 0x861   : > { %vm2634_vm14 = vcmp.le.f32.partialorder %v8800_v24, %v2591_v33  ;;  %vm2635_vm15 = vcmp.le.f32.partialorder %v8805_v37, %v2591_v33  ;;  %v2594_v58 = vpop.xlane.xlu1 %2593  ;;  %2708 = vmin.xlane.f32.xlu0 %v2707_v44  ;;  %v8992_v44 = vadd.f32 %v3361_v20, %v8138_v56  ;;  %v3363_v61 = vpop.f32.mrf.mxu1 }
 0x862   : > { %v2666_v42 = vsel %vm2634_vm14, %v6602_v3, 256.0  ;;  %v2667_v17 = vsel %vm2635_vm15, %v6604_v23, 256.0  ;;  %vm2636_vm3 = vcmp.le.f32.partialorder %v8812_v34, %v2594_v58  ;;  %vm2637_vm2 = vcmp.le.f32.partialorder %v8817_v49, %v2594_v58  ;;  %2711 = vmin.xlane.f32.xlu1 %v2710_v36 }
 0x863   : > { %v2701_v48 = vmin.f32 %v2666_v42, %v2667_v17  ;;  %v2668_v21 = vsel %vm2636_vm3, %v6602_v3, 256.0  ;;  %v2669_v54 = vsel %vm2637_vm2, %v6604_v23, 256.0  ;;  %v8995_v46 = vadd.f32 %v3363_v61, %v8140_v10 }
 0x864   : > { %v2704_v55 = vmin.f32 %v2668_v21, %v2669_v54  ;;  %v2585_v25 = vpop.xlane.xlu0 %2584 }
 0x865   : > { %vm2630_vm0 = vcmp.le.f32.partialorder %v8835_v12, %v2585_v25  ;;  %vm2631_vm6 = vcmp.le.f32.partialorder %v8840_v60, %v2585_v25  ;;  %v2588_v35 = vpop.xlane.xlu1 %2587  ;;  %2702 = vmin.xlane.f32.xlu0 %v2701_v48  ;;  %3817 = vmatprep.mubr.f32.mxu1 %v8995_v46 }
 0x866   : > { %v2662_v59 = vsel %vm2630_vm0, %v6602_v3, 256.0  ;;  %v2663_v16 = vsel %vm2631_vm6, %v6604_v23, 256.0  ;;  %vm2632_vm4 = vcmp.le.f32.partialorder %v8847_v14, %v2588_v35  ;;  %vm2633_vm1 = vcmp.le.f32.partialorder %v8852_v7, %v2588_v35  ;;  %2705 = vmin.xlane.f32.xlu1 %v2704_v55  ;;  %3894 = vmatprep.mubr.f32.mxu0 %v8995_v46 }
 0x867   : > { %v2695_v26 = vmin.f32 %v2662_v59, %v2663_v16  ;;  %v2664_v39 = vsel %vm2632_vm4, %v6602_v3, 256.0  ;;  %v2665_v31 = vsel %vm2633_vm1, %v6604_v23, 256.0  ;;  %3818 = vmatmul.mubr.f32.gmra.mxu1 %v8992_v44  ;;  %3895 = vmatmul.mubr.f32.gmra.mxu0 %v8992_v44 }
 0x868   : > { %v2698_v1 = vmin.f32 %v2664_v39, %v2665_v31  ;;  %3965 = vmatprep.mubr.f32.mxu1 %v8153_v63  ;;  %4042 = vmatprep.mubr.f32.mxu0 %v8153_v63 }
 0x869   : > { %v2582_v19 = vpop.xlane.xlu1 %2581  ;;  %2696 = vmin.xlane.f32.xlu0 %v2695_v26 }
 0x86a   : > { %vm2628_vm8 = vcmp.le.f32.partialorder %v8870_v2, %v2582_v19  ;;  %vm2629_vm5 = vcmp.le.f32.partialorder %v8875_v8, %v2582_v19  ;;  %2699 = vmin.xlane.f32.xlu1 %v2698_v1 }
 0x86b   : > { %v2660_v4 = vsel %vm2628_vm8, %v6602_v3, 256.0  ;;  %v2661_v5 = vsel %vm2629_vm5, %v6604_v23, 256.0  ;;  %3966 = vmatmul.mubr.f32.vlgmr.msra.gmra.mxu1 %v8148_v6 }
 0x86c   : > { %v2692_v57 = vmin.f32 %v2660_v4, %v2661_v5  ;;  %3971 = vmatprep.mubr.f32.mxu1 %v8995_v46 }
 0x86e   : > { %2693 = vmin.xlane.f32.xlu1 %v2692_v57 }
 0x86f   : > { %3972 = vmatmul.mubr.f32.gmra.mxu1 %v8992_v44 }
 0x8d6   : > { %v2739_v56 = vpop.xlane.xlu0 %2738 }
 0x8d7   : > { %vm2770_vm7 = vcmp.eq.f32.partialorder %v6602_v3, %v2739_v56  ;;  %vm2771_vm9 = vcmp.eq.f32.partialorder %v6604_v23, %v2739_v56 }
 0x8d8   : > { %v9009_v10 = vsel %vm2770_vm7, inf, %v8610_v38  ;;  %v9012_v36 = vsel %vm2771_vm9, inf, %v8613_v41  ;;  %5689 = vmatprep.subr.msk.mxu0 %vm2771_vm9, %v6191_v28 }
 0x8d9   : > { %v2945_v63 = vmin.f32 %v9009_v10, %v9012_v36  ;;  %5690 = vmatpush1.xpose.msk.msra.mxu0 %vm2770_vm7, %v6191_v28 }
 0x8da   : > { %v2733_v33 = vpop.xlane.xlu0 %2732  ;;  %v2736_v58 = vpop.xlane.xlu1 %2735 }
 0x8db   : > { %vm2766_vm10 = vcmp.eq.f32.partialorder %v6602_v3, %v2733_v33  ;;  %vm2767_vm11 = vcmp.eq.f32.partialorder %v6604_v23, %v2733_v33  ;;  %vm2768_vm12 = vcmp.eq.f32.partialorder %v6602_v3, %v2736_v58  ;;  %vm2769_vm13 = vcmp.eq.f32.partialorder %v6604_v23, %v2736_v58  ;;  %2946 = vmin.xlane.f32.xlu0 %v2945_v63 }
 0x8dc   : > { %v9025_v38 = vsel %vm2766_vm10, inf, %v8626_v30  ;;  %v9028_v41 = vsel %vm2767_vm11, inf, %v8629_v15  ;;  %v9031_v42 = vsel %vm2768_vm12, inf, %v8632_v13  ;;  %v9034_v17 = vsel %vm2769_vm13, inf, %v8635_v51  ;;  %5691 = vmatprep.subr.msk.mxu0 %vm2769_vm13, %v6191_v28 }
 0x8dd   : > { %v2939_v48 = vmin.f32 %v9025_v38, %v9028_v41  ;;  %v2942_v21 = vmin.f32 %v9031_v42, %v9034_v17  ;;  %5692 = vmatpush1.xpose.msk.msra.mxu0 %vm2768_vm12, %v6191_v28 }
 0x8de   : > { %v2727_v30 = vpop.xlane.xlu0 %2726  ;;  %5693 = vmatprep.subr.msk.mxu0 %vm2767_vm11, %v6191_v28 }
 0x8df   : > { %vm2762_vm14 = vcmp.eq.f32.partialorder %v6602_v3, %v2727_v30  ;;  %vm2763_vm15 = vcmp.eq.f32.partialorder %v6604_v23, %v2727_v30  ;;  %v2730_v15 = vpop.xlane.xlu1 %2729  ;;  %2940 = vmin.xlane.f32.xlu0 %v2939_v48  ;;  %2943 = vmin.xlane.f32.xlu1 %v2942_v21 }
 0x8e0   : > { %v9048_v13 = vsel %vm2762_vm14, inf, %v8649_v27  ;;  %v9053_v51 = vsel %vm2763_vm15, inf, %v8654_v50  ;;  %vm2764_vm3 = vcmp.eq.f32.partialorder %v6602_v3, %v2730_v15  ;;  %vm2765_vm2 = vcmp.eq.f32.partialorder %v6604_v23, %v2730_v15 }
 0x8e1   : > { %v2933_v54 = vmin.f32 %v9048_v13, %v9053_v51  ;;  %v9062_v55 = vsel %vm2764_vm3, inf, %v8661_v45  ;;  %v9065_v27 = vsel %vm2765_vm2, inf, %v8664_v22  ;;  %5694 = vmatpush1.xpose.msk.msra.mxu0 %vm2766_vm10, %v6191_v28 }
 0x8e2   : > { %v2936_v50 = vmin.f32 %v9062_v55, %v9065_v27  ;;  %v9072_v25 = vpop.xlane.xlu0 %2720  ;;  %5695 = vmatprep.subr.msk.mxu0 %vm2765_vm2, %v6191_v28 }
 0x8e3   : > { %vm2758_vm0 = vcmp.eq.f32.partialorder %v6602_v3, %v9072_v25  ;;  %vm2759_vm6 = vcmp.eq.f32.partialorder %v6604_v23, %v9072_v25  ;;  %v2724_v45 = vpop.xlane.xlu1 %2723  ;;  %2934 = vmin.xlane.f32.xlu0 %v2933_v54 }
 0x8e4   : > { %v9083_v22 = vsel %vm2758_vm0, inf, %v8684_v9  ;;  %v9089_v35 = vsel %vm2759_vm6, inf, %v8690_v0  ;;  %vm2760_vm4 = vcmp.eq.f32.partialorder %v6602_v3, %v2724_v45  ;;  %vm2761_vm1 = vcmp.eq.f32.partialorder %v6604_v23, %v2724_v45  ;;  %2937 = vmin.xlane.f32.xlu1 %v2936_v50 }
 0x8e5   : > { %v2927_v59 = vmin.f32 %v9083_v22, %v9089_v35  ;;  %v9098_v16 = vsel %vm2760_vm4, inf, %v8697_v43  ;;  %v9103_v9 = vsel %vm2761_vm1, inf, %v8702_v29  ;;  %5696 = vmatpush1.xpose.msk.msra.mxu0 %vm2764_vm3, %v6191_v28 }
 0x8e6   : > { %v2930_v0 = vmin.f32 %v9098_v16, %v9103_v9  ;;  %v9110_v26 = vpop.xlane.xlu0 %2714  ;;  %5697 = vmatprep.subr.msk.mxu0 %vm2763_vm15, %v6191_v28 }
 0x8e7   : > { %vm2754_vm8 = vcmp.eq.f32.partialorder %v6602_v3, %v9110_v26  ;;  %vm2755_vm5 = vcmp.eq.f32.partialorder %v6604_v23, %v9110_v26  ;;  %v2718_v43 = vpop.xlane.xlu1 %2717  ;;  %2928 = vmin.xlane.f32.xlu0 %v2927_v59 }
 0x8e8   : > { %v9123_v29 = vsel %vm2754_vm8, inf, %v8724_v40  ;;  %v9129_v39 = vsel %vm2755_vm5, inf, %v8730_v52  ;;  %vm2756_vm7 = vcmp.eq.f32.partialorder %v6602_v3, %v2718_v43  ;;  %vm2757_vm9 = vcmp.eq.f32.partialorder %v6604_v23, %v2718_v43  ;;  %2931 = vmin.xlane.f32.xlu1 %v2930_v0 }
 0x8e9   : > { %v2921_v31 = vmin.f32 %v9123_v29, %v9129_v39  ;;  %v9138_v1 = vsel %vm2756_vm7, inf, %v8737_v32  ;;  %v9143_v40 = vsel %vm2757_vm9, inf, %v8742_v47  ;;  %5698 = vmatpush1.xpose.msk.msra.mxu0 %vm2762_vm14, %v6191_v28 }
 0x8ea   : > { %v2924_v52 = vmin.f32 %v9138_v1, %v9143_v40  ;;  %v9150_v19 = vpop.xlane.xlu0 %2708  ;;  %5699 = vmatprep.subr.msk.mxu0 %vm2761_vm1, %v6191_v28 }
 0x8eb   : > { %vm2750_vm10 = vcmp.eq.f32.partialorder %v6602_v3, %v9150_v19  ;;  %vm2751_vm11 = vcmp.eq.f32.partialorder %v6604_v23, %v9150_v19  ;;  %v2712_v32 = vpop.xlane.xlu1 %2711  ;;  %2922 = vmin.xlane.f32.xlu0 %v2921_v31 }
 0x8ec   : > { %v9163_v47 = vsel %vm2750_vm10, inf, %v8764_v18  ;;  %v9169_v4 = vsel %vm2751_vm11, inf, %v8770_v11  ;;  %vm2752_vm12 = vcmp.eq.f32.partialorder %v6602_v3, %v2712_v32  ;;  %vm2753_vm13 = vcmp.eq.f32.partialorder %v6604_v23, %v2712_v32  ;;  %2925 = vmin.xlane.f32.xlu1 %v2924_v52 }
 0x8ed   : > { %v2915_v5 = vmin.f32 %v9163_v47, %v9169_v4  ;;  %v9178_v57 = vsel %vm2752_vm12, inf, %v8777_v53  ;;  %v9183_v18 = vsel %vm2753_vm13, inf, %v8782_v62  ;;  %5700 = vmatpush1.xpose.msk.msra.mxu0 %vm2760_vm4, %v6191_v28 }
 0x8ee   : > { %v2918_v11 = vmin.f32 %v9178_v57, %v9183_v18  ;;  %v2703_v20 = vpop.xlane.xlu0 %2702  ;;  %5701 = vmatprep.subr.msk.mxu0 %vm2759_vm6, %v6191_v28 }
 0x8ef   : > { %vm2746_vm14 = vcmp.eq.f32.partialorder %v6602_v3, %v2703_v20  ;;  %vm2747_vm15 = vcmp.eq.f32.partialorder %v6604_v23, %v2703_v20  ;;  %v2706_v53 = vpop.xlane.xlu1 %2705  ;;  %2916 = vmin.xlane.f32.xlu0 %v2915_v5 }
 0x8f0   : > { %v9199_v62 = vsel %vm2746_vm14, inf, %v8800_v24  ;;  %v9204_v61 = vsel %vm2747_vm15, inf, %v8805_v37  ;;  %vm2748_vm3 = vcmp.eq.f32.partialorder %v6602_v3, %v2706_v53  ;;  %vm2749_vm2 = vcmp.eq.f32.partialorder %v6604_v23, %v2706_v53  ;;  %2919 = vmin.xlane.f32.xlu1 %v2918_v11 }
 0x8f1   : > { %v2909_v56 = vmin.f32 %v9199_v62, %v9204_v61  ;;  %v9213_v63 = vsel %vm2748_vm3, inf, %v8812_v34  ;;  %v9218_v24 = vsel %vm2749_vm2, inf, %v8817_v49  ;;  %5702 = vmatpush1.xpose.msk.msra.mxu0 %vm2758_vm0, %v6191_v28 }
 0x8f2   : > { %v2912_v37 = vmin.f32 %v9213_v63, %v9218_v24  ;;  %v2697_v33 = vpop.xlane.xlu0 %2696  ;;  %5703 = vmatprep.subr.msk.mxu0 %vm2757_vm9, %v6191_v28 }
 0x8f3   : > { %vm9901_vm6 = vcmp.eq.f32.partialorder %v6602_v3, %v2697_v33  ;;  %vm2743_vm4 = vcmp.eq.f32.partialorder %v6604_v23, %v2697_v33  ;;  %v2700_v34 = vpop.xlane.xlu1 %2699  ;;  %2910 = vmin.xlane.f32.xlu0 %v2909_v56 }
 0x8f4   : > { %v9234_v49 = vsel %vm9901_vm6, inf, %v8835_v12  ;;  %v9239_v58 = vsel %vm2743_vm4, inf, %v8840_v60  ;;  %vm2744_vm0 = vcmp.eq.f32.partialorder %v6602_v3, %v2700_v34  ;;  %vm2745_vm1 = vcmp.eq.f32.partialorder %v6604_v23, %v2700_v34  ;;  %2913 = vmin.xlane.f32.xlu1 %v2912_v37 }
 0x8f5   : > { %v2903_v48 = vmin.f32 %v9234_v49, %v9239_v58  ;;  %v9248_v21 = vsel %vm2744_vm0, inf, %v8847_v14  ;;  %v9253_v12 = vsel %vm2745_vm1, inf, %v8852_v7  ;;  %5704 = vmatpush1.xpose.msk.msra.mxu0 %vm2756_vm7, %v6191_v28 }
 0x8f6   : > { %v2906_v60 = vmin.f32 %v9248_v21, %v9253_v12  ;;  %5705 = vmatprep.subr.msk.mxu0 %vm2755_vm5, %v6191_v28 }
 0x8f7   : > { %v2694_v30 = vpop.xlane.xlu1 %2693  ;;  %2904 = vmin.xlane.f32.xlu0 %v2903_v48 }
 0x8f8   : > { %vm2740_vm9 = vcmp.eq.f32.partialorder %v6602_v3, %v2694_v30  ;;  %vm2741_vm6 = vcmp.eq.f32.partialorder %v6604_v23, %v2694_v30  ;;  %2907 = vmin.xlane.f32.xlu1 %v2906_v60 }
 0x8f9   : > { %v9269_v14 = vsel %vm2740_vm9, inf, %v8870_v2  ;;  %v9274_v7 = vsel %vm2741_vm6, inf, %v8875_v8  ;;  %5706 = vmatpush1.xpose.msk.msra.mxu0 %vm2754_vm8, %v6191_v28  ;;  %vm9909_vm8 = vcmp.eq.f32.partialorder %v6602_v3, %v2697_v33 }
 0x8fa   : > { %v2900_v15 = vmin.f32 %v9269_v14, %v9274_v7  ;;  %5707 = vmatprep.subr.msk.mxu0 %vm2753_vm13, %v6191_v28 }
 0x8fc   : > { %2901 = vmin.xlane.f32.xlu1 %v2900_v15 }
 0x8fd   : > { %5708 = vmatpush1.xpose.msk.msra.mxu0 %vm2752_vm12, %v6191_v28 }
 0x8fe   : > { %5709 = vmatprep.subr.msk.mxu0 %vm2751_vm11, %v6191_v28 }
 0x901   : > { %5710 = vmatpush1.xpose.msk.msra.mxu0 %vm2750_vm10, %v6191_v28 }
 0x902   : > { %5711 = vmatprep.subr.msk.mxu0 %vm2749_vm2, %v6191_v28 }
 0x905   : > { %5712 = vmatpush1.xpose.msk.msra.mxu0 %vm2748_vm3, %v6191_v28 }
 0x906   : > { %5713 = vmatprep.subr.msk.mxu0 %vm2747_vm15, %v6191_v28 }
 0x909   : > { %5714 = vmatpush1.xpose.msk.msra.mxu0 %vm2746_vm14, %v6191_v28 }
 0x90a   : > { %5715 = vmatprep.subr.msk.mxu0 %vm2745_vm1, %v6191_v28 }
 0x90d   : > { %5716 = vmatpush1.xpose.msk.msra.mxu0 %vm2744_vm0, %v6191_v28 }
 0x90e   : > { %5717 = vmatprep.subr.msk.mxu0 %vm2743_vm4, %v6191_v28 }
 0x911   : > { %5718 = vmatpush1.xpose.msk.msra.mxu0 %vm9909_vm8, %v6191_v28 }
 0x912   : > { %5719 = vmatprep.subr.msk.mxu0 %vm2741_vm6, %v6191_v28 }
 0x915   : > { %5720 = vmatpush1.xpose.msk.msra.mxu0 %vm2740_vm9, %v6191_v28 }
 0x964   : > { %v2947_v2 = vpop.xlane.xlu0 %2946 }
 0x965   : > { %vm2978_vm5 = vcmp.le.f32.partialorder %v9009_v10, %v2947_v2  ;;  %vm2979_vm7 = vcmp.le.f32.partialorder %v9012_v36, %v2947_v2 }
 0x966   : > { %v3010_v8 = vsel %vm2978_vm5, %v6602_v3, 256.0  ;;  %v3011_v54 = vsel %vm2979_vm7, %v6604_v23, 256.0 }
 0x967   : > { %v3057_v50 = vmin.f32 %v3010_v8, %v3011_v54 }
 0x968   : > { %v2941_v25 = vpop.xlane.xlu0 %2940  ;;  %v2944_v45 = vpop.xlane.xlu1 %2943 }
 0x969   : > { %vm2974_vm10 = vcmp.le.f32.partialorder %v9025_v38, %v2941_v25  ;;  %vm2975_vm11 = vcmp.le.f32.partialorder %v9028_v41, %v2941_v25  ;;  %vm2976_vm12 = vcmp.le.f32.partialorder %v9031_v42, %v2944_v45  ;;  %vm2977_vm13 = vcmp.le.f32.partialorder %v9034_v17, %v2944_v45  ;;  %3058 = vmin.xlane.f32.xlu0 %v3057_v50 }
 0x96a   : > { %v3006_v10 = vsel %vm2974_vm10, %v6602_v3, 256.0  ;;  %v3007_v36 = vsel %vm2975_vm11, %v6604_v23, 256.0  ;;  %v3008_v59 = vsel %vm2976_vm12, %v6602_v3, 256.0  ;;  %v3009_v0 = vsel %vm2977_vm13, %v6604_v23, 256.0 }
 0x96b   : > { %v3051_v26 = vmin.f32 %v3006_v10, %v3007_v36  ;;  %v3054_v43 = vmin.f32 %v3008_v59, %v3009_v0 }
 0x96c   : > { %v2935_v31 = vpop.xlane.xlu0 %2934 }
 0x96d   : > { %vm2970_vm14 = vcmp.le.f32.partialorder %v9048_v13, %v2935_v31  ;;  %vm2971_vm15 = vcmp.le.f32.partialorder %v9053_v51, %v2935_v31  ;;  %v2938_v38 = vpop.xlane.xlu1 %2937  ;;  %3052 = vmin.xlane.f32.xlu0 %v3051_v26  ;;  %3055 = vmin.xlane.f32.xlu1 %v3054_v43 }
 0x96e   : > { %v3002_v41 = vsel %vm2970_vm14, %v6602_v3, 256.0  ;;  %v3003_v42 = vsel %vm2971_vm15, %v6604_v23, 256.0  ;;  %vm2972_vm3 = vcmp.le.f32.partialorder %v9062_v55, %v2938_v38  ;;  %vm2973_vm2 = vcmp.le.f32.partialorder %v9065_v27, %v2938_v38 }
 0x96f   : > { %v3045_v17 = vmin.f32 %v3002_v41, %v3003_v42  ;;  %v3004_v52 = vsel %vm2972_vm3, %v6602_v3, 256.0  ;;  %v3005_v19 = vsel %vm2973_vm2, %v6604_v23, 256.0 }
 0x970   : > { %v3048_v32 = vmin.f32 %v3004_v52, %v3005_v19  ;;  %v2929_v13 = vpop.xlane.xlu0 %2928 }
 0x971   : > { %vm2966_vm6 = vcmp.le.f32.partialorder %v9083_v22, %v2929_v13  ;;  %vm2967_vm4 = vcmp.le.f32.partialorder %v9089_v35, %v2929_v13  ;;  %v2932_v51 = vpop.xlane.xlu1 %2931  ;;  %3046 = vmin.xlane.f32.xlu0 %v3045_v17 }
 0x972   : > { %v2998_v5 = vsel %vm2966_vm6, %v6602_v3, 256.0  ;;  %v2999_v11 = vsel %vm2967_vm4, %v6604_v23, 256.0  ;;  %vm2968_vm0 = vcmp.le.f32.partialorder %v9098_v16, %v2932_v51  ;;  %vm2969_vm1 = vcmp.le.f32.partialorder %v9103_v9, %v2932_v51  ;;  %3049 = vmin.xlane.f32.xlu1 %v3048_v32 }
 0x973   : > { %v3039_v55 = vmin.f32 %v2998_v5, %v2999_v11  ;;  %v3000_v27 = vsel %vm2968_vm0, %v6602_v3, 256.0  ;;  %v3001_v20 = vsel %vm2969_vm1, %v6604_v23, 256.0  ;;  %v3813_v5 = vpop.f32.mrf.mxu1  ;;  %v5805_v11 = vpop.f32.mrf.mxu0 }
 0x974   : > { %v3042_v53 = vmin.f32 %v3000_v27, %v3001_v20  ;;  %v2923_v22 = vpop.xlane.xlu0 %2922 }
 0x975   : > { %vm2962_vm9 = vcmp.le.f32.partialorder %v9123_v29, %v2923_v22  ;;  %vm2963_vm8 = vcmp.le.f32.partialorder %v9129_v39, %v2923_v22  ;;  %v2926_v35 = vpop.xlane.xlu1 %2925  ;;  %3040 = vmin.xlane.f32.xlu0 %v3039_v55  ;;  %v3815_v55 = vpop.f32.mrf.mxu1 }
 0x976   : > { %v2994_v56 = vsel %vm2962_vm9, %v6602_v3, 256.0  ;;  %v2995_v16 = vsel %vm2963_vm8, %v6604_v23, 256.0  ;;  %vm2964_vm5 = vcmp.le.f32.partialorder %v9138_v1, %v2926_v35  ;;  %vm2965_vm7 = vcmp.le.f32.partialorder %v9143_v40, %v2926_v35  ;;  %3043 = vmin.xlane.f32.xlu1 %v3042_v53  ;;  %v3480_v27 = vpop.f32.mrf.mxu0 }
 0x977   : > { %v3033_v9 = vmin.f32 %v2994_v56, %v2995_v16  ;;  %v2996_v37 = vsel %vm2964_vm5, %v6602_v3, 256.0  ;;  %v2997_v33 = vsel %vm2965_vm7, %v6604_v23, 256.0  ;;  %v3489_v20 = vsub.f32 0.0, %v3480_v27 }
 0x978   : > { %v3036_v34 = vmin.f32 %v2996_v37, %v2997_v33  ;;  %v2917_v29 = vpop.xlane.xlu0 %2916  ;;  %v3890_v53 = vpop.f32.mrf.mxu0 }
 0x979   : > { %vm2958_vm10 = vcmp.le.f32.partialorder %v9163_v47, %v2917_v29  ;;  %vm2959_vm11 = vcmp.le.f32.partialorder %v9169_v4, %v2917_v29  ;;  %v2920_v39 = vpop.xlane.xlu1 %2919  ;;  %3034 = vmin.xlane.f32.xlu0 %v3033_v9  ;;  %v9457_v22 = vadd.f32 %v3813_v5, %v3489_v20  ;;  %v9459_v35 = vadd.f32 %v3815_v55, %v3489_v20 }
 0x97a   : > { %v2990_v48 = vsel %vm2958_vm10, %v6602_v3, 256.0  ;;  %v2991_v1 = vsel %vm2959_vm11, %v6604_v23, 256.0  ;;  %vm2960_vm12 = vcmp.le.f32.partialorder %v9178_v57, %v2920_v39  ;;  %vm2961_vm13 = vcmp.le.f32.partialorder %v9183_v18, %v2920_v39  ;;  %3037 = vmin.xlane.f32.xlu1 %v3036_v34  ;;  %v3892_v56 = vpop.f32.mrf.mxu0 }
 0x97b   : > { %v3027_v40 = vmin.f32 %v2990_v48, %v2991_v1  ;;  %v2992_v60 = vsel %vm2960_vm12, %v6602_v3, 256.0  ;;  %v2993_v30 = vsel %vm2961_vm13, %v6604_v23, 256.0  ;;  %v4055_v34 = vadd.f32 %v9459_v35, %v9457_v22 }
 0x97c   : > { %v3030_v15 = vmin.f32 %v2992_v60, %v2993_v30  ;;  %v2911_v47 = vpop.xlane.xlu0 %2910  ;;  %v3896_v33 = vpop.f32.mrf.mxu0  ;;  %v9479_v48 = vadd.f32 %v3892_v56, %v3489_v20 }
 0x97d   : > { %vm2954_vm14 = vcmp.le.f32.partialorder %v9199_v62, %v2911_v47  ;;  %vm2955_vm15 = vcmp.le.f32.partialorder %v9204_v61, %v2911_v47  ;;  %v2914_v4 = vpop.xlane.xlu1 %2913  ;;  %3028 = vmin.xlane.f32.xlu0 %v3027_v40 }
 0x97e   : > { %v2986_v2 = vsel %vm2954_vm14, %v6602_v3, 256.0  ;;  %v2987_v57 = vsel %vm2955_vm15, %v6604_v23, 256.0  ;;  %vm2956_vm3 = vcmp.le.f32.partialorder %v9213_v63, %v2914_v4  ;;  %vm2957_vm2 = vcmp.le.f32.partialorder %v9218_v24, %v2914_v4  ;;  %3031 = vmin.xlane.f32.xlu1 %v3030_v15  ;;  %v3898_v47 = vpop.f32.mrf.mxu0 }
 0x97f   : > { %v3021_v18 = vmin.f32 %v2986_v2, %v2987_v57  ;;  %v2988_v8 = vsel %vm2956_vm3, %v6602_v3, 256.0  ;;  %v2989_v54 = vsel %vm2957_vm2, %v6604_v23, 256.0  ;;  %v4076_v57 = vmul.f32 %v9479_v48, %v9479_v48 }
 0x980   : > { %v3024_v50 = vmin.f32 %v2988_v8, %v2989_v54  ;;  %v2905_v62 = vpop.xlane.xlu0 %2904 }
 0x981   : > { %vm2950_vm6 = vcmp.le.f32.partialorder %v9234_v49, %v2905_v62  ;;  %vm2951_vm4 = vcmp.le.f32.partialorder %v9239_v58, %v2905_v62  ;;  %v2908_v61 = vpop.xlane.xlu1 %2907  ;;  %3022 = vmin.xlane.f32.xlu0 %v3021_v18 }
 0x982   : > { %v2982_v25 = vsel %vm2950_vm6, %v6602_v3, 256.0  ;;  %v2983_v63 = vsel %vm2951_vm4, %v6604_v23, 256.0  ;;  %vm2952_vm0 = vcmp.le.f32.partialorder %v9248_v21, %v2908_v61  ;;  %vm2953_vm1 = vcmp.le.f32.partialorder %v9253_v12, %v2908_v61  ;;  %3025 = vmin.xlane.f32.xlu1 %v3024_v50 }
 0x983   : > { %v3015_v24 = vmin.f32 %v2982_v25, %v2983_v63  ;;  %v2984_v45 = vsel %vm2952_vm0, %v6602_v3, 256.0  ;;  %v2985_v10 = vsel %vm2953_vm1, %v6604_v23, 256.0 }
 0x984   : > { %v3018_v36 = vmin.f32 %v2984_v45, %v2985_v10 }
 0x985   : > { %v2902_v49 = vpop.xlane.xlu1 %2901  ;;  %3016 = vmin.xlane.f32.xlu0 %v3015_v24 }
 0x986   : > { %vm2948_vm9 = vcmp.le.f32.partialorder %v9269_v14, %v2902_v49  ;;  %vm2949_vm8 = vcmp.le.f32.partialorder %v9274_v7, %v2902_v49  ;;  %3019 = vmin.xlane.f32.xlu1 %v3018_v36 }
 0x987   : > { %v2980_v58 = vsel %vm2948_vm9, %v6602_v3, 256.0  ;;  %v2981_v21 = vsel %vm2949_vm8, %v6604_v23, 256.0 }
 0x988   : > { %v3012_v59 = vmin.f32 %v2980_v58, %v2981_v21 }
 0x98a   : > { %3013 = vmin.xlane.f32.xlu1 %v3012_v59 }
 0x9f2   : > { %v3059_v12 = vpop.xlane.xlu0 %3058 }
 0x9f3   : > { %vm3090_vm5 = vcmp.eq.f32.partialorder %v6602_v3, %v3059_v12  ;;  %vm3091_vm7 = vcmp.eq.f32.partialorder %v6604_v23, %v3059_v12 }
 0x9f4   : > { %5721 = vmatprep.subr.msk.mxu0 %vm3091_vm7, %v6191_v28 }
 0x9f5   : > { %5722 = vmatpush2.xpose.msk.msra.mxu0 %vm3090_vm5, %v6191_v28 }
 0x9f6   : > { %v3053_v0 = vpop.xlane.xlu0 %3052  ;;  %v3056_v14 = vpop.xlane.xlu1 %3055 }
 0x9f7   : > { %vm3088_vm10 = vcmp.eq.f32.partialorder %v6602_v3, %v3056_v14  ;;  %vm3089_vm11 = vcmp.eq.f32.partialorder %v6604_v23, %v3056_v14  ;;  %vm3087_vm12 = vcmp.eq.f32.partialorder %v6604_v23, %v3053_v0  ;;  %vm3086_vm13 = vcmp.eq.f32.partialorder %v6602_v3, %v3053_v0 }
 0x9f8   : > { %5723 = vmatprep.subr.msk.mxu0 %vm3089_vm11, %v6191_v28 }
 0x9f9   : > { %5724 = vmatpush2.xpose.msk.msra.mxu0 %vm3088_vm10, %v6191_v28 }
 0x9fa   : > { %5725 = vmatprep.subr.msk.mxu0 %vm3087_vm12, %v6191_v28  ;;  %v3047_v26 = vpop.xlane.xlu0 %3046 }
 0x9fb   : > { %v3050_v7 = vpop.xlane.xlu1 %3049  ;;  %vm3083_vm3 = vcmp.eq.f32.partialorder %v6604_v23, %v3047_v26  ;;  %vm3082_vm2 = vcmp.eq.f32.partialorder %v6602_v3, %v3047_v26 }
 0x9fc   : > { %vm3085_vm14 = vcmp.eq.f32.partialorder %v6604_v23, %v3050_v7  ;;  %vm3084_vm15 = vcmp.eq.f32.partialorder %v6602_v3, %v3050_v7 }
 0x9fd   : > { %5726 = vmatpush2.xpose.msk.msra.mxu0 %vm3086_vm13, %v6191_v28 }
 0x9fe   : > { %5727 = vmatprep.subr.msk.mxu0 %vm3085_vm14, %v6191_v28  ;;  %v3041_v31 = vpop.xlane.xlu0 %3040 }
 0x9ff   : > { %v3044_v43 = vpop.xlane.xlu1 %3043  ;;  %vm3079_vm0 = vcmp.eq.f32.partialorder %v6604_v23, %v3041_v31  ;;  %vm3078_vm1 = vcmp.eq.f32.partialorder %v6602_v3, %v3041_v31 }
 0xa00   : > { %vm3081_vm6 = vcmp.eq.f32.partialorder %v6604_v23, %v3044_v43  ;;  %vm3080_vm4 = vcmp.eq.f32.partialorder %v6602_v3, %v3044_v43 }
 0xa01   : > { %5728 = vmatpush2.xpose.msk.msra.mxu0 %vm3084_vm15, %v6191_v28 }
 0xa02   : > { %5729 = vmatprep.subr.msk.mxu0 %vm3083_vm3, %v6191_v28  ;;  %v3035_v41 = vpop.xlane.xlu0 %3034 }
 0xa03   : > { %v3038_v38 = vpop.xlane.xlu1 %3037  ;;  %vm3075_vm5 = vcmp.eq.f32.partialorder %v6604_v23, %v3035_v41  ;;  %vm3074_vm7 = vcmp.eq.f32.partialorder %v6602_v3, %v3035_v41 }
 0xa04   : > { %vm3077_vm9 = vcmp.eq.f32.partialorder %v6604_v23, %v3038_v38  ;;  %vm3076_vm8 = vcmp.eq.f32.partialorder %v6602_v3, %v3038_v38 }
 0xa05   : > { %5730 = vmatpush2.xpose.msk.msra.mxu0 %vm3082_vm2, %v6191_v28 }
 0xa06   : > { %5731 = vmatprep.subr.msk.mxu0 %vm3081_vm6, %v6191_v28  ;;  %v3029_v17 = vpop.xlane.xlu0 %3028 }
 0xa07   : > { %v3032_v42 = vpop.xlane.xlu1 %3031  ;;  %vm3071_vm12 = vcmp.eq.f32.partialorder %v6604_v23, %v3029_v17  ;;  %vm3070_vm13 = vcmp.eq.f32.partialorder %v6602_v3, %v3029_v17 }
 0xa08   : > { %vm3073_vm10 = vcmp.eq.f32.partialorder %v6604_v23, %v3032_v42  ;;  %vm3072_vm11 = vcmp.eq.f32.partialorder %v6602_v3, %v3032_v42 }
 0xa09   : > { %5732 = vmatpush2.xpose.msk.msra.mxu0 %vm3080_vm4, %v6191_v28 }
 0xa0a   : > { %5733 = vmatprep.subr.msk.mxu0 %vm3079_vm0, %v6191_v28  ;;  %v3023_v19 = vpop.xlane.xlu0 %3022 }
 0xa0b   : > { %v3026_v52 = vpop.xlane.xlu1 %3025  ;;  %vm3067_vm3 = vcmp.eq.f32.partialorder %v6604_v23, %v3023_v19  ;;  %vm3066_vm2 = vcmp.eq.f32.partialorder %v6602_v3, %v3023_v19 }
 0xa0c   : > { %vm3069_vm14 = vcmp.eq.f32.partialorder %v6604_v23, %v3026_v52  ;;  %vm3068_vm15 = vcmp.eq.f32.partialorder %v6602_v3, %v3026_v52 }
 0xa0d   : > { %5734 = vmatpush2.xpose.msk.msra.mxu0 %vm3078_vm1, %v6191_v28 }
 0xa0e   : > { %5735 = vmatprep.subr.msk.mxu0 %vm3077_vm9, %v6191_v28  ;;  %v3017_v13 = vpop.xlane.xlu0 %3016 }
 0xa0f   : > { %v3020_v32 = vpop.xlane.xlu1 %3019  ;;  %vm3063_vm0 = vcmp.eq.f32.partialorder %v6604_v23, %v3017_v13  ;;  %vm3062_vm1 = vcmp.eq.f32.partialorder %v6602_v3, %v3017_v13 }
 0xa10   : > { %vm3065_vm6 = vcmp.eq.f32.partialorder %v6604_v23, %v3020_v32  ;;  %vm3064_vm4 = vcmp.eq.f32.partialorder %v6602_v3, %v3020_v32 }
 0xa11   : > { %5736 = vmatpush2.xpose.msk.msra.mxu0 %vm3076_vm8, %v6191_v28 }
 0xa12   : > { %5737 = vmatprep.subr.msk.mxu0 %vm3075_vm5, %v6191_v28 }
 0xa13   : > { %v3014_v51 = vpop.xlane.xlu1 %3013 }
 0xa14   : > { %vm3061_vm9 = vcmp.eq.f32.partialorder %v6604_v23, %v3014_v51  ;;  %vm3060_vm8 = vcmp.eq.f32.partialorder %v6602_v3, %v3014_v51  ;;  %v3819_v23 = vpop.f32.mrf.mxu1  ;;  %v9461_v3 = vsub.f32 0.0, %v5805_v11 }
 0xa15   : > { %5738 = vmatpush2.xpose.msk.msra.mxu0 %vm3074_vm7, %v6191_v28 }
 0xa16   : > { %5739 = vmatprep.subr.msk.mxu0 %vm3073_vm10, %v6191_v28  ;;  %v9470_v16 = vadd.f32 %v3819_v23, %v9461_v3  ;;  %v9486_v60 = vadd.f32 %v3896_v33, %v9461_v3  ;;  %v9498_v50 = vadd.f32 %v3898_v47, %v9461_v3 }
 0xa18   : > { %v4081_v1 = vmul.f32 %v9470_v16, %v9470_v16  ;;  %v4083_v54 = vmul.f32 %v9486_v60, %v9486_v60  ;;  %v4084_v36 = vmul.f32 %v9498_v50, %v9498_v50 }
 0xa19   : > { %5740 = vmatpush2.xpose.msk.msra.mxu0 %vm3072_vm11, %v6191_v28 }
 0xa1a   : > { %5741 = vmatprep.subr.msk.mxu0 %vm3071_vm12, %v6191_v28 }
 0xa1d   : > { %5742 = vmatpush2.xpose.msk.msra.mxu0 %vm3070_vm13, %v6191_v28 }
 0xa1e   : > { %5743 = vmatprep.subr.msk.mxu0 %vm3069_vm14, %v6191_v28 }
 0xa21   : > { %5744 = vmatpush2.xpose.msk.msra.mxu0 %vm3068_vm15, %v6191_v28 }
 0xa22   : > { %5745 = vmatprep.subr.msk.mxu0 %vm3067_vm3, %v6191_v28 }
 0xa25   : > { %5746 = vmatpush2.xpose.msk.msra.mxu0 %vm3066_vm2, %v6191_v28 }
 0xa26   : > { %5747 = vmatprep.subr.msk.mxu0 %vm3065_vm6, %v6191_v28 }
 0xa29   : > { %5748 = vmatpush2.xpose.msk.msra.mxu0 %vm3064_vm4, %v6191_v28 }
 0xa2a   : > { %5749 = vmatprep.subr.msk.mxu0 %vm3063_vm0, %v6191_v28 }
 0xa2d   : > { %5750 = vmatpush2.xpose.msk.msra.mxu0 %vm3062_vm1, %v6191_v28 }
 0xa2e   : > { %5751 = vmatprep.subr.msk.mxu0 %vm3061_vm9, %v6191_v28 }
 0xa31   : > { %5752 = vmatpush2.xpose.msk.msra.mxu0 %vm3060_vm8, %v6191_v28  ;;  %v3821_v28 = vpop.f32.mrf.mxu1 }
 0xa32   : > { %v9473_v9 = vadd.f32 %v3821_v28, %v9461_v3 }
 0xa33   : > { %v3967_v37 = vpop.f32.mrf.mxu1 }
 0xa34   : > { %4043 = vmatmul.mubr.f32.vlgmr.msra.gmra.mxu0 %v8148_v6  ;;  %v4073_v6 = vmul.f32 %v9457_v22, %v9457_v22  ;;  %v4082_v40 = vmul.f32 %v9473_v9, %v9473_v9  ;;  %v4064_v15 = vadd.f32 %v9473_v9, %v9470_v16  ;;  %v9493_v18 = vadd.f32 %v3967_v37, %v3489_v20 }
 0xa35   : > { %4048 = vmatprep.mubr.f32.mxu0 %v8995_v46  ;;  %v9467_v46 = vadd.f32 %v3890_v53, %v3489_v20  ;;  %v3969_v30 = vpop.f32.mrf.mxu1 }
 0xa36   : > { %v4098_v8 = vadd.f32 %v4082_v40, %v4081_v1  ;;  %v4065_v61 = vadd.f32 %v4064_v15, %v9486_v60  ;;  %v4077_v24 = vmul.f32 %v9493_v18, %v9493_v18  ;;  %v9504_v45 = vadd.f32 %v3969_v30, %v3489_v20 }
 0xa37   : > { %v4075_v39 = vmul.f32 %v9467_v46, %v9467_v46  ;;  %v4056_v4 = vadd.f32 %v4055_v34, %v9467_v46  ;;  %v3973_v62 = vpop.f32.mrf.mxu1 }
 0xa38   : > { %4049 = vmatmul.mubr.f32.gmra.mxu0 %v8992_v44  ;;  %v4074_v44 = vmul.f32 %v9459_v35, %v9459_v35  ;;  %v4099_v10 = vadd.f32 %v4098_v8, %v4083_v54  ;;  %v9509_v49 = vadd.f32 %v3973_v62, %v9461_v3  ;;  %v4066_v21 = vadd.f32 %v4065_v61, %v9498_v50 }
 0xa39   : > { %v4057_v25 = vadd.f32 %v4056_v4, %v9479_v48  ;;  %v3975_v58 = vpop.f32.mrf.mxu1  ;;  %v4078_v0 = vmul.f32 %v9504_v45, %v9504_v45 }
 0xa3a   : > { %v4089_v29 = vadd.f32 %v4074_v44, %v4073_v6  ;;  %v9516_v14 = vadd.f32 %v3975_v58, %v9461_v3  ;;  %v4100_v7 = vadd.f32 %v4099_v10, %v4084_v36  ;;  %v4085_v26 = vmul.f32 %v9509_v49, %v9509_v49 }
 0xa3b   : > { %v4058_v59 = vadd.f32 %v4057_v25, %v9493_v18  ;;  %v4067_v43 = vadd.f32 %v4066_v21, %v9509_v49 }
 0xa3c   : > { %v4090_v2 = vadd.f32 %v4089_v29, %v4075_v39  ;;  %v4086_v17 = vmul.f32 %v9516_v14, %v9516_v14  ;;  %v4101_v19 = vadd.f32 %v4100_v7, %v4085_v26 }
 0xa3d   : > { %v4059_v38 = vadd.f32 %v4058_v59, %v9504_v45  ;;  %v4068_v5 = vadd.f32 %v4067_v43, %v9516_v14 }
 0xa3e   : > { %v4091_v63 = vadd.f32 %v4090_v2, %v4076_v57  ;;  %v4102_v56 = vadd.f32 %v4101_v19, %v4086_v17 }
 0xa40   : > { %v4092_v12 = vadd.f32 %v4091_v63, %v4077_v24 }
 0xa42   : > { %v4093_v42 = vadd.f32 %v4092_v12, %v4078_v0 }
 0xaf4   : > { %v4044_v31 = vpop.f32.mrf.mxu0 }
 0xaf5   : > { %v9522_v41 = vadd.f32 %v4044_v31, %v3489_v20 }
 0xaf6   : > { %v4046_v52 = vpop.f32.mrf.mxu0 }
 0xaf7   : > { %v4060_v32 = vadd.f32 %v4059_v38, %v9522_v41  ;;  %v4079_v13 = vmul.f32 %v9522_v41, %v9522_v41  ;;  %v4047_v51 = vadd.f32 %v4046_v52, %v3489_v20 }
 0xaf8   : > { %v4050_v11 = vpop.f32.mrf.mxu0 }
 0xaf9   : > { %v4094_v55 = vadd.f32 %v4093_v42, %v4079_v13  ;;  %v4061_v27 = vadd.f32 %v4060_v32, %v4047_v51  ;;  %v4080_v23 = vmul.f32 %v4047_v51, %v4047_v51  ;;  %v4051_v53 = vadd.f32 %v4050_v11, %v9461_v3 }
 0xafa   : > { %v4052_v28 = vpop.f32.mrf.mxu0 }
 0xafb   : > { %v4069_v6 = vadd.f32 %v4068_v5, %v4051_v53  ;;  %v4087_v44 = vmul.f32 %v4051_v53, %v4051_v53  ;;  %v4053_v37 = vadd.f32 %v4052_v28, %v9461_v3  ;;  %4062 = vadd.xlane.f32.xlu0 %v4061_v27  ;;  %v4095_v39 = vadd.f32 %v4094_v55, %v4080_v23 }
 0xafd   : > { %v4103_v33 = vadd.f32 %v4102_v56, %v4087_v44  ;;  %v4070_v34 = vadd.f32 %v4069_v6, %v4053_v37  ;;  %v4088_v29 = vmul.f32 %v4053_v37, %v4053_v37 }
 0xaff   : > { %4071 = vadd.xlane.f32.xlu1 %v4070_v34  ;;  %4096 = vadd.xlane.f32.xlu0 %v4095_v39  ;;  %v4104_v20 = vadd.f32 %v4103_v33, %v4088_v29 }
 0xb03   : > { %4105 = vadd.xlane.f32.xlu1 %v4104_v20 }
 0xb84   : > { %v4063_v1 = vpop.xlane.xlu0 %4062 }
 0xb88   : > { %v4072_v40 = vpop.xlane.xlu1 %4071  ;;  %v4097_v30 = vpop.xlane.xlu0 %4096  ;;  %4110 = sbr.rel (%p5461_p4) target bundleno = 2960 (0xb90), region = 64 }
 0xb8c   : > { %v4106_v15 = vpop.xlane.xlu1 %4105 }
 0xb8d   : > { %vm4111_vm5 = vcmask 7168   ;;  %v6192_v47 = vmov 0.0  }
 0xb8e   : > { %4112 = vst.msk [vmem:[#allocation3] sm:$0xff] %vm4111_vm5, %v6192_v47  ;;  %4113 = vst.msk [vmem:[#allocation3 + $0x8] sm:$0xff] %vm4111_vm5, %v6192_v47 }
 0xb8f   : > { %4114 = vst.msk [vmem:[#allocation4] sm:$0xff] %vm4111_vm5, %v6192_v47  ;;  %4115 = vst.msk [vmem:[#allocation4 + $0x8] sm:$0xff] %vm4111_vm5, %v6192_v47 }
 0xb90 PF: > { %vm4120_vm7 = vcmask 7168   ;;  %s5462_s17 = sshll.u32 %s6261_s14, 10  ;;  %p5464_p5 = scmp.ne.s32.totalorder %s6261_s14, 1 }
 0xb91   : > { %s4130_s18 = sshra.s32 %s5462_s17, 7 }
 0xb92   : > { %s5463_s19 = sshll.u32 %s4130_s18, 3 }
 0xb93   : > { %s4133_s20 = scalar_lea.vmem [#allocation5], %s5463_s19  ;;  %s9614_s19 = smov (!%p5464_p5), 0  }
 0xb94   : > { %4134 = vst [vmem:[%s4133_s20] sm:$0xff] %v9457_v22  ;;  %4135 = vst [vmem:[%s4133_s20 + $0x8] sm:$0xff] %v9459_v35 }
 0xb95   : > { %v4116_v3 = vld [vmem:[#allocation3] sm:$0xff]  ;;  %v4117_v4 = vld [vmem:[#allocation3 + $0x8] sm:$0xff]  ;;  %4136 = vst [vmem:[%s4133_s20 + $0x10] sm:$0xff] %v9467_v46  ;;  %4137 = vst [vmem:[%s4133_s20 + $0x18] sm:$0xff] %v9479_v48 }
 0xb96   : > { %v4123_v2 = vld [vmem:[#allocation4] sm:$0xff]  ;;  %v4118_v57 = vadd.f32 %v4116_v3, %v4063_v1  ;;  %v4119_v8 = vadd.f32 %v4117_v4, %v4072_v40  ;;  %v4124_v62 = vld [vmem:[#allocation4 + $0x8] sm:$0xff]  ;;  %4138 = vst [vmem:[%s4133_s20 + $0x20] sm:$0xff] %v9493_v18  ;;  %4139 = vst [vmem:[%s4133_s20 + $0x28] sm:$0xff] %v9504_v45 }
 0xb97   : > { %v4125_v54 = vadd.f32 %v4123_v2, %v4097_v30  ;;  %v4126_v61 = vadd.f32 %v4124_v62, %v4106_v15  ;;  %4140 = vst [vmem:[%s4133_s20 + $0x30] sm:$0xff] %v9522_v41  ;;  %4141 = vst [vmem:[%s4133_s20 + $0x38] sm:$0xff] %v4047_v51 }
 0xb98   : > { %4121 = vst.msk [vmem:[#allocation3] sm:$0xff] %vm4120_vm7, %v4118_v57  ;;  %4122 = vst.msk [vmem:[#allocation3 + $0x8] sm:$0xff] %vm4120_vm7, %v4119_v8 }
 0xb99   : > { %4127 = vst.msk [vmem:[#allocation4] sm:$0xff] %vm4120_vm7, %v4125_v54  ;;  %4128 = vst.msk [vmem:[#allocation4 + $0x8] sm:$0xff] %vm4120_vm7, %v4126_v61  ;;  %4153 = sbr.rel (%p5464_p5) target bundleno = 3835 (0xefb), region = 68 }
 0xb9a   : > { %4142 = vst [vmem:[%s4133_s20 + $0x80] sm:$0xff] %v9470_v16  ;;  %4143 = vst [vmem:[%s4133_s20 + $0x88] sm:$0xff] %v9473_v9 }
 0xb9b   : > { %4144 = vst [vmem:[%s4133_s20 + $0x90] sm:$0xff] %v9486_v60  ;;  %4145 = vst [vmem:[%s4133_s20 + $0x98] sm:$0xff] %v9498_v50 }
 0xb9c   : > { %4146 = vst [vmem:[%s4133_s20 + $0xa0] sm:$0xff] %v9509_v49  ;;  %4147 = vst [vmem:[%s4133_s20 + $0xa8] sm:$0xff] %v9516_v14 }
 0xb9d   : > { %4148 = vst [vmem:[%s4133_s20 + $0xb0] sm:$0xff] %v4051_v53  ;;  %4149 = vst [vmem:[%s4133_s20 + $0xb8] sm:$0xff] %v4053_v37 }
 0xb9e   : > { %v9551_v60 = vld [vmem:[%s9891_s7] sm:$0xff]  ;;  %v9556_v24 = vld [vmem:[%s9891_s7 + $0x8] sm:$0xff]  ;;  %v9561_v45 = vld [vmem:[%s9891_s7 + $0x10] sm:$0xff]  ;;  %v9598_v52 = vmov 0.0   ;;  %v9600_v19 = vmov 0.0   ;;  %v9602_v32 = vmov 0.0  }
 0xb9f   : > { %v4154_v22 = vld [vmem:[#allocation3] sm:$0xff]  ;;  %v4155_v35 = vld [vmem:[#allocation3 + $0x8] sm:$0xff]  ;;  %v9566_v10 = vld [vmem:[%s9891_s7 + $0x18] sm:$0xff]  ;;  %v9604_v13 = vmov 0.0   ;;  %v9606_v51 = vmov 0.0   ;;  %v9608_v5 = vmov 0.0  }
 0xba0   : > { %v4156_v46 = vld [vmem:[#allocation4] sm:$0xff]  ;;  %v4157_v48 = vld [vmem:[#allocation4 + $0x8] sm:$0xff]  ;;  %v4162_v16 = vmul.f32 0.00048828125, %v4154_v22  ;;  %v4163_v18 = vmul.f32 0.00048828125, %v4155_v35  ;;  %v4158_v59 = vld [vmem:[%s9889_s5] sm:$0xff]  ;;  %v9610_v11 = vmov 0.0  }
 0xba1   : > { %v4164_v9 = vmul.f32 0.00048828125, %v4156_v46  ;;  %v4165_v25 = vmul.f32 0.00048828125, %v4157_v48  ;;  %v4159_v12 = vld [vmem:[%s9889_s5 + $0x8] sm:$0xff]  ;;  %v9579_v26 = vld [vmem:[%s9890_s6] sm:$0xff]  ;;  %v9612_v55 = vmov 0.0  }
 0xba2   : > { %v4166_v50 = vmul.f32 %v4162_v16, %v4162_v16  ;;  %v4167_v63 = vmul.f32 %v4163_v18, %v4163_v18  ;;  %v9586_v31 = vld [vmem:[%s9890_s6 + $0x8] sm:$0xff] }
 0xba4   : > { %v4168_v36 = vsub.f32 %v4164_v9, %v4166_v50  ;;  %v4169_v49 = vsub.f32 %v4165_v25, %v4167_v63 }
 0xba6   : > { %v4170_v58 = vadd.f32 1e-05, %v4168_v36  ;;  %v4171_v21 = vadd.f32 1e-05, %v4169_v49 }
 0xba8   : > { %5984 = vrsqrt.f32 %v4170_v58 }
 0xba9   : > { %5986 = vrsqrt.f32 %v4171_v21 }
 0xbb5   : > { %v5985_v0 = vpop.eup %5984 }
 0xbb6   : > { %v5987_v14 = vpop.eup %5986  ;;  %v9574_v7 = vmul.f32 %v5985_v0, %v4158_v59 }
 0xbb7   : > { %v9581_v43 = vmul.f32 %v5987_v14, %v4159_v12 }
 0xbb8   : > { %v9589_v38 = vmul.f32 %v9574_v7, %v4162_v16 }
 0xbb9   : > { %v9592_v41 = vmul.f32 %v9581_v43, %v4163_v18 }
 0xbba   : > { %v4178_v42 = vsub.f32 %v9579_v26, %v9589_v38 }
 0xbbb   : > { %v4179_v17 = vsub.f32 %v9586_v31, %v9592_v41 }
 0xbbc LB: >> { %v6193_v27 = vmov 0   ;;  %v6194_v23 = vmov 0.0   ;;  %s5465_s20 = sshll.u32 %s6148_s19, 10  ;;  %vm4287_vm10 = vcmask 130048   ;;  %s4189_s19 = sadd.s32 1, %s6148_s19   ;;  %s6148_s19 = sphi %s9614_s19, %s4189_s19   ;;  %v6144_v55 = vphi %v9612_v55, %v9917_v55   ;;  %v6140_v11 = vphi %v9610_v11, %v9916_v11   ;;  %v6136_v5 = vphi %v9608_v5, %v9915_v5   ;;  %v6132_v51 = vphi %v9606_v51, %v9914_v51   ;;  %v6128_v13 = vphi %v9604_v13, %v9913_v13   ;;  %v6124_v32 = vphi %v9602_v32, %v9912_v32   ;;  %v6120_v19 = vphi %v9600_v19, %v9911_v19   ;;  %v6116_v52 = vphi %v9598_v52, %v9910_v52  }
 0xbbd   : >> { %5989 = vset.pattern.permute.xlu1 %v6193_v27  ;;  %5988 = vset.pattern.permute.xlu0 %v6193_v27  ;;  %s9654_s21 = sshra.s32 %s5465_s20, 7  ;;  %p4186_p6 = scmp.ge.s32.totalorder %s4189_s19, 2  }
 0xbbe   : >> { %4252 = vperm.xlu1 %5989, %v4179_v17   ;;  %4226 = vperm.xlu0 %5988, %v9581_v43   ;;  %s5466_s22 = sshll.u32 %s9654_s21, 3  ;;  %v4805_v26 = vld [vmem:[%s9892_s8 + $0x18] sm:$0xff] (%p4186_p6)  ;;  %v4806_v38 = vld [vmem:[%s9893_s9] sm:$0xff] (%p4186_p6)  ;;  %v4807_v17 = vld [vmem:[%s9893_s9 + $0x8] sm:$0xff] (%p4186_p6) }
 0xbbf   : >> { %4364 = vmatprep.mubr.f32.mxu0 %v6194_v23  ;;  %4453 = vmatprep.mubr.f32.mxu1 %v6194_v23  ;;  %s9659_s23 = scalar_lea.vmem [#allocation5], %s5466_s22  ;;  %s9725_s24 = scalar_lea.vmem [#allocation6], %s5466_s22 }
 0xbc0   : >> { %v4212_v53 = vld [vmem:[%s9659_s23 + $0x88] sm:$0xff]  ;;  %v4214_v28 = vld [vmem:[%s9659_s23 + $0x98] sm:$0xff]  ;;  %v4211_v56 = vld [vmem:[%s9659_s23 + $0x80] sm:$0xff] }
 0xbc1   : >> { %v4213_v6 = vld [vmem:[%s9659_s23 + $0x90] sm:$0xff]  ;;  %v4216_v44 = vld [vmem:[%s9659_s23 + $0xa8] sm:$0xff]  ;;  %v4218_v37 = vld [vmem:[%s9659_s23 + $0xb8] sm:$0xff] }
 0xbc2   : >> { %4247 = vperm.xlu1 %5989, %v4178_v42   ;;  %4221 = vperm.xlu0 %5988, %v9574_v7   ;;  %v4215_v33 = vld [vmem:[%s9659_s23 + $0xa0] sm:$0xff]  ;;  %v4217_v34 = vld [vmem:[%s9659_s23 + $0xb0] sm:$0xff]  ;;  %v4204_v15 = vld [vmem:[%s9659_s23 + $0x8] sm:$0xff] }
 0xbc3   : >> { %v4206_v61 = vld [vmem:[%s9659_s23 + $0x18] sm:$0xff]  ;;  %v4203_v22 = vld [vmem:[%s9659_s23] sm:$0xff]  ;;  %v4205_v35 = vld [vmem:[%s9659_s23 + $0x10] sm:$0xff] }
 0xbc4   : >> { %v4208_v58 = vld [vmem:[%s9659_s23 + $0x28] sm:$0xff]  ;;  %v4210_v21 = vld [vmem:[%s9659_s23 + $0x38] sm:$0xff]  ;;  %v4207_v59 = vld [vmem:[%s9659_s23 + $0x20] sm:$0xff] }
 0xc39   : >> { %v4227_v29 = vpop.permute.xlu0 %4226  ;;  %v4253_v39 = vpop.permute.xlu1 %4252 }
 0xc3a   : >> { %v4238_v20 = vmul.f32 %v4227_v29, %v4212_v53  ;;  %v4240_v1 = vmul.f32 %v4227_v29, %v4214_v28  ;;  %v4237_v40 = vmul.f32 %v4227_v29, %v4211_v56  ;;  %v4239_v30 = vmul.f32 %v4227_v29, %v4213_v6  ;;  %v4209_v53 = vld [vmem:[%s9659_s23 + $0x30] sm:$0xff]  ;;  %s9830_s23 = smov (%p4186_p6), 0  }
 0xc3b   : >> { %v4242_v47 = vmul.f32 %v4227_v29, %v4216_v44  ;;  %v4244_v3 = vmul.f32 %v4227_v29, %v4218_v37  ;;  %v4241_v4 = vmul.f32 %v4227_v29, %v4215_v33  ;;  %v4243_v2 = vmul.f32 %v4227_v29, %v4217_v34 }
 0xc3c   : >> { %v4264_v57 = vadd.f32 %v4253_v39, %v4238_v20  ;;  %v4266_v8 = vadd.f32 %v4253_v39, %v4240_v1  ;;  %v4263_v54 = vadd.f32 %v4253_v39, %v4237_v40  ;;  %v4265_v62 = vadd.f32 %v4253_v39, %v4239_v30 }
 0xc3d   : >> { %v4222_v46 = vpop.permute.xlu0 %4221  ;;  %v4268_v48 = vadd.f32 %v4253_v39, %v4242_v47  ;;  %v4248_v12 = vpop.permute.xlu1 %4247  ;;  %v4270_v0 = vadd.f32 %v4253_v39, %v4244_v3  ;;  %v4267_v14 = vadd.f32 %v4253_v39, %v4241_v4  ;;  %v4269_v27 = vadd.f32 %v4253_v39, %v4243_v2 }
 0xc3e   : >> { %v4280_v16 = vmax.f32 %v4264_v57, 0.0  ;;  %v4282_v18 = vmax.f32 %v4266_v8, 0.0  ;;  %v4279_v9 = vmax.f32 %v4263_v54, 0.0  ;;  %v4281_v25 = vmax.f32 %v4265_v62, 0.0 }
 0xc3f   : >> { %v4230_v50 = vmul.f32 %v4222_v46, %v4204_v15  ;;  %v4232_v63 = vmul.f32 %v4222_v46, %v4206_v61  ;;  %v4229_v36 = vmul.f32 %v4222_v46, %v4203_v22  ;;  %v4231_v49 = vmul.f32 %v4222_v46, %v4205_v35 }
 0xc40   : >> { %4328 = vmatprep.subr.mxu0 %v4280_v16  ;;  %4417 = vmatprep.subr.mxu1 %v4282_v18  ;;  %v4234_v37 = vmul.f32 %v4222_v46, %v4208_v58  ;;  %v4236_v33 = vmul.f32 %v4222_v46, %v4210_v21  ;;  %v4233_v34 = vmul.f32 %v4222_v46, %v4207_v59  ;;  %v4284_v39 = vmax.f32 %v4268_v48, 0.0 }
 0xc41   : >> { %4329 = vmatpush1.msra.mxu0 %v4279_v9  ;;  %4418 = vmatpush1.msra.mxu1 %v4281_v25  ;;  %v4256_v28 = vadd.f32 %v4248_v12, %v4230_v50  ;;  %v4258_v56 = vadd.f32 %v4248_v12, %v4232_v63  ;;  %v4255_v6 = vadd.f32 %v4248_v12, %v4229_v36  ;;  %v4286_v4 = vmax.f32 %v4270_v0, 0.0 }
 0xc42   : >> { %v4257_v44 = vadd.f32 %v4248_v12, %v4231_v49  ;;  %v4235_v40 = vmul.f32 %v4222_v46, %v4209_v53  ;;  %v4260_v15 = vadd.f32 %v4248_v12, %v4234_v37  ;;  %v4262_v47 = vadd.f32 %v4248_v12, %v4236_v33 }
 0xc43   : >> { %v4272_v29 = vmax.f32 %v4256_v28, 0.0  ;;  %v4274_v20 = vmax.f32 %v4258_v56, 0.0  ;;  %v4271_v1 = vmax.f32 %v4255_v6, 0.0  ;;  %v4259_v3 = vadd.f32 %v4248_v12, %v4233_v34 }
 0xc44   : >> { %v4273_v30 = vmax.f32 %v4257_v44, 0.0  ;;  %v4261_v2 = vadd.f32 %v4248_v12, %v4235_v40  ;;  %v4283_v57 = vmax.f32 %v4267_v14, 0.0  ;;  %v4285_v8 = vmax.f32 %v4269_v27, 0.0 }
 0xc45   : >> { %4330 = vmatprep.subr.mxu0 %v4272_v29  ;;  %4419 = vmatprep.subr.mxu1 %v4274_v20  ;;  %v4276_v54 = vmax.f32 %v4260_v15, 0.0  ;;  %v4278_v62 = vmax.f32 %v4262_v47, 0.0  ;;  %v4275_v61 = vmax.f32 %v4259_v3, 0.0 }
 0xc46   : >> { %4331 = vmatpush1.msra.mxu0 %v4271_v1  ;;  %4420 = vmatpush1.msra.mxu1 %v4273_v30  ;;  %v4277_v22 = vmax.f32 %v4261_v2, 0.0 }
 0xc47   : >> { %5467 = vmatmul.mubr.msk.f32.vlgmr.msra.gmra.mxu0 %vm4287_vm10, %v9551_v60  ;;  %4506 = vmatprep.subr.mxu0 %v4284_v39 }
 0xc48   : >> { %4595 = vmatprep.subr.mxu1 %v4286_v4  ;;  %5471 = vmatmul.mubr.msk.f32.vlgmr.msra.gmra.mxu1 %vm4287_vm10, %v9551_v60 }
 0xc49   : >> { %4507 = vmatpush1.msra.mxu0 %v4283_v57  ;;  %4596 = vmatpush1.msra.mxu1 %v4285_v8 }
 0xc4a   : >> { %4508 = vmatprep.subr.mxu0 %v4276_v54  ;;  %4597 = vmatprep.subr.mxu1 %v4278_v62 }
 0xc4b   : >> { %4370 = vmatprep.mubr.f32.mxu0 %v6194_v23  ;;  %4509 = vmatpush1.msra.mxu0 %v4275_v61 }
 0xc4c   : >> { %4598 = vmatpush1.msra.mxu1 %v4277_v22  ;;  %5468 = vmatmul.mubr.msk.f32.gmra.mxu0 %vm4287_vm10, %v9556_v24 }
 0xc4d   : >> { %4459 = vmatprep.mubr.f32.mxu1 %v6194_v23  ;;  %4376 = vmatprep.mubr.f32.mxu0 %v6194_v23 }
 0xc4e   : >> { %5472 = vmatmul.mubr.msk.f32.gmra.mxu1 %vm4287_vm10, %v9556_v24 }
 0xc4f   : >> { %4465 = vmatprep.mubr.f32.mxu1 %v6194_v23 }
 0xc50   : >> { %5469 = vmatmul.mubr.msk.f32.gmra.mxu0 %vm4287_vm10, %v9561_v45 }
 0xc51   : >> { %4382 = vmatprep.mubr.f32.mxu0 %v6194_v23 }
 0xc52   : >> { %5473 = vmatmul.mubr.msk.f32.gmra.mxu1 %vm4287_vm10, %v9561_v45 }
 0xc53   : >> { %4471 = vmatprep.mubr.f32.mxu1 %v6194_v23 }
 0xc54   : >> { %5470 = vmatmul.mubr.msk.f32.gmra.mxu0 %vm4287_vm10, %v9566_v10 }
 0xc55   : >> { %4542 = vmatprep.mubr.f32.mxu0 %v6194_v23 }
 0xc56   : >> { %5474 = vmatmul.mubr.msk.f32.gmra.mxu1 %vm4287_vm10, %v9566_v10 }
 0xc57   : >> { %4631 = vmatprep.mubr.f32.mxu1 %v6194_v23 }
 0xc58   : >> { %5475 = vmatmul.mubr.msk.f32.vlgmr.msra.gmra.mxu0 %vm4287_vm10, %v9551_v60 }
 0xc59   : >> { %4548 = vmatprep.mubr.f32.mxu0 %v6194_v23 }
 0xc5a   : >> { %5479 = vmatmul.mubr.msk.f32.vlgmr.msra.gmra.mxu1 %vm4287_vm10, %v9551_v60  ;;  %v4802_v60 = vld [vmem:[%s9892_s8] sm:$0xff] (%p4186_p6) }
 0xc5b   : >> { %4637 = vmatprep.mubr.f32.mxu1 %v6194_v23 }
 0xc5c   : >> { %5476 = vmatmul.mubr.msk.f32.gmra.mxu0 %vm4287_vm10, %v9556_v24 }
 0xc5d   : >> { %4554 = vmatprep.mubr.f32.mxu0 %v6194_v23 }
 0xc5e   : >> { %5480 = vmatmul.mubr.msk.f32.gmra.mxu1 %vm4287_vm10, %v9556_v24  ;;  %v4803_v24 = vld [vmem:[%s9892_s8 + $0x8] sm:$0xff] (%p4186_p6) }
 0xc5f   : >> { %4643 = vmatprep.mubr.f32.mxu1 %v6194_v23 }
 0xc60   : >> { %5477 = vmatmul.mubr.msk.f32.gmra.mxu0 %vm4287_vm10, %v9561_v45 }
 0xc61   : >> { %4560 = vmatprep.mubr.f32.mxu0 %v6194_v23 }
 0xc62   : >> { %5481 = vmatmul.mubr.msk.f32.gmra.mxu1 %vm4287_vm10, %v9561_v45 }
 0xc63   : >> { %4649 = vmatprep.mubr.f32.mxu1 %v6194_v23 }
 0xc64   : >> { %5478 = vmatmul.mubr.msk.f32.gmra.mxu0 %vm4287_vm10, %v9566_v10 }
 0xc66   : >> { %5482 = vmatmul.mubr.msk.f32.gmra.mxu1 %vm4287_vm10, %v9566_v10  ;;  %v4804_v10 = vld [vmem:[%s9892_s8 + $0x10] sm:$0xff] (%p4186_p6) }
 0xd07   : >> { %v4366_v35 = vpop.f32.mrf.mxu0 }
 0xd08   : >> { %4658 = vst [vmem:[%s9725_s24] sm:$0xff] %v4366_v35  ;;  %v4455_v46 = vpop.f32.mrf.mxu1  ;;  %v4730_v50 = vmul.f32 %v4366_v35, %v4366_v35 }
 0xd09   : >> { %v4368_v23 = vpop.f32.mrf.mxu0  ;;  %4660 = vst [vmem:[%s9725_s24 + $0x10] sm:$0xff] %v4455_v46  ;;  %v4732_v12 = vmul.f32 %v4455_v46, %v4455_v46 }
 0xd0a   : >> { %4659 = vst [vmem:[%s9725_s24 + $0x8] sm:$0xff] %v4368_v23  ;;  %v4457_v48 = vpop.f32.mrf.mxu1  ;;  %v4731_v18 = vmul.f32 %v4368_v23, %v4368_v23  ;;  %v4690_v63 = vadd.f32 %v4368_v23, %v4366_v35 }
 0xd0b   : >> { %4661 = vst [vmem:[%s9725_s24 + $0x18] sm:$0xff] %v4457_v48  ;;  %v4733_v3 = vmul.f32 %v4457_v48, %v4457_v48 }
 0xd0c   : >> { %v4372_v16 = vpop.f32.mrf.mxu0  ;;  %v4762_v59 = vadd.f32 %v4731_v18, %v4730_v50  ;;  %v4691_v56 = vadd.f32 %v4690_v63, %v4455_v46 }
 0xd0d   : >> { %4666 = vst [vmem:[%s9725_s24 + $0x80] sm:$0xff] %v4372_v16  ;;  %v4738_v49 = vmul.f32 %v4372_v16, %v4372_v16 }
 0xd0e   : >> { %v4374_v9 = vpop.f32.mrf.mxu0  ;;  %v4461_v25 = vpop.f32.mrf.mxu1  ;;  %v4763_v34 = vadd.f32 %v4762_v59, %v4732_v12  ;;  %v4692_v39 = vadd.f32 %v4691_v56, %v4457_v48 }
 0xd0f   : >> { %4667 = vst [vmem:[%s9725_s24 + $0x88] sm:$0xff] %v4374_v9  ;;  %v4739_v36 = vmul.f32 %v4374_v9, %v4374_v9  ;;  %4668 = vst [vmem:[%s9725_s24 + $0x90] sm:$0xff] %v4461_v25  ;;  %v4699_v0 = vadd.f32 %v4374_v9, %v4372_v16  ;;  %v4740_v27 = vmul.f32 %v4461_v25, %v4461_v25 }
 0xd10   : >> { %v4378_v58 = vpop.f32.mrf.mxu0  ;;  %v4463_v21 = vpop.f32.mrf.mxu1  ;;  %v4764_v8 = vadd.f32 %v4763_v34, %v4733_v3 }
 0xd11   : >> { %4674 = vst [vmem:[%s9725_s24 + $0x100] sm:$0xff] %v4378_v58  ;;  %4669 = vst [vmem:[%s9725_s24 + $0x98] sm:$0xff] %v4463_v21  ;;  %v4771_v14 = vadd.f32 %v4739_v36, %v4738_v49  ;;  %v4746_v44 = vmul.f32 %v4378_v58, %v4378_v58  ;;  %v4700_v29 = vadd.f32 %v4699_v0, %v4461_v25 }
 0xd12   : >> { %v4380_v53 = vpop.f32.mrf.mxu0  ;;  %v4467_v28 = vpop.f32.mrf.mxu1  ;;  %v4741_v4 = vmul.f32 %v4463_v21, %v4463_v21 }
 0xd13   : >> { %4675 = vst [vmem:[%s9725_s24 + $0x108] sm:$0xff] %v4380_v53  ;;  %v4747_v6 = vmul.f32 %v4380_v53, %v4380_v53  ;;  %4676 = vst [vmem:[%s9725_s24 + $0x110] sm:$0xff] %v4467_v28  ;;  %v4772_v20 = vadd.f32 %v4771_v14, %v4740_v27  ;;  %v4708_v1 = vadd.f32 %v4380_v53, %v4378_v58 }
 0xd14   : >> { %v4384_v37 = vpop.f32.mrf.mxu0  ;;  %v4469_v33 = vpop.f32.mrf.mxu1  ;;  %v4748_v30 = vmul.f32 %v4467_v28, %v4467_v28  ;;  %v4701_v54 = vadd.f32 %v4700_v29, %v4463_v21 }
 0xd15   : >> { %4682 = vst [vmem:[%s9725_s24 + $0x180] sm:$0xff] %v4384_v37  ;;  %4677 = vst [vmem:[%s9725_s24 + $0x118] sm:$0xff] %v4469_v33  ;;  %v4780_v40 = vadd.f32 %v4747_v6, %v4746_v44  ;;  %v4773_v22 = vadd.f32 %v4772_v20, %v4741_v4  ;;  %v4709_v35 = vadd.f32 %v4708_v1, %v4467_v28 }
 0xd16   : >> { %v4386_v15 = vpop.f32.mrf.mxu0  ;;  %v4473_v47 = vpop.f32.mrf.mxu1  ;;  %v4754_v18 = vmul.f32 %v4384_v37, %v4384_v37  ;;  %v4749_v63 = vmul.f32 %v4469_v33, %v4469_v33 }
 0xd17   : >> { %4683 = vst [vmem:[%s9725_s24 + $0x188] sm:$0xff] %v4386_v15  ;;  %4684 = vst [vmem:[%s9725_s24 + $0x190] sm:$0xff] %v4473_v47  ;;  %v4755_v62 = vmul.f32 %v4386_v15, %v4386_v15  ;;  %v4781_v46 = vadd.f32 %v4780_v40, %v4748_v30  ;;  %v4717_v9 = vadd.f32 %v4386_v15, %v4384_v37 }
 0xd18   : >> { %v4544_v2 = vpop.f32.mrf.mxu0  ;;  %v4475_v57 = vpop.f32.mrf.mxu1  ;;  %v4756_v36 = vmul.f32 %v4473_v47, %v4473_v47  ;;  %v4710_v53 = vadd.f32 %v4709_v35, %v4469_v33 }
 0xd19   : >> { %4662 = vst [vmem:[%s9725_s24 + $0x20] sm:$0xff] %v4544_v2  ;;  %v4693_v61 = vadd.f32 %v4692_v39, %v4544_v2  ;;  %4685 = vst [vmem:[%s9725_s24 + $0x198] sm:$0xff] %v4475_v57  ;;  %v4734_v23 = vmul.f32 %v4544_v2, %v4544_v2  ;;  %v4789_v12 = vadd.f32 %v4755_v62, %v4754_v18 }
 0xd1a   : >> { %v4546_v16 = vpop.f32.mrf.mxu0  ;;  %v4633_v48 = vpop.f32.mrf.mxu1  ;;  %v4782_v28 = vadd.f32 %v4781_v46, %v4749_v63  ;;  %v4718_v37 = vadd.f32 %v4717_v9, %v4473_v47 }
 0xd1b   : >> { %4663 = vst [vmem:[%s9725_s24 + $0x28] sm:$0xff] %v4546_v16  ;;  %v4694_v25 = vadd.f32 %v4693_v61, %v4546_v16  ;;  %v4735_v50 = vmul.f32 %v4546_v16, %v4546_v16  ;;  %4664 = vst [vmem:[%s9725_s24 + $0x30] sm:$0xff] %v4633_v48  ;;  %v4765_v49 = vadd.f32 %v4764_v8, %v4734_v23 }
 0xd1c   : >> { %v4736_v58 = vmul.f32 %v4633_v48, %v4633_v48  ;;  %v4550_v21 = vpop.f32.mrf.mxu0  ;;  %v4635_v59 = vpop.f32.mrf.mxu1  ;;  %v4790_v33 = vadd.f32 %v4789_v12, %v4756_v36  ;;  %v4757_v8 = vmul.f32 %v4475_v57, %v4475_v57  ;;  %v4719_v35 = vadd.f32 %v4718_v37, %v4475_v57 }
 0xd1d   : >> { %4670 = vst [vmem:[%s9725_s24 + $0xa0] sm:$0xff] %v4550_v21  ;;  %v4702_v0 = vadd.f32 %v4701_v54, %v4550_v21  ;;  %v4742_v14 = vmul.f32 %v4550_v21, %v4550_v21  ;;  %4665 = vst [vmem:[%s9725_s24 + $0x38] sm:$0xff] %v4635_v59  ;;  %v4695_v27 = vadd.f32 %v4694_v25, %v4633_v48 }
 0xd1e   : >> { %v4552_v56 = vpop.f32.mrf.mxu0  ;;  %v4639_v6 = vpop.f32.mrf.mxu1  ;;  %v4766_v44 = vadd.f32 %v4765_v49, %v4735_v50  ;;  %v4737_v39 = vmul.f32 %v4635_v59, %v4635_v59  ;;  %v4791_v63 = vadd.f32 %v4790_v33, %v4757_v8 }
 0xd1f   : >> { %v4774_v34 = vadd.f32 %v4773_v22, %v4742_v14  ;;  %4671 = vst [vmem:[%s9725_s24 + $0xa8] sm:$0xff] %v4552_v56  ;;  %v4703_v29 = vadd.f32 %v4702_v0, %v4552_v56  ;;  %v4743_v20 = vmul.f32 %v4552_v56, %v4552_v56  ;;  %4672 = vst [vmem:[%s9725_s24 + $0xb0] sm:$0xff] %v4639_v6 }
 0xd20   : >> { %v4744_v1 = vmul.f32 %v4639_v6, %v4639_v6  ;;  %v4556_v40 = vpop.f32.mrf.mxu0  ;;  %v4641_v30 = vpop.f32.mrf.mxu1  ;;  %v4696_v15 = vadd.f32 %v4695_v27, %v4635_v59  ;;  %v4767_v3 = vadd.f32 %v4766_v44, %v4736_v58 }
 0xd21   : >> { %4678 = vst [vmem:[%s9725_s24 + $0x120] sm:$0xff] %v4556_v40  ;;  %v4711_v4 = vadd.f32 %v4710_v53, %v4556_v40  ;;  %v4750_v2 = vmul.f32 %v4556_v40, %v4556_v40  ;;  %4673 = vst [vmem:[%s9725_s24 + $0xb8] sm:$0xff] %v4641_v30  ;;  %v4775_v47 = vadd.f32 %v4774_v34, %v4743_v20 }
 0xd22   : >> { %4697 = vadd.xlane.f32.xlu0 %v4696_v15  ;;  %v4558_v54 = vpop.f32.mrf.mxu0  ;;  %v4768_v62 = vadd.f32 %v4767_v3, %v4737_v39  ;;  %v4645_v61 = vpop.f32.mrf.mxu1  ;;  %v4704_v22 = vadd.f32 %v4703_v29, %v4639_v6  ;;  %v4745_v25 = vmul.f32 %v4641_v30, %v4641_v30 }
 0xd23   : >> { %v4783_v46 = vadd.f32 %v4782_v28, %v4750_v2  ;;  %4679 = vst [vmem:[%s9725_s24 + $0x128] sm:$0xff] %v4558_v54  ;;  %v4712_v23 = vadd.f32 %v4711_v4, %v4558_v54  ;;  %v4751_v16 = vmul.f32 %v4558_v54, %v4558_v54  ;;  %4680 = vst [vmem:[%s9725_s24 + $0x130] sm:$0xff] %v4645_v61 }
 0xd24   : >> { %4769 = vadd.xlane.f32.xlu1 %v4768_v62  ;;  %v4562_v48 = vpop.f32.mrf.mxu0  ;;  %v4752_v18 = vmul.f32 %v4645_v61, %v4645_v61  ;;  %v4647_v9 = vpop.f32.mrf.mxu1  ;;  %v4776_v50 = vadd.f32 %v4775_v47, %v4744_v1  ;;  %v4705_v59 = vadd.f32 %v4704_v22, %v4641_v30 }
 0xd25   : >> { %4686 = vst [vmem:[%s9725_s24 + $0x1a0] sm:$0xff] %v4562_v48  ;;  %v4720_v36 = vadd.f32 %v4719_v35, %v4562_v48  ;;  %v4758_v49 = vmul.f32 %v4562_v48, %v4562_v48  ;;  %4681 = vst [vmem:[%s9725_s24 + $0x138] sm:$0xff] %v4647_v9  ;;  %v4784_v57 = vadd.f32 %v4783_v46, %v4751_v16 }
 0xd26   : >> { %v4564_v58 = vpop.f32.mrf.mxu0  ;;  %v4777_v21 = vadd.f32 %v4776_v50, %v4745_v25  ;;  %v4651_v12 = vpop.f32.mrf.mxu1  ;;  %v4753_v0 = vmul.f32 %v4647_v9, %v4647_v9  ;;  %v4713_v14 = vadd.f32 %v4712_v23, %v4645_v61 }
 0xd27   : >> { %v4792_v27 = vadd.f32 %v4791_v63, %v4758_v49  ;;  %4687 = vst [vmem:[%s9725_s24 + $0x1a8] sm:$0xff] %v4564_v58  ;;  %v4721_v53 = vadd.f32 %v4720_v36, %v4564_v58  ;;  %v4759_v28 = vmul.f32 %v4564_v58, %v4564_v58  ;;  %4688 = vst [vmem:[%s9725_s24 + $0x1b0] sm:$0xff] %v4651_v12 }
 0xd28   : >> { %4778 = vadd.xlane.f32.xlu0 %v4777_v21  ;;  %4706 = vadd.xlane.f32.xlu1 %v4705_v59  ;;  %v4653_v56 = vpop.f32.mrf.mxu1  ;;  %v4785_v6 = vadd.f32 %v4784_v57, %v4752_v18  ;;  %v4760_v44 = vmul.f32 %v4651_v12, %v4651_v12  ;;  %v4714_v29 = vadd.f32 %v4713_v14, %v4647_v9 }
 0xd29   : >> { %4689 = vst [vmem:[%s9725_s24 + $0x1b8] sm:$0xff] %v4653_v56  ;;  %v4793_v37 = vadd.f32 %v4792_v27, %v4759_v28  ;;  %v4722_v20 = vadd.f32 %v4721_v53, %v4651_v12  ;;  %v4761_v1 = vmul.f32 %v4653_v56, %v4653_v56 }
 0xd2a   : >> { %v4786_v34 = vadd.f32 %v4785_v6, %v4753_v0 }
 0xd2b   : >> { %v4723_v40 = vadd.f32 %v4722_v20, %v4653_v56  ;;  %v4794_v30 = vadd.f32 %v4793_v37, %v4760_v44 }
 0xd2c   : >> { %4787 = vadd.xlane.f32.xlu1 %v4786_v34  ;;  %4715 = vadd.xlane.f32.xlu0 %v4714_v29 }
 0xd2d   : >> { %v4795_v15 = vadd.f32 %v4794_v30, %v4761_v1  ;;  %v6150_v1 = vmov (%p4186_p6), 0.0   ;;  %v6158_v30 = vmov (%p4186_p6), 0.0  }
 0xd30   : >> { %4724 = vadd.xlane.f32.xlu0 %v4723_v40  ;;  %v6154_v40 = vmov (%p4186_p6), 0.0  }
 0xd34   : >> { %4796 = vadd.xlane.f32.xlu0 %v4795_v15  ;;  %v6162_v15 = vmov (%p4186_p6), 0.0  }
 0xdab   : >> { %v4698_v39 = vpop.xlane.xlu0 %4697 }
 0xdac   : >> { %v4726_v3 = vadd.f32 %v6144_v55, %v4698_v39  }
 0xdad   : >> { %v4770_v33 = vpop.xlane.xlu1 %4769 }
 0xdae   : >> { %v4798_v4 = vadd.f32 %v6128_v13, %v4770_v33   ;;  %v9917_v55 = vmov %v4726_v3 }
 0xdaf   : > { %v4810_v55 = vmul.f32 (%p4186_p6), 0.00048828125, %v4726_v3 }
 0xdb0   : >> { %v9913_v13 = vmov %v4798_v4  ;;  %v4814_v50 = vmul.f32 (%p4186_p6), 0.00048828125, %v4798_v4 }
 0xdb1   : >> { %v4779_v2 = vpop.xlane.xlu0 %4778  ;;  %v4707_v47 = vpop.xlane.xlu1 %4706  ;;  %v4818_v57 = vmul.f32 (%p4186_p6), %v4810_v55, %v4810_v55 }
 0xdb2   : >> { %v4799_v8 = vadd.f32 %v6124_v32, %v4779_v2   ;;  %v4727_v54 = vadd.f32 %v6140_v11, %v4707_v47  }
 0xdb3   : > { %v4822_v12 = vsub.f32 (%p4186_p6), %v4814_v50, %v4818_v57 }
 0xdb4   : >> { %v9912_v32 = vmov %v4799_v8  ;;  %v9916_v11 = vmov %v4727_v54  ;;  %v4811_v18 = vmul.f32 (%p4186_p6), 0.00048828125, %v4727_v54  ;;  %v4815_v63 = vmul.f32 (%p4186_p6), 0.00048828125, %v4799_v8 }
 0xdb5   : >> { %v4788_v62 = vpop.xlane.xlu1 %4787  ;;  %v4716_v61 = vpop.xlane.xlu0 %4715  ;;  %v4826_v53 = vadd.f32 (%p4186_p6), 1e-05, %v4822_v12  ;;  %v4808_v32 = vld [vmem:[%s9893_s9 + $0x10] sm:$0xff] (%p4186_p6) }
 0xdb6   : >> { %v4800_v22 = vadd.f32 %v6120_v19, %v4788_v62   ;;  %v4728_v35 = vadd.f32 %v6136_v5, %v4716_v61   ;;  %v4819_v58 = vmul.f32 (%p4186_p6), %v4811_v18, %v4811_v18 }
 0xdb7   : > { %5990 = vrsqrt.f32 (%p4186_p6), %v4826_v53 }
 0xdb8   : >> { %v9911_v19 = vmov %v4800_v22  ;;  %v9915_v5 = vmov %v4728_v35  ;;  %v4812_v9 = vmul.f32 (%p4186_p6), 0.00048828125, %v4728_v35  ;;  %v4816_v36 = vmul.f32 (%p4186_p6), 0.00048828125, %v4800_v22 }
 0xdb9   : >> { %v4725_v46 = vpop.xlane.xlu0 %4724  ;;  %v4823_v0 = vsub.f32 (%p4186_p6), %v4815_v63, %v4819_v58  ;;  %v4809_v5 = vld [vmem:[%s9893_s9 + $0x18] sm:$0xff] (%p4186_p6) }
 0xdba   : >> { %v4729_v23 = vadd.f32 %v6132_v51, %v4725_v46   ;;  %v4820_v21 = vmul.f32 (%p4186_p6), %v4812_v9, %v4812_v9 }
 0xdbb   : > { %v4827_v28 = vadd.f32 (%p4186_p6), 1e-05, %v4823_v0 }
 0xdbc   : >> { %v9914_v51 = vmov %v4729_v23  ;;  %4188 = sbr.rel (!%p4186_p6) target bundleno = 3004 (0xbbc), region = 128  ;;  %v4813_v25 = vmul.f32 (%p4186_p6), 0.00048828125, %v4729_v23  ;;  %v4824_v14 = vsub.f32 (%p4186_p6), %v4816_v36, %v4820_v21 }
 0xdbd   : >> { %v4797_v16 = vpop.xlane.xlu0 %4796  ;;  %5992 = vrsqrt.f32 (%p4186_p6), %v4827_v28 }
 0xdbe   : >> { %v4801_v48 = vadd.f32 %v6116_v52, %v4797_v16   ;;  %v4821_v59 = vmul.f32 (%p4186_p6), %v4813_v25, %v4813_v25  ;;  %v4828_v56 = vadd.f32 (%p4186_p6), 1e-05, %v4824_v14 }
 0xdc0   : >> { %v9910_v52 = vmov %v4801_v48  ;;  %v4817_v49 = vmul.f32 (%p4186_p6), 0.00048828125, %v4801_v48  ;;  %5994 = vrsqrt.f32 (%p4186_p6), %v4828_v56 }
 0xdc2   : > { %v4825_v27 = vsub.f32 %v4817_v49, %v4821_v59 }
 0xdc4   : > { %v4829_v6 = vadd.f32 1e-05, %v4825_v27  ;;  %v5991_v45 = vpop.eup %5990 }
 0xdc5   : > { %v9798_v43 = vmul.f32 %v5991_v45, %v4802_v60 }
 0xdc6   : > { %5996 = vrsqrt.f32 %v4829_v6 }
 0xdc7   : > { %v4838_v19 = vmul.f32 %v9798_v43, %v4810_v55 }
 0xdc9   : > { %v9821_v44 = vsub.f32 %v4806_v38, %v4838_v19 }
 0xdca   : > { %v5993_v7 = vpop.eup %5992 }
 0xdcb   : > { %v9803_v41 = vmul.f32 %v5993_v7, %v4803_v24 }
 0xdcd   : > { %v5995_v31 = vpop.eup %5994  ;;  %v4839_v51 = vmul.f32 %v9803_v41, %v4811_v18 }
 0xdce   : > { %v9808_v52 = vmul.f32 %v5995_v31, %v4804_v10 }
 0xdcf   : > { %v9824_v34 = vsub.f32 %v4807_v17, %v4839_v51 }
 0xdd0   : > { %v4840_v11 = vmul.f32 %v9808_v52, %v4812_v9 }
 0xdd2   : > { %v9826_v29 = vsub.f32 %v4808_v32, %v4840_v11 }
 0xdd3   : > { %v5997_v42 = vpop.eup %5996 }
 0xdd4   : > { %v9814_v13 = vmul.f32 %v5997_v42, %v4805_v26 }
 0xdd6   : > { %v4841_v37 = vmul.f32 %v9814_v13, %v4813_v25 }
 0xdd8   : > { %v9828_v20 = vsub.f32 %v4809_v5, %v4841_v37 }
 0xdd9 LB: >> { %v6195_v39 = vmov 0   ;;  %s5484_s24 = sshll.u32 %s6168_s23, 7  ;;  %s4851_s23 = sadd.s32 1, %s6168_s23   ;;  %s6168_s23 = sphi %s9830_s23, %s4851_s23   ;;  %v6164_v15 = vphi %v6162_v15, %v6163_v15   ;;  %v6160_v30 = vphi %v6158_v30, %v6159_v30   ;;  %v6156_v40 = vphi %v6154_v40, %v6155_v40   ;;  %v6152_v1 = vphi %v6150_v1, %v6151_v1  }
 0xdda   : >> { %5999 = vset.pattern.permute.xlu1 %v6195_v39  ;;  %5998 = vset.pattern.permute.xlu0 %v6195_v39  ;;  %s4857_s25 = sshra.s32 %s5484_s24, 7  ;;  %p4848_p7 = scmp.ge.s32.totalorder %s4851_s23, 8  }
 0xddb   : >> { %4877 = vperm.xlu1 %5999, %v9808_v52   ;;  %4867 = vperm.xlu0 %5998, %v9798_v43   ;;  %s5485_s26 = sshll.u32 %s4857_s25, 3  ;;  %v9847_v0 = vmov (%p4848_p7), 0.0   ;;  %v6174_v14 = vmov (%p4848_p7), 0.0   ;;  %v6178_v27 = vmov (%p4848_p7), 0.0   ;;  %v6182_v53 = vmov (%p4848_p7), 0.0   ;;  %s9849_s28 = smov (%p4848_p7), 0  }
 0xddc   : >> { %s4860_s27 = scalar_lea.vmem [#allocation6], %s5485_s26 }
 0xddd   : >> { %v4861_v4 = vld [vmem:[%s4860_s27] sm:$0xff] }
 0xdde   : >> { %v4862_v8 = vld [vmem:[%s4860_s27 + $0x80] sm:$0xff] }
 0xddf   : >> { %4882 = vperm.xlu1 %5999, %v9814_v13   ;;  %4872 = vperm.xlu0 %5998, %v9803_v41   ;;  %v4863_v61 = vld [vmem:[%s4860_s27 + $0x100] sm:$0xff] }
 0xde0   : >> { %v4864_v22 = vld [vmem:[%s4860_s27 + $0x180] sm:$0xff] }
 0xde3   : >> { %4896 = vperm.xlu1 %5999, %v9824_v34   ;;  %4891 = vperm.xlu0 %5998, %v9821_v44  }
 0xde7   : >> { %4906 = vperm.xlu1 %5999, %v9828_v20   ;;  %4901 = vperm.xlu0 %5998, %v9826_v29  }
 0xe56   : >> { %v4878_v3 = vpop.permute.xlu1 %4877  ;;  %v4868_v33 = vpop.permute.xlu0 %4867 }
 0xe57   : >> { %v4885_v54 = vmul.f32 %v4868_v33, %v4861_v4  ;;  %v4887_v48 = vmul.f32 %v4878_v3, %v4863_v61 }
 0xe5a   : >> { %v4883_v2 = vpop.permute.xlu1 %4882  ;;  %v4873_v47 = vpop.permute.xlu0 %4872 }
 0xe5b   : >> { %v4886_v62 = vmul.f32 %v4873_v47, %v4862_v8  ;;  %v4888_v55 = vmul.f32 %v4883_v2, %v4864_v22 }
 0xe5e   : >> { %v4897_v35 = vpop.permute.xlu1 %4896  ;;  %v4892_v46 = vpop.permute.xlu0 %4891 }
 0xe5f   : >> { %v4910_v23 = vadd.f32 %v4897_v35, %v4886_v62  ;;  %v4909_v16 = vadd.f32 %v4892_v46, %v4885_v54 }
 0xe61   : >> { %v4914_v18 = vmax.f32 %v4910_v23, 0.0  ;;  %v4913_v9 = vmax.f32 %v4909_v16, 0.0 }
 0xe62   : >> { %v4907_v25 = vpop.permute.xlu1 %4906  ;;  %v4902_v50 = vpop.permute.xlu0 %4901 }
 0xe63   : >> { %v4918_v63 = vmax.f32 %v6160_v30, %v4914_v18   ;;  %v4917_v36 = vmax.f32 %v6164_v15, %v4913_v9   ;;  %v4912_v49 = vadd.f32 %v4907_v25, %v4888_v55  ;;  %v4911_v57 = vadd.f32 %v4902_v50, %v4887_v48 }
 0xe65   : >> { %v4916_v58 = vmax.f32 %v4912_v49, 0.0  ;;  %v4915_v21 = vmax.f32 %v4911_v57, 0.0  ;;  %v6159_v30 = vmov %v4918_v63   ;;  %v6163_v15 = vmov %v4917_v36   ;;  %4850 = sbr.rel (!%p4848_p7) target bundleno = 3545 (0xdd9), region = 139  ;;  %4921 = vst [vmem:[#allocation7] sm:$0xff] (%p4848_p7), %v4917_v36  ;;  %4922 = vst [vmem:[#allocation7 + $0x8] sm:$0xff] (%p4848_p7), %v4918_v63 }
 0xe67   : >> { %v4920_v59 = vmax.f32 %v6152_v1, %v4916_v58   ;;  %v4919_v12 = vmax.f32 %v6156_v40, %v4915_v21  }
 0xe69   : >> { %v6151_v1 = vmov %v4920_v59   ;;  %v6155_v40 = vmov %v4919_v12   ;;  %4923 = vst [vmem:[#allocation7 + $0x10] sm:$0xff] (%p4848_p7), %v4919_v12  ;;  %4924 = vst [vmem:[#allocation7 + $0x18] sm:$0xff] (%p4848_p7), %v4920_v59 }
 0xe6a LB: >> { %v6196_v28 = vmov 0   ;;  %s5495_s29 = sshll.u32 %s6188_s28, 7  ;;  %s4930_s28 = sadd.s32 1, %s6188_s28   ;;  %s6188_s28 = sphi %s9849_s28, %s4930_s28   ;;  %v6184_v53 = vphi %v6182_v53, %v6183_v53   ;;  %v6180_v27 = vphi %v6178_v27, %v6179_v27   ;;  %v6176_v14 = vphi %v6174_v14, %v6175_v14   ;;  %v6172_v0 = vphi %v9847_v0, %v9918_v0  }
 0xe6b   : >> { %6001 = vset.pattern.permute.xlu1 %v6196_v28  ;;  %6000 = vset.pattern.permute.xlu0 %v6196_v28  ;;  %s5496_s30 = sadd.s32 1024, %s5495_s29  ;;  %p4927_p8 = scmp.ge.s32.totalorder %s4930_s28, 8  }
 0xe6c   : >> { %4957 = vperm.xlu1 %6001, %v9808_v52   ;;  %4947 = vperm.xlu0 %6000, %v9798_v43   ;;  %s4937_s11 = sshra.s32 %s5496_s30, 7 }
 0xe6d   : >> { %s5487_s12 = sshll.u32 %s4937_s11, 3 }
 0xe6e   : >> { %s4940_s15 = scalar_lea.vmem [#allocation6], %s5487_s12 }
 0xe6f   : >> { %v4941_v60 = vld [vmem:[%s4940_s15] sm:$0xff] }
 0xe70   : >> { %4962 = vperm.xlu1 %6001, %v9814_v13   ;;  %4952 = vperm.xlu0 %6000, %v9803_v41   ;;  %v4942_v10 = vld [vmem:[%s4940_s15 + $0x80] sm:$0xff] }
 0xe71   : >> { %v4943_v31 = vld [vmem:[%s4940_s15 + $0x100] sm:$0xff] }
 0xe72   : >> { %v4944_v38 = vld [vmem:[%s4940_s15 + $0x180] sm:$0xff] }
 0xe74   : >> { %4976 = vperm.xlu1 %6001, %v9824_v34   ;;  %4971 = vperm.xlu0 %6000, %v9821_v44  }
 0xe78   : >> { %4986 = vperm.xlu1 %6001, %v9828_v20   ;;  %4981 = vperm.xlu0 %6000, %v9826_v29  }
 0xee7   : >> { %v4958_v56 = vpop.permute.xlu1 %4957  ;;  %v4948_v6 = vpop.permute.xlu0 %4947 }
 0xee8   : >> { %v4965_v7 = vmul.f32 %v4948_v6, %v4941_v60  ;;  %v4967_v51 = vmul.f32 %v4958_v56, %v4943_v31 }
 0xeeb   : >> { %v4963_v24 = vpop.permute.xlu1 %4962  ;;  %v4953_v45 = vpop.permute.xlu0 %4952 }
 0xeec   : >> { %v4966_v26 = vmul.f32 %v4953_v45, %v4942_v10  ;;  %v4968_v5 = vmul.f32 %v4963_v24, %v4944_v38 }
 0xeef   : >> { %v4977_v42 = vpop.permute.xlu1 %4976  ;;  %v4972_v17 = vpop.permute.xlu0 %4971 }
 0xef0   : >> { %v4990_v19 = vadd.f32 %v4977_v42, %v4966_v26  ;;  %v4989_v32 = vadd.f32 %v4972_v17, %v4965_v7 }
 0xef2   : >> { %v4994_v11 = vmax.f32 %v4990_v19, 0.0  ;;  %v4993_v37 = vmax.f32 %v4989_v32, 0.0 }
 0xef3   : >> { %v4987_v1 = vpop.permute.xlu1 %4986  ;;  %v4982_v40 = vpop.permute.xlu0 %4981 }
 0xef4   : >> { %v4998_v30 = vmax.f32 %v6180_v27, %v4994_v11   ;;  %v4997_v15 = vmax.f32 %v6184_v53, %v4993_v37   ;;  %v4992_v39 = vadd.f32 %v4987_v1, %v4968_v5  ;;  %v4991_v3 = vadd.f32 %v4982_v40, %v4967_v51 }
 0xef6   : >> { %v4996_v33 = vmax.f32 %v4992_v39, 0.0  ;;  %v4995_v4 = vmax.f32 %v4991_v3, 0.0  ;;  %v6179_v27 = vmov %v4998_v30   ;;  %v6183_v53 = vmov %v4997_v15   ;;  %4929 = sbr.rel (!%p4927_p8) target bundleno = 3690 (0xe6a), region = 150  ;;  %5002 = vst [vmem:[#allocation7 + $0x20] sm:$0xff] (%p4927_p8), %v4997_v15  ;;  %5003 = vst [vmem:[#allocation7 + $0x28] sm:$0xff] (%p4927_p8), %v4998_v30 }
 0xef8   : >> { %v5000_v2 = vmax.f32 %v6172_v0, %v4996_v33   ;;  %v4999_v47 = vmax.f32 %v6176_v14, %v4995_v4  }
 0xefa   : >> { %v9918_v0 = vmov %v5000_v2  ;;  %v6175_v14 = vmov %v4999_v47   ;;  %5004 = vst [vmem:[#allocation7 + $0x30] sm:$0xff] (%p4927_p8), %v4999_v47  ;;  %5005 = vst [vmem:[#allocation7 + $0x38] sm:$0xff] (%p4927_p8), %v5000_v2 }
 0xefb PF: > { %p5810_p9 = scmp.eq.s32.totalorder %s6261_s14, 1  ;;  %s6197_s16 = smov [#allocation7]  }
 0xefc   : > { %s5012_s17 = sshll.u32 %s6197_s16, 4  ;;  %s5013_s17 = int_to_ptr.vmem [resolvable:$true] %s5012_s17 }
 0xefd   : > { %s6002_s18 = scalar_lea.vmem %s5013_s17, 1024  ;;  %p6009_p13 = scmp.lt.s32.totalorder %s5013_s17, %s5013_s17 }
 0xefe   : > { %p6003_p10 = scmp.ne.s32.totalorder %s5013_s17, %s6002_s18  ;;  %p6010_p0 = scmp.lt.s32.totalorder %s6002_s18, %s6002_s18 }
 0xf00   : > { %p6004_p11 = pnand %p6003_p10, %p5810_p9  ;;  %p6011_p1 = por %p6010_p0, %p6009_p13 }
 0xf02   : > { %p6005_p12 = pneg %p6004_p11 }
 0xf04   : > { %p6012_p2 = pnand %p6011_p1, %p6005_p12 }
 0xf06   : > { %6015 = shalt.err (!%p6012_p2)
}
 0xf07   : > { %s6198_s19 = smov 128   ;;  %s6199_s20 = smov 8  }
 0xf08   : > { %5807 = dma.vmem_to_hbm [thread:$0]  (%p5810_p9), %s5013_s17, 1024, %s9894_s10, [#allocation8], %s6198_s19, %s6198_s19, %s6199_s20  }
 0xf09   : > { %6107 = dma.done.wait (%p5810_p9), [#allocation8], 1024  }
 0xf0a   : > { %6109 = vsyncadd (%p5810_p9), [#allocation8], 4294966272 }
 0xf0b PF: > { %s21_s13 = sadd.s32 1, %s6112_s13  }
 0xf0c   : > { %p18_p3 = scmp.ge.s32.totalorder %s21_s13, 4  }
 0xf0e   :  { %20 = sbr.rel (!%p18_p3) target bundleno = 1 (0x1), region = 161 }
 0xf13   :  { %5028 = vsyncpa [#allocation8], 1 }
 0xf14   :  { %5030 = vsyncpa [#allocation8 + $0x1], 1 }

</bundles_post_ra>
